<compile_context>
chip_gen: v7x
topology: tpu7x:2x2x1
jax: 0.10.0
libtpu: 0.0.40
codegen_flags: <defaults>
</compile_context>

<pallas_src>
import functools

import numpy as np
import jax
import jax.numpy as jnp
from jax.experimental import pallas as pl
from jax.experimental.pallas import tpu as pltpu

_INV_SQRT2 = float(1.0 / np.sqrt(2.0))
_SOFTPLUS_BETA = 100.0        # nn.Softplus(beta=100)
_SOFTPLUS_THRESHOLD = 20.0    # PyTorch Softplus default threshold


# ----------------------------------------------------------------------------
# Positional encoding (NeRF get_embedder): [x, sin(2^0 x), cos(2^0 x), ...]
# Computed in the wrapper (cheap elementwise, XLA-fused); the kernel consumes
# the already-embedded inputs.
# ----------------------------------------------------------------------------
def positional_encoding(x, multires):
    if multires <= 0:
        return x
    parts = [x]
    for i in range(multires):
        freq = float(2.0 ** i)
        parts.append(jnp.sin(x * freq))
        parts.append(jnp.cos(x * freq))
    return jnp.concatenate(parts, axis=-1)


def _softplus100(pre):
    """PyTorch Softplus(beta=100, threshold=20) semantics, f32."""
    bx = _SOFTPLUS_BETA * pre
    soft = jnp.log1p(jnp.exp(jnp.minimum(bx, _SOFTPLUS_THRESHOLD))) / _SOFTPLUS_BETA
    return jnp.where(bx > _SOFTPLUS_THRESHOLD, pre, soft)


# ----------------------------------------------------------------------------
# Fused MLP kernel: one batch tile -> full forward pass.
# refs = (x_tile, [per-layer weights/biases...], out_tile)
#   non-skip layer l: (W_t[in,out], b[1,out])
#   skip layer l    : (Wx_t[x_dim,out], Wi_t[input_ch,out], b[1,out])
# The final layer's weight/bias arrive already lane-padded to out_ref's width.
# ----------------------------------------------------------------------------
def _udf_mlp_kernel(*refs, n_lin, skip_in, inv_scale, udf_type):
    x_ref = refs[0]
    out_ref = refs[-1]
    wrefs = refs[1:-1]

    inputs = x_ref[...]                      # (block_n, input_ch) f32
    x = inputs
    p = 0
    for l in range(n_lin):                   # static unroll over layers
        if l in skip_in:
            wx = wrefs[p][...]
            wi = wrefs[p + 1][...]
            b = wrefs[p + 2][...]
            p += 3
            # cat([x, inputs], 1)/sqrt(2) @ W.T + b
            #   == (x @ Wx + inputs @ Wi) / sqrt(2) + b
            pre = (jnp.dot(x, wx, preferred_element_type=jnp.float32)
                   + jnp.dot(inputs, wi, preferred_element_type=jnp.float32)
                   ) * _INV_SQRT2 + b
        else:
            w = wrefs[p][...]
            b = wrefs[p + 1][...]
            p += 2
            pre = jnp.dot(x, w, preferred_element_type=jnp.float32) + b

        if l < n_lin - 1:
            x = _softplus100(pre)
        else:
            x = pre

    # out[:, 0] = udf_out(x[:, 0]) / scale ; out[:, 1:] = x[:, 1:]
    col0 = jax.lax.broadcasted_iota(jnp.int32, x.shape, 1) == 0
    if udf_type == "abs":
        u = jnp.abs(x)
    elif udf_type == "square":
        u = x * x
    else:  # "sdf"
        u = x
    out_ref[...] = jnp.where(col0, u * inv_scale, x)


# ----------------------------------------------------------------------------
# Wrapper: scale + embed, pad batch & output lanes, build operands/specs,
# call the kernel.  Returns (feature_out, embedded_inputs) like
# UDFNetwork.forward.
# ----------------------------------------------------------------------------
def udf_network_forward(inputs, params, *, multires=0, skip_in=(4,), scale=1.0,
                        udf_type="abs", block_n=256):
    inputs = jnp.asarray(inputs, jnp.float32)
    pe = positional_encoding(inputs * scale, multires)       # (N, input_ch)
    n, input_ch = pe.shape

    n_pad = int(pl.cdiv(n, block_n)) * block_n
    pe_p = jnp.pad(pe, ((0, n_pad - n), (0, 0))) if n_pad != n else pe

    n_lin = len(params)
    d_out = params[-1][0].shape[0]
    # Lane-dense output: pad final output channels to a multiple of 128.
    d_out_pad = max(128, int(pl.cdiv(d_out, 128)) * 128)

    operands = [pe_p]
    in_specs = [pl.BlockSpec((block_n, input_ch), lambda i: (i, 0))]
    for l, (w, b) in enumerate(params):
        wt = jnp.asarray(w, jnp.float32).T            # (in_dim, out_dim)
        b2 = jnp.asarray(b, jnp.float32).reshape(1, -1)
        if l == n_lin - 1 and d_out_pad != d_out:
            # Zero-pad the last layer's output lanes; padded columns stay 0.
            wt = jnp.pad(wt, ((0, 0), (0, d_out_pad - d_out)))
            b2 = jnp.pad(b2, ((0, 0), (0, d_out_pad - d_out)))
        if l in skip_in:
            x_dim = wt.shape[0] - input_ch            # rows for the running x
            pieces = (wt[:x_dim], wt[x_dim:], b2)
        else:
            pieces = (wt, b2)
        for arr in pieces:
            operands.append(arr)
            # Full-array block (constant index map) -> weights stay
            # VMEM-resident across grid steps (no per-step re-DMA).
            in_specs.append(pl.BlockSpec(arr.shape, lambda i: (0, 0)))

    kernel = functools.partial(
        _udf_mlp_kernel,
        n_lin=n_lin,
        skip_in=tuple(skip_in),
        inv_scale=float(1.0 / scale),
        udf_type=udf_type,
    )

    out = pl.pallas_call(
        kernel,
        out_shape=jax.ShapeDtypeStruct((n_pad, d_out_pad), jnp.float32),
        grid=(n_pad // block_n,),
        in_specs=in_specs,
        out_specs=pl.BlockSpec((block_n, d_out_pad), lambda i: (i, 0)),
        compiler_params=pltpu.CompilerParams(
            dimension_semantics=("parallel",)),
    )(*operands)

    return out[:n, :d_out], pe


# ----------------------------------------------------------------------------
# Parameter init matching UDFNetwork.__init__ (geometric init).
# weight_norm is a reparametrization: at init g = ||v||, so the effective
# weight equals the init weight; the forward consumes effective weights.
# ----------------------------------------------------------------------------
def init_udf_params(key, *, d_in, d_out, d_hidden, n_layers, skip_in=(4,),
                    multires=0, bias=0.5, geometric_init=True):
    input_ch = d_in * (1 + 2 * multires) if multires > 0 else d_in
    dims = [input_ch] + [d_hidden] * n_layers + [d_out]
    num_layers = len(dims)
    params = []
    for l in range(num_layers - 1):
        key, wkey, bkey = jax.random.split(key, 3)
        in_dim = dims[l]
        out_dim = dims[l + 1] - dims[0] if (l + 1) in skip_in else dims[l + 1]
        if geometric_init:
            if l == num_layers - 2:
                w = (np.sqrt(np.pi) / np.sqrt(dims[l])
                     + 1e-4 * jax.random.normal(wkey, (out_dim, in_dim), jnp.float32))
                b = jnp.full((out_dim,), -bias, jnp.float32)
            elif multires > 0 and l == 0:
                std = np.sqrt(2.0) / np.sqrt(out_dim)
                w = jnp.zeros((out_dim, in_dim), jnp.float32)
                w = w.at[:, :3].set(
                    std * jax.random.normal(wkey, (out_dim, 3), jnp.float32))
                b = jnp.zeros((out_dim,), jnp.float32)
            elif multires > 0 and l in skip_in:
                std = np.sqrt(2.0) / np.sqrt(out_dim)
                w = std * jax.random.normal(wkey, (out_dim, in_dim), jnp.float32)
                w = w.at[:, -(dims[0] - 3):].set(0.0)
                b = jnp.zeros((out_dim,), jnp.float32)
            else:
                std = np.sqrt(2.0) / np.sqrt(out_dim)
                w = std * jax.random.normal(wkey, (out_dim, in_dim), jnp.float32)
                b = jnp.zeros((out_dim,), jnp.float32)
        else:
            lim = 1.0 / np.sqrt(in_dim)
            w = jax.random.uniform(wkey, (out_dim, in_dim), jnp.float32, -lim, lim)
            b = jax.random.uniform(bkey, (out_dim,), jnp.float32, -lim, lim)
        params.append((w, b))
    return params


# ----------------------------------------------------------------------------
# Pure-JAX reference (faithful to the PyTorch forward) for correctness check.
# TODO(synk): gradient() (torch.autograd double backprop) is not a kernel;
# use jax.grad / jax.jvp over udf_network_forward instead.
# ----------------------------------------------------------------------------
def udf_forward_ref(inputs, params, *, multires, skip_in, scale, udf_type):
    x0 = jnp.asarray(inputs, jnp.float32) * scale
    pe = positional_encoding(x0, multires)
    x = pe
    n_lin = len(params)
    for l, (w, b) in enumerate(params):
        if l in skip_in:
            x = jnp.concatenate([x, pe], axis=1) * _INV_SQRT2
        x = x @ jnp.asarray(w, jnp.float32).T + jnp.asarray(b, jnp.float32)
        if l < n_lin - 1:
            x = _softplus100(x)
    if udf_type == "abs":
        u = jnp.abs(x[:, :1])
    elif udf_type == "square":
        u = x[:, :1] ** 2
    else:
        u = x[:, :1]
    return jnp.concatenate([u / scale, x[:, 1:]], axis=1), pe


if __name__ == "__main__":
    key = jax.random.PRNGKey(0)
    k_init, k_x = jax.random.split(key)

    # Small but representative config: 3-D points, 4 hidden layers of 64,
    # skip at layer 2, multires-6 positional encoding, 1 udf + 16 features.
    d_in, d_out, d_hidden, n_layers = 3, 17, 64, 4
    skip_in = (2,)
    multires = 6
    scale = 1.5
    udf_type = "abs"

    params = init_udf_params(
        k_init, d_in=d_in, d_out=d_out, d_hidden=d_hidden, n_layers=n_layers,
        skip_in=skip_in, multires=multires, bias=0.5, geometric_init=True)

    n_pts = 200  # not a multiple of the batch tile -> exercises padding
    x = jax.random.uniform(k_x, (n_pts, d_in), jnp.float32, minval=-1.0, maxval=1.0)

    out, pe = udf_network_forward(
        x, params, multires=multires, skip_in=skip_in, scale=scale,
        udf_type=udf_type, block_n=256)
    jax.block_until_ready((out, pe))

    ref_out, ref_pe = udf_forward_ref(
        x, params, multires=multires, skip_in=skip_in, scale=scale,
        udf_type=udf_type)

    assert out.shape == (n_pts, d_out)
    assert pe.shape == (n_pts, d_in * (1 + 2 * multires))
    assert jnp.allclose(pe, ref_pe, rtol=1e-6, atol=1e-6)
    assert jnp.allclose(out, ref_out, rtol=1e-3, atol=1e-3), (
        float(jnp.max(jnp.abs(out - ref_out))))

    print("KERNEL_OK")
</pallas_src>

<mosaic_0001>
module attributes {stable_mosaic.version = 11 : i64} {
  func.func @_udf_mlp_kernel(%arg0: i32, %arg1: memref<256x39xf32, #tpu.memory_space<vmem>>, %arg2: memref<39x64xf32, #tpu.memory_space<vmem>>, %arg3: memref<1x64xf32, #tpu.memory_space<vmem>>, %arg4: memref<64x25xf32, #tpu.memory_space<vmem>>, %arg5: memref<1x25xf32, #tpu.memory_space<vmem>>, %arg6: memref<25x64xf32, #tpu.memory_space<vmem>>, %arg7: memref<39x64xf32, #tpu.memory_space<vmem>>, %arg8: memref<1x64xf32, #tpu.memory_space<vmem>>, %arg9: memref<64x64xf32, #tpu.memory_space<vmem>>, %arg10: memref<1x64xf32, #tpu.memory_space<vmem>>, %arg11: memref<64x128xf32, #tpu.memory_space<vmem>>, %arg12: memref<1x128xf32, #tpu.memory_space<vmem>>, %arg13: memref<256x128xf32, #tpu.memory_space<vmem>>) attributes {dimension_semantics = [#tpu.dimension_semantics<parallel>], iteration_bounds = array<i64: 1>, scalar_prefetch = 0 : i64, scratch_operands = 0 : i64, tpu.core_type = #tpu.core_type<tc>, window_params = [{transform_indices = @transform_0, window_bounds = array<i64: 256, 39>}, {pipeline_mode = #tpu.pipeline_mode<synchronous>, transform_indices = @transform_1, window_bounds = array<i64: 39, 64>}, {pipeline_mode = #tpu.pipeline_mode<synchronous>, transform_indices = @transform_2, window_bounds = array<i64: 1, 64>}, {pipeline_mode = #tpu.pipeline_mode<synchronous>, transform_indices = @transform_3, window_bounds = array<i64: 64, 25>}, {pipeline_mode = #tpu.pipeline_mode<synchronous>, transform_indices = @transform_4, window_bounds = array<i64: 1, 25>}, {pipeline_mode = #tpu.pipeline_mode<synchronous>, transform_indices = @transform_5, window_bounds = array<i64: 25, 64>}, {pipeline_mode = #tpu.pipeline_mode<synchronous>, transform_indices = @transform_6, window_bounds = array<i64: 39, 64>}, {pipeline_mode = #tpu.pipeline_mode<synchronous>, transform_indices = @transform_7, window_bounds = array<i64: 1, 64>}, {pipeline_mode = #tpu.pipeline_mode<synchronous>, transform_indices = @transform_8, window_bounds = array<i64: 64, 64>}, {pipeline_mode = #tpu.pipeline_mode<synchronous>, transform_indices = @transform_9, window_bounds = array<i64: 1, 64>}, {pipeline_mode = #tpu.pipeline_mode<synchronous>, transform_indices = @transform_10, window_bounds = array<i64: 64, 128>}, {pipeline_mode = #tpu.pipeline_mode<synchronous>, transform_indices = @transform_11, window_bounds = array<i64: 1, 128>}, {transform_indices = @transform_12, window_bounds = array<i64: 256, 128>}]} {
    %c0 = arith.constant 0 : index
    %c0_0 = arith.constant 0 : index
    %0 = vector.load %arg1[%c0, %c0_0] : memref<256x39xf32, #tpu.memory_space<vmem>>, vector<256x39xf32>
    %c0_1 = arith.constant 0 : index
    %c0_2 = arith.constant 0 : index
    %1 = vector.load %arg2[%c0_1, %c0_2] : memref<39x64xf32, #tpu.memory_space<vmem>>, vector<39x64xf32>
    %c0_3 = arith.constant 0 : index
    %c0_4 = arith.constant 0 : index
    %2 = vector.load %arg3[%c0_3, %c0_4] : memref<1x64xf32, #tpu.memory_space<vmem>>, vector<1x64xf32>
    %cst = arith.constant dense<0.000000e+00> : vector<256x64xf32>
    %3 = tpu.matmul %0, %1, %cst {dimension_numbers = #tpu.dot_dimension_numbers<[1], [0], [0], [1], [0, 0, 1, 1], [], []>} : vector<256x39xf32>, vector<39x64xf32>, vector<256x64xf32> -> vector<256x64xf32>
    %4 = vector.broadcast %2 : vector<1x64xf32> to vector<256x64xf32>
    %5 = arith.addf %3, %4 : vector<256x64xf32>
    %cst_5 = arith.constant 1.000000e+02 : f32
    %6 = vector.broadcast %cst_5 : f32 to vector<256x64xf32>
    %7 = arith.mulf %6, %5 : vector<256x64xf32>
    %cst_6 = arith.constant 2.000000e+01 : f32
    %8 = vector.broadcast %cst_6 : f32 to vector<256x64xf32>
    %9 = arith.minimumf %7, %8 : vector<256x64xf32>
    %10 = math.exp %9 : vector<256x64xf32>
    %11 = math.log1p %10 : vector<256x64xf32>
    %cst_7 = arith.constant 1.000000e+02 : f32
    %12 = vector.broadcast %cst_7 : f32 to vector<256x64xf32>
    %13 = arith.divf %11, %12 : vector<256x64xf32>
    %cst_8 = arith.constant 2.000000e+01 : f32
    %14 = vector.broadcast %cst_8 : f32 to vector<256x64xf32>
    %15 = arith.cmpf ogt, %7, %14 : vector<256x64xf32>
    %16 = arith.select %15, %5, %13 : vector<256x64xi1>, vector<256x64xf32>
    %c0_9 = arith.constant 0 : index
    %c0_10 = arith.constant 0 : index
    %17 = vector.load %arg4[%c0_9, %c0_10] : memref<64x25xf32, #tpu.memory_space<vmem>>, vector<64x25xf32>
    %c0_11 = arith.constant 0 : index
    %c0_12 = arith.constant 0 : index
    %18 = vector.load %arg5[%c0_11, %c0_12] : memref<1x25xf32, #tpu.memory_space<vmem>>, vector<1x25xf32>
    %cst_13 = arith.constant dense<0.000000e+00> : vector<256x25xf32>
    %19 = tpu.matmul %16, %17, %cst_13 {dimension_numbers = #tpu.dot_dimension_numbers<[1], [0], [0], [1], [0, 0, 1, 1], [], []>} : vector<256x64xf32>, vector<64x25xf32>, vector<256x25xf32> -> vector<256x25xf32>
    %20 = vector.broadcast %18 : vector<1x25xf32> to vector<256x25xf32>
    %21 = arith.addf %19, %20 : vector<256x25xf32>
    %cst_14 = arith.constant 1.000000e+02 : f32
    %22 = vector.broadcast %cst_14 : f32 to vector<256x25xf32>
    %23 = arith.mulf %22, %21 : vector<256x25xf32>
    %cst_15 = arith.constant 2.000000e+01 : f32
    %24 = vector.broadcast %cst_15 : f32 to vector<256x25xf32>
    %25 = arith.minimumf %23, %24 : vector<256x25xf32>
    %26 = math.exp %25 : vector<256x25xf32>
    %27 = math.log1p %26 : vector<256x25xf32>
    %cst_16 = arith.constant 1.000000e+02 : f32
    %28 = vector.broadcast %cst_16 : f32 to vector<256x25xf32>
    %29 = arith.divf %27, %28 : vector<256x25xf32>
    %cst_17 = arith.constant 2.000000e+01 : f32
    %30 = vector.broadcast %cst_17 : f32 to vector<256x25xf32>
    %31 = arith.cmpf ogt, %23, %30 : vector<256x25xf32>
    %32 = arith.select %31, %21, %29 : vector<256x25xi1>, vector<256x25xf32>
    %c0_18 = arith.constant 0 : index
    %c0_19 = arith.constant 0 : index
    %33 = vector.load %arg6[%c0_18, %c0_19] : memref<25x64xf32, #tpu.memory_space<vmem>>, vector<25x64xf32>
    %c0_20 = arith.constant 0 : index
    %c0_21 = arith.constant 0 : index
    %34 = vector.load %arg7[%c0_20, %c0_21] : memref<39x64xf32, #tpu.memory_space<vmem>>, vector<39x64xf32>
    %c0_22 = arith.constant 0 : index
    %c0_23 = arith.constant 0 : index
    %35 = vector.load %arg8[%c0_22, %c0_23] : memref<1x64xf32, #tpu.memory_space<vmem>>, vector<1x64xf32>
    %cst_24 = arith.constant dense<0.000000e+00> : vector<256x64xf32>
    %36 = tpu.matmul %32, %33, %cst_24 {dimension_numbers = #tpu.dot_dimension_numbers<[1], [0], [0], [1], [0, 0, 1, 1], [], []>} : vector<256x25xf32>, vector<25x64xf32>, vector<256x64xf32> -> vector<256x64xf32>
    %cst_25 = arith.constant dense<0.000000e+00> : vector<256x64xf32>
    %37 = tpu.matmul %0, %34, %cst_25 {dimension_numbers = #tpu.dot_dimension_numbers<[1], [0], [0], [1], [0, 0, 1, 1], [], []>} : vector<256x39xf32>, vector<39x64xf32>, vector<256x64xf32> -> vector<256x64xf32>
    %38 = arith.addf %36, %37 : vector<256x64xf32>
    %cst_26 = arith.constant 0.707106769 : f32
    %39 = vector.broadcast %cst_26 : f32 to vector<256x64xf32>
    %40 = arith.mulf %38, %39 : vector<256x64xf32>
    %41 = vector.broadcast %35 : vector<1x64xf32> to vector<256x64xf32>
    %42 = arith.addf %40, %41 : vector<256x64xf32>
    %cst_27 = arith.constant 1.000000e+02 : f32
    %43 = vector.broadcast %cst_27 : f32 to vector<256x64xf32>
    %44 = arith.mulf %43, %42 : vector<256x64xf32>
    %cst_28 = arith.constant 2.000000e+01 : f32
    %45 = vector.broadcast %cst_28 : f32 to vector<256x64xf32>
    %46 = arith.minimumf %44, %45 : vector<256x64xf32>
    %47 = math.exp %46 : vector<256x64xf32>
    %48 = math.log1p %47 : vector<256x64xf32>
    %cst_29 = arith.constant 1.000000e+02 : f32
    %49 = vector.broadcast %cst_29 : f32 to vector<256x64xf32>
    %50 = arith.divf %48, %49 : vector<256x64xf32>
    %cst_30 = arith.constant 2.000000e+01 : f32
    %51 = vector.broadcast %cst_30 : f32 to vector<256x64xf32>
    %52 = arith.cmpf ogt, %44, %51 : vector<256x64xf32>
    %53 = arith.select %52, %42, %50 : vector<256x64xi1>, vector<256x64xf32>
    %c0_31 = arith.constant 0 : index
    %c0_32 = arith.constant 0 : index
    %54 = vector.load %arg9[%c0_31, %c0_32] : memref<64x64xf32, #tpu.memory_space<vmem>>, vector<64x64xf32>
    %c0_33 = arith.constant 0 : index
    %c0_34 = arith.constant 0 : index
    %55 = vector.load %arg10[%c0_33, %c0_34] : memref<1x64xf32, #tpu.memory_space<vmem>>, vector<1x64xf32>
    %cst_35 = arith.constant dense<0.000000e+00> : vector<256x64xf32>
    %56 = tpu.matmul %53, %54, %cst_35 {dimension_numbers = #tpu.dot_dimension_numbers<[1], [0], [0], [1], [0, 0, 1, 1], [], []>} : vector<256x64xf32>, vector<64x64xf32>, vector<256x64xf32> -> vector<256x64xf32>
    %57 = vector.broadcast %55 : vector<1x64xf32> to vector<256x64xf32>
    %58 = arith.addf %56, %57 : vector<256x64xf32>
    %cst_36 = arith.constant 1.000000e+02 : f32
    %59 = vector.broadcast %cst_36 : f32 to vector<256x64xf32>
    %60 = arith.mulf %59, %58 : vector<256x64xf32>
    %cst_37 = arith.constant 2.000000e+01 : f32
    %61 = vector.broadcast %cst_37 : f32 to vector<256x64xf32>
    %62 = arith.minimumf %60, %61 : vector<256x64xf32>
    %63 = math.exp %62 : vector<256x64xf32>
    %64 = math.log1p %63 : vector<256x64xf32>
    %cst_38 = arith.constant 1.000000e+02 : f32
    %65 = vector.broadcast %cst_38 : f32 to vector<256x64xf32>
    %66 = arith.divf %64, %65 : vector<256x64xf32>
    %cst_39 = arith.constant 2.000000e+01 : f32
    %67 = vector.broadcast %cst_39 : f32 to vector<256x64xf32>
    %68 = arith.cmpf ogt, %60, %67 : vector<256x64xf32>
    %69 = arith.select %68, %58, %66 : vector<256x64xi1>, vector<256x64xf32>
    %c0_40 = arith.constant 0 : index
    %c0_41 = arith.constant 0 : index
    %70 = vector.load %arg11[%c0_40, %c0_41] : memref<64x128xf32, #tpu.memory_space<vmem>>, vector<64x128xf32>
    %c0_42 = arith.constant 0 : index
    %c0_43 = arith.constant 0 : index
    %71 = vector.load %arg12[%c0_42, %c0_43] : memref<1x128xf32, #tpu.memory_space<vmem>>, vector<1x128xf32>
    %cst_44 = arith.constant dense<0.000000e+00> : vector<256x128xf32>
    %72 = tpu.matmul %69, %70, %cst_44 {dimension_numbers = #tpu.dot_dimension_numbers<[1], [0], [0], [1], [0, 0, 1, 1], [], []>} : vector<256x64xf32>, vector<64x128xf32>, vector<256x128xf32> -> vector<256x128xf32>
    %73 = vector.broadcast %71 : vector<1x128xf32> to vector<256x128xf32>
    %74 = arith.addf %72, %73 : vector<256x128xf32>
    %75 = tpu.iota {dimensions = array<i32: 1>} : vector<256x128xi32>
    %c0_i32 = arith.constant 0 : i32
    %76 = vector.broadcast %c0_i32 : i32 to vector<256x128xi32>
    %77 = arith.cmpi eq, %75, %76 : vector<256x128xi32>
    %78 = math.absf %74 : vector<256x128xf32>
    %cst_45 = arith.constant 0.666666686 : f32
    %79 = vector.broadcast %cst_45 : f32 to vector<256x128xf32>
    %80 = arith.mulf %78, %79 : vector<256x128xf32>
    %81 = arith.select %77, %80, %74 : vector<256x128xi1>, vector<256x128xf32>
    %c0_46 = arith.constant 0 : index
    %c0_47 = arith.constant 0 : index
    %82 = vector.load %arg13[%c0_46, %c0_47] : memref<256x128xf32, #tpu.memory_space<vmem>>, vector<256x128xf32>
    tpu.vector_store %arg13[%c0_46, %c0_47], %81 {strides = array<i32>} : memref<256x128xf32, #tpu.memory_space<vmem>>, vector<256x128xf32>,
    return
  }
  func.func @transform_0(%arg0: i32) -> (i32, i32) {
    %c0_i32 = arith.constant 0 : i32
    %c0_i32_0 = arith.constant 0 : i32
    return %arg0, %c0_i32 : i32, i32
  }
  func.func @transform_1(%arg0: i32) -> (i32, i32) {
    %c0_i32 = arith.constant 0 : i32
    %c0_i32_0 = arith.constant 0 : i32
    %c0_i32_1 = arith.constant 0 : i32
    return %c0_i32, %c0_i32_0 : i32, i32
  }
  func.func @transform_2(%arg0: i32) -> (i32, i32) {
    %c0_i32 = arith.constant 0 : i32
    %c0_i32_0 = arith.constant 0 : i32
    %c0_i32_1 = arith.constant 0 : i32
    return %c0_i32, %c0_i32_0 : i32, i32
  }
  func.func @transform_3(%arg0: i32) -> (i32, i32) {
    %c0_i32 = arith.constant 0 : i32
    %c0_i32_0 = arith.constant 0 : i32
    %c0_i32_1 = arith.constant 0 : i32
    return %c0_i32, %c0_i32_0 : i32, i32
  }
  func.func @transform_4(%arg0: i32) -> (i32, i32) {
    %c0_i32 = arith.constant 0 : i32
    %c0_i32_0 = arith.constant 0 : i32
    %c0_i32_1 = arith.constant 0 : i32
    return %c0_i32, %c0_i32_0 : i32, i32
  }
  func.func @transform_5(%arg0: i32) -> (i32, i32) {
    %c0_i32 = arith.constant 0 : i32
    %c0_i32_0 = arith.constant 0 : i32
    %c0_i32_1 = arith.constant 0 : i32
    return %c0_i32, %c0_i32_0 : i32, i32
  }
  func.func @transform_6(%arg0: i32) -> (i32, i32) {
    %c0_i32 = arith.constant 0 : i32
    %c0_i32_0 = arith.constant 0 : i32
    %c0_i32_1 = arith.constant 0 : i32
    return %c0_i32, %c0_i32_0 : i32, i32
  }
  func.func @transform_7(%arg0: i32) -> (i32, i32) {
    %c0_i32 = arith.constant 0 : i32
    %c0_i32_0 = arith.constant 0 : i32
    %c0_i32_1 = arith.constant 0 : i32
    return %c0_i32, %c0_i32_0 : i32, i32
  }
  func.func @transform_8(%arg0: i32) -> (i32, i32) {
    %c0_i32 = arith.constant 0 : i32
    %c0_i32_0 = arith.constant 0 : i32
    %c0_i32_1 = arith.constant 0 : i32
    return %c0_i32, %c0_i32_0 : i32, i32
  }
  func.func @transform_9(%arg0: i32) -> (i32, i32) {
    %c0_i32 = arith.constant 0 : i32
    %c0_i32_0 = arith.constant 0 : i32
    %c0_i32_1 = arith.constant 0 : i32
    return %c0_i32, %c0_i32_0 : i32, i32
  }
  func.func @transform_10(%arg0: i32) -> (i32, i32) {
    %c0_i32 = arith.constant 0 : i32
    %c0_i32_0 = arith.constant 0 : i32
    %c0_i32_1 = arith.constant 0 : i32
    return %c0_i32, %c0_i32_0 : i32, i32
  }
  func.func @transform_11(%arg0: i32) -> (i32, i32) {
    %c0_i32 = arith.constant 0 : i32
    %c0_i32_0 = arith.constant 0 : i32
    %c0_i32_1 = arith.constant 0 : i32
    return %c0_i32, %c0_i32_0 : i32, i32
  }
  func.func @transform_12(%arg0: i32) -> (i32, i32) {
    %c0_i32 = arith.constant 0 : i32
    %c0_i32_0 = arith.constant 0 : i32
    return %arg0, %c0_i32 : i32, i32
  }
}

</mosaic_0001>

<bundles_post_ra>
// kernel: tpu_custom_call.1
= control target key start
LH: loop header
LB: loop body
LE: loop exit
PB: predicated region body
PF: predicated region fallthrough
CT: control target
= control target key end

     0   :  { %vm86_vm0 = vcmask 318464   ;;  %vm183_vm1 = vcmask 1046528   ;;  %s8698_s0 = inlined_call_operand.vmem [shape: f32[256,39], index: 0, kind: input, shape index: {}]   ;;  %s8699_s1 = inlined_call_operand.vmem [shape: f32[39,64], index: 1, kind: input, shape index: {}]   ;;  %s8700_s2 = inlined_call_operand.vmem [shape: f32[1,64], index: 2, kind: input, shape index: {}]   ;;  %s8701_s3 = inlined_call_operand.vmem [shape: f32[64,25], index: 3, kind: input, shape index: {}]   ;;  %s8702_s4 = inlined_call_operand.vmem [shape: f32[1,25], index: 4, kind: input, shape index: {}]   ;;  %s8703_s5 = inlined_call_operand.vmem [shape: f32[25,64], index: 5, kind: input, shape index: {}]   ;;  %s8704_s6 = inlined_call_operand.vmem [shape: f32[39,64], index: 6, kind: input, shape index: {}]   ;;  %s8705_s7 = inlined_call_operand.vmem [shape: f32[1,64], index: 7, kind: input, shape index: {}]   ;;  %s8706_s8 = inlined_call_operand.vmem [shape: f32[64,64], index: 8, kind: input, shape index: {}]   ;;  %s8707_s9 = inlined_call_operand.vmem [shape: f32[1,64], index: 9, kind: input, shape index: {}]   ;;  %s8708_s10 = inlined_call_operand.vmem [shape: f32[64,128], index: 10, kind: input, shape index: {}]   ;;  %s8709_s11 = inlined_call_operand.vmem [shape: f32[1,128], index: 11, kind: input, shape index: {}]   ;;  %s8710_s12 = inlined_call_operand.hbm [shape: f32[256,128], index: 12, kind: output, shape index: {}]  }
   0x1   :  { %v74_v0 = vld [vmem:[%s8699_s1] sm:$0xff]  ;;  %v75_v1 = vld [vmem:[%s8699_s1 + $0x8] sm:$0xff]  ;;  %v76_v2 = vld [vmem:[%s8699_s1 + $0x10] sm:$0xff] }
   0x2   :  { %v5045_v3 = vpack.c.bf16 %v75_v1, %v74_v0  ;;  %v77_v4 = vld [vmem:[%s8699_s1 + $0x18] sm:$0xff]  ;;  %v5775_v5 = vld [vmem:[%s8698_s0] sm:$0xff]  ;;  %v5786_v8 = vld [vmem:[%s8698_s0 + $0x8] sm:$0xff] }
   0x3   :  { %v5049_v6 = vpack.c.bf16 %v77_v4, %v76_v2  ;;  %4691 = vmatprep.mubr.msk.f32.mxu0 %vm86_vm0, %v5775_v5  ;;  %v78_v7 = vld [vmem:[%s8699_s1 + $0x20] sm:$0x7f]  ;;  %v5791_v9 = vld [vmem:[%s8698_s0 + $0x10] sm:$0xff] }
   0x4   :  { %5046 = vmatprep.subr.bf16.mxu0 %v5045_v3 }
   0x5   :  { %5048 = vmatpush3.bf16.msra.mxu0 %v5045_v3 }
   0x6   :  { %5050 = vmatprep.subr.bf16.mxu0 %v5049_v6 }
   0x9   :  { %5052 = vmatpush3.bf16.msra.mxu0 %v5049_v6 }
   0xa   :  { %4689 = vmatprep.subr.msk.mxu0 %vm183_vm1, %v78_v7 }
   0xd   :  { %4690 = vmatpush3.msk.msra.mxu0 %vm183_vm1, %v78_v7 }
   0xe   :  { %17 = vsyncpa [#allocation3], 0  ;;  %4692 = vmatmul.mubr.msk.f32.vlgmr.msra.gmra.mrb[0].mxu0 %vm86_vm0, %v5786_v8  ;;  %v5801_v10 = vld [vmem:[%s8698_s0 + $0x18] sm:$0xff]  ;;  %v5806_v11 = vld [vmem:[%s8698_s0 + $0x20] sm:$0xff]  ;;  %vm940_vm2 = vcmask 523264  }
   0xf   :  { %4694 = vmatprep.mubr.msk.f32.mxu0 %vm86_vm0, %v5791_v9  ;;  %v5815_v12 = vld [vmem:[%s8698_s0 + $0x28] sm:$0xff]  ;;  %v5820_v13 = vld [vmem:[%s8698_s0 + $0x30] sm:$0xff]  ;;  %v5829_v14 = vld [vmem:[%s8698_s0 + $0x38] sm:$0xff] }
  0x10   :  { %v5834_v15 = vld [vmem:[%s8698_s0 + $0x40] sm:$0xff]  ;;  %v5843_v16 = vld [vmem:[%s8698_s0 + $0x48] sm:$0xff]  ;;  %v5848_v17 = vld [vmem:[%s8698_s0 + $0x50] sm:$0xff] }
  0x11   :  { %v5857_v18 = vld [vmem:[%s8698_s0 + $0x58] sm:$0xff]  ;;  %v5862_v19 = vld [vmem:[%s8698_s0 + $0x60] sm:$0xff]  ;;  %v5871_v20 = vld [vmem:[%s8698_s0 + $0x68] sm:$0xff] }
  0x12   :  { %4695 = vmatmul.mubr.msk.f32.gmra.mrb[2].mxu0 %vm86_vm0, %v5801_v10  ;;  %v5876_v21 = vld [vmem:[%s8698_s0 + $0x70] sm:$0xff]  ;;  %v5885_v22 = vld [vmem:[%s8698_s0 + $0x78] sm:$0xff]  ;;  %v5890_v23 = vld [vmem:[%s8698_s0 + $0x80] sm:$0xff] }
  0x13   :  { %4697 = vmatprep.mubr.msk.f32.mxu0 %vm86_vm0, %v5806_v11  ;;  %v5899_v24 = vld [vmem:[%s8698_s0 + $0x88] sm:$0xff]  ;;  %v5904_v25 = vld [vmem:[%s8698_s0 + $0x90] sm:$0xff]  ;;  %v5913_v26 = vld [vmem:[%s8698_s0 + $0x98] sm:$0xff] }
  0x14   :  { %8771 = vst [vmem:[#allocation5_spill] sm:$0xff] %v5913_v26  ;;  %v5918_v27 = vld [vmem:[%s8698_s0 + $0xa0] sm:$0xff]  ;;  %v5927_v28 = vld [vmem:[%s8698_s0 + $0xa8] sm:$0xff]  ;;  %v5932_v29 = vld [vmem:[%s8698_s0 + $0xb0] sm:$0xff] }
  0x15   :  { %8772 = vst [vmem:[#allocation6_spill] sm:$0xff] %v5918_v27  ;;  %8773 = vst [vmem:[#allocation7_spill] sm:$0xff] %v5927_v28  ;;  %v5941_v30 = vld [vmem:[%s8698_s0 + $0xb8] sm:$0xff]  ;;  %v5946_v31 = vld [vmem:[%s8698_s0 + $0xc0] sm:$0xff] }
  0x16   :  { %4698 = vmatmul.mubr.msk.f32.gmra.mrb[4].mxu0 %vm86_vm0, %v5815_v12  ;;  %8774 = vst [vmem:[#allocation8_spill] sm:$0xff] %v5932_v29  ;;  %8775 = vst [vmem:[#allocation9_spill] sm:$0xff] %v5941_v30  ;;  %v5955_v32 = vld [vmem:[%s8698_s0 + $0xc8] sm:$0xff]  ;;  %v5960_v33 = vld [vmem:[%s8698_s0 + $0xd0] sm:$0xff] }
  0x17   :  { %4700 = vmatprep.mubr.msk.f32.mxu0 %vm86_vm0, %v5820_v13  ;;  %8776 = vst [vmem:[#allocation10_spill] sm:$0xff] %v5946_v31  ;;  %8777 = vst [vmem:[#allocation11_spill] sm:$0xff] %v5955_v32  ;;  %v5969_v34 = vld [vmem:[%s8698_s0 + $0xd8] sm:$0xff]  ;;  %v5974_v35 = vld [vmem:[%s8698_s0 + $0xe0] sm:$0xff] }
  0x18   :  { %8778 = vst [vmem:[#allocation12_spill] sm:$0xff] %v5960_v33  ;;  %8779 = vst [vmem:[#allocation13_spill] sm:$0xff] %v5969_v34  ;;  %v5983_v36 = vld [vmem:[%s8698_s0 + $0xe8] sm:$0xff]  ;;  %v5988_v37 = vld [vmem:[%s8698_s0 + $0xf0] sm:$0xff] }
  0x19   :  { %8780 = vst [vmem:[#allocation14_spill] sm:$0xff] %v5974_v35  ;;  %8781 = vst [vmem:[#allocation15_spill] sm:$0xff] %v5983_v36  ;;  %v5997_v38 = vld [vmem:[%s8698_s0 + $0xf8] sm:$0xff]  ;;  %v925_v39 = vld [vmem:[%s8701_s3] sm:$0xff] }
  0x1a   :  { %4701 = vmatmul.mubr.msk.f32.gmra.mrb[6].mxu0 %vm86_vm0, %v5829_v14  ;;  %8782 = vst [vmem:[#allocation16_spill] sm:$0xff] %v5988_v37  ;;  %8783 = vst [vmem:[#allocation17_spill] sm:$0xff] %v5997_v38  ;;  %v926_v40 = vld [vmem:[%s8701_s3 + $0x8] sm:$0xff]  ;;  %v927_v42 = vld [vmem:[%s8701_s3 + $0x10] sm:$0xff] }
  0x1b   :  { %4703 = vmatprep.mubr.msk.f32.mxu0 %vm86_vm0, %v5834_v15  ;;  %v5053_v41 = vpack.c.bf16 %v926_v40, %v925_v39  ;;  %v928_v43 = vld [vmem:[%s8701_s3 + $0x18] sm:$0xff]  ;;  %v929_v45 = vld [vmem:[%s8701_s3 + $0x20] sm:$0xff]  ;;  %v930_v46 = vld [vmem:[%s8701_s3 + $0x28] sm:$0xff] }
  0x1c   :  { %v5057_v44 = vpack.c.bf16 %v928_v43, %v927_v42  ;;  %v5061_v47 = vpack.c.bf16 %v930_v46, %v929_v45  ;;  %v931_v48 = vld [vmem:[%s8701_s3 + $0x30] sm:$0xff]  ;;  %v932_v49 = vld [vmem:[%s8701_s3 + $0x38] sm:$0xff]  ;;  %v6030_v51 = vld [vmem:[%s8700_s2] ss:$0 sm:$0xff] }
  0x1d   :  { %5054 = vmatprep.subr.bf16.mxu1 %v5053_v41  ;;  %v5065_v50 = vpack.c.bf16 %v932_v49, %v931_v48 }
  0x1e   :  { %4704 = vmatmul.mubr.msk.f32.gmra.mrb[8].mxu0 %vm86_vm0, %v5843_v16  ;;  %5056 = vmatpush3.bf16.msra.mxu1 %v5053_v41 }
  0x1f   :  { %4706 = vmatprep.mubr.msk.f32.mxu0 %vm86_vm0, %v5848_v17  ;;  %5058 = vmatprep.subr.bf16.mxu1 %v5057_v44 }
  0x22   :  { %4707 = vmatmul.mubr.msk.f32.gmra.mrb[10].mxu0 %vm86_vm0, %v5857_v18  ;;  %5060 = vmatpush3.bf16.msra.mxu1 %v5057_v44 }
  0x23   :  { %4709 = vmatprep.mubr.msk.f32.mxu0 %vm86_vm0, %v5862_v19  ;;  %5062 = vmatprep.subr.bf16.mxu1 %v5061_v47 }
  0x26   :  { %4710 = vmatmul.mubr.msk.f32.gmra.mrb[12].mxu0 %vm86_vm0, %v5871_v20  ;;  %5064 = vmatpush3.bf16.msra.mxu1 %v5061_v47 }
  0x27   :  { %4712 = vmatprep.mubr.msk.f32.mxu0 %vm86_vm0, %v5876_v21  ;;  %5066 = vmatprep.subr.bf16.mxu1 %v5065_v50 }
  0x2a   :  { %4713 = vmatmul.mubr.msk.f32.gmra.mrb[14].mxu0 %vm86_vm0, %v5885_v22  ;;  %5068 = vmatpush3.bf16.msra.mxu1 %v5065_v50 }
  0x2b   :  { %4715 = vmatprep.mubr.msk.f32.mxu0 %vm86_vm0, %v5890_v23 }
  0x2e   :  { %4716 = vmatmul.mubr.msk.f32.gmra.mrb[16].mxu0 %vm86_vm0, %v5899_v24 }
  0x2f   :  { %4718 = vmatprep.mubr.msk.f32.mxu0 %vm86_vm0, %v5904_v25 }
  0x32   :  { %4719 = vmatmul.mubr.msk.f32.gmra.mrb[18].mxu0 %vm86_vm0, %v5913_v26 }
  0x33   :  { %4721 = vmatprep.mubr.msk.f32.mxu0 %vm86_vm0, %v5918_v27 }
  0x36   :  { %4722 = vmatmul.mubr.msk.f32.gmra.mrb[20].mxu0 %vm86_vm0, %v5927_v28 }
  0x37   :  { %4724 = vmatprep.mubr.msk.f32.mxu0 %vm86_vm0, %v5932_v29 }
  0x3a   :  { %4725 = vmatmul.mubr.msk.f32.gmra.mrb[22].mxu0 %vm86_vm0, %v5941_v30 }
  0x3b   :  { %4727 = vmatprep.mubr.msk.f32.mxu0 %vm86_vm0, %v5946_v31  ;;  %v1780_v31 = vld [vmem:[%s8704_s6 + $0x10] sm:$0xff] }
  0x3e   :  { %4728 = vmatmul.mubr.msk.f32.gmra.mrb[24].mxu0 %vm86_vm0, %v5955_v32 }
  0x3f   :  { %4730 = vmatprep.mubr.msk.f32.mxu0 %vm86_vm0, %v5960_v33 }
  0x42   :  { %4731 = vmatmul.mubr.msk.f32.gmra.mrb[26].mxu0 %vm86_vm0, %v5969_v34 }
  0x43   :  { %4733 = vmatprep.mubr.msk.f32.mxu0 %vm86_vm0, %v5974_v35 }
  0x46   :  { %4734 = vmatmul.mubr.msk.f32.gmra.mrb[28].mxu0 %vm86_vm0, %v5983_v36 }
  0x47   :  { %4736 = vmatprep.mubr.msk.f32.mxu0 %vm86_vm0, %v5988_v37 }
  0x4a   :  { %4737 = vmatmul.mubr.msk.f32.gmra.mrb[30].mxu0 %vm86_vm0, %v5997_v38 }
  0x4b   :  { %4813 = vmatprep.mubr.msk.f32.mxu0 %vm86_vm0, %v5775_v5 }
  0xe1   :  { %v4693_v52 = vpop.f32.mrb[0].mxu0 }
  0xe2   :  { %v6033_v53 = vadd.f32 %v4693_v52, %v6030_v51  ;;  %v253_v54 = vpop.f32.mrb[1].mxu0 }
  0xe3   :  { %v6036_v55 = vadd.f32 %v6030_v51, %v253_v54 }
  0xe4   :  { %v6039_v56 = vmul.f32 100.0, %v6033_v53 }
  0xe5   :  { %v6042_v57 = vmul.f32 100.0, %v6036_v55  ;;  %v4696_v58 = vpop.f32.mrb[2].mxu0 }
  0xe6   :  { %v445_v59 = vmin.f32 %v6039_v56, 20.0  ;;  %v263_v60 = vpop.f32.mrb[3].mxu0  ;;  %v6047_v1 = vadd.f32 %v4696_v58, %v6030_v51  ;;  %vm862_vm4 = vcmp.gt.f32.partialorder %v6039_v56, 20.0 }
  0xe7   :  { %v444_v61 = vmin.f32 %v6042_v57, 20.0  ;;  %v6050_v3 = vadd.f32 %v6030_v51, %v263_v60  ;;  %vm861_vm3 = vcmp.gt.f32.partialorder %v6042_v57, 20.0 }
  0xe8   :  { %v478_v62 = vmul.f32 1.442695, %v445_v59  ;;  %v6056_v6 = vmul.f32 100.0, %v6047_v1 }
  0xe9   :  { %v476_v63 = vmul.f32 1.442695, %v444_v61  ;;  %v4699_v0 = vpop.f32.mrb[4].mxu0  ;;  %v6062_v40 = vmul.f32 100.0, %v6050_v3 }
  0xea   :  { %5155 = vpow2.f32 %v478_v62  ;;  %v273_v2 = vpop.f32.mrb[5].mxu0  ;;  %v6053_v4 = vadd.f32 %v4699_v0, %v6030_v51  ;;  %v447_v44 = vmin.f32 %v6056_v6, 20.0  ;;  %vm864_vm8 = vcmp.gt.f32.partialorder %v6056_v6, 20.0 }
  0xeb   :  { %5157 = vpow2.f32 %v476_v63  ;;  %v6059_v7 = vadd.f32 %v6030_v51, %v273_v2  ;;  %v446_v48 = vmin.f32 %v6062_v40, 20.0  ;;  %vm863_vm7 = vcmp.gt.f32.partialorder %v6062_v40, 20.0 }
  0xec   :  { %v6068_v42 = vmul.f32 100.0, %v6053_v4  ;;  %v482_v62 = vmul.f32 1.442695, %v447_v44 }
  0xed   :  { %v4702_v5 = vpop.f32.mrb[6].mxu0  ;;  %v6072_v45 = vmul.f32 100.0, %v6059_v7 }
  0xee   :  { %v283_v39 = vpop.f32.mrb[7].mxu0  ;;  %v6065_v41 = vadd.f32 %v4702_v5, %v6030_v51  ;;  %v449_v59 = vmin.f32 %v6068_v42, 20.0  ;;  %v480_v5 = vmul.f32 1.442695, %v446_v48  ;;  %vm866_vm12 = vcmp.gt.f32.partialorder %v6068_v42, 20.0 }
  0xef   :  { %v6075_v46 = vadd.f32 %v6030_v51, %v283_v39  ;;  %v448_v63 = vmin.f32 %v6072_v45, 20.0  ;;  %vm865_vm11 = vcmp.gt.f32.partialorder %v6072_v45, 20.0 }
  0xf0   :  { %8784 = vst [vmem:[#allocation18_spill] sm:$0xff] %v6065_v41  ;;  %v6079_v49 = vmul.f32 100.0, %v6065_v41  ;;  %v486_v36 = vmul.f32 1.442695, %v449_v59  ;;  %v1778_v59 = vld [vmem:[%s8704_s6] sm:$0xff] }
  0xf1   :  { %v4705_v43 = vpop.f32.mrb[8].mxu0  ;;  %8785 = vst [vmem:[#allocation19_spill] sm:$0xff] %v6075_v46  ;;  %v6095_v0 = vmul.f32 100.0, %v6075_v46  ;;  %v484_v48 = vmul.f32 1.442695, %v448_v63 }
  0xf2   :  { %v293_v47 = vpop.f32.mrb[9].mxu0  ;;  %v6082_v50 = vadd.f32 %v4705_v43, %v6030_v51  ;;  %v451_v39 = vmin.f32 %v6079_v49, 20.0 }
  0xf3   :  { %v6087_v54 = vadd.f32 %v6030_v51, %v293_v47  ;;  %v450_v34 = vmin.f32 %v6095_v0, 20.0  ;;  %vm867_vm14 = vcmp.gt.f32.partialorder %v6095_v0, 20.0 }
  0xf4   :  { %8786 = vst [vmem:[#allocation20_spill] sm:$0xff] %v6082_v50  ;;  %v6084_v52 = vpop.eup %5155  ;;  %v6099_v43 = vmul.f32 100.0, %v6082_v50  ;;  %v490_v33 = vmul.f32 1.442695, %v451_v39 }
  0xf5   :  { %8787 = vst [vmem:[#allocation21_spill] sm:$0xff] %v6087_v54  ;;  %v6089_v58 = vpop.eup %5157  ;;  %v4708_v60 = vpop.f32.mrb[10].mxu0  ;;  %v549_v61 = vadd.f32 1.0, %v6084_v52  ;;  %v6102_v47 = vmul.f32 100.0, %v6087_v54 }
  0xf6   :  { %v303_v2 = vpop.f32.mrb[11].mxu0  ;;  %8788 = vst [vmem:[#allocation22_spill] sm:$0xff] %v6099_v43  ;;  %v6105_v38 = vadd.f32 %v4708_v60, %v6030_v51  ;;  %v540_v37 = vadd.f32 1.0, %v6089_v58  ;;  %v453_v32 = vmin.f32 %v6099_v43, 20.0  ;;  %v546_v30 = vand.u32 2147483647, %v6089_v58 }
  0xf7   :  { %8789 = vst [vmem:[#allocation23_spill] sm:$0xff] %v6102_v47  ;;  %v6108_v44 = vadd.f32 %v6030_v51, %v303_v2  ;;  %5159 = vlog2.f32 %v549_v61  ;;  %v452_v60 = vmin.f32 %v6102_v47, 20.0  ;;  %v1779_v61 = vld [vmem:[%s8704_s6 + $0x8] sm:$0xff] }
  0xf8   :  { %8790 = vst [vmem:[#allocation24_spill] sm:$0xff] %v6105_v38  ;;  %5161 = vpow2.f32 %v482_v62  ;;  %v6115_v54 = vmul.f32 100.0, %v6105_v38  ;;  %v5069_v39 = vpack.c.bf16 %v1779_v61, %v1778_v59  ;;  %v488_v38 = vmul.f32 1.442695, %v450_v34 }
  0xf9   :  { %8791 = vst [vmem:[#allocation25_spill] sm:$0xff] %v6108_v44  ;;  %v4711_v35 = vpop.f32.mrb[12].mxu0  ;;  %5163 = vpow2.f32 %v480_v5  ;;  %v6118_v2 = vmul.f32 100.0, %v6108_v44  ;;  %v552_v44 = vmul.f32 -0.5, %v6084_v52  ;;  %v543_v59 = vmul.f32 -0.5, %v6089_v58 }
  0xfa   :  { %v313_v50 = vpop.f32.mrb[13].mxu0  ;;  %8792 = vst [vmem:[#allocation26_spill] sm:$0xff] %v6115_v54  ;;  %5165 = vlog2.f32 %v540_v37  ;;  %v6127_v62 = vadd.f32 %v4711_v35, %v6030_v51  ;;  %v494_v35 = vmul.f32 1.442695, %v453_v32  ;;  %5070 = vmatprep.subr.bf16.mxu0 %v5069_v39  ;;  %v492_v34 = vmul.f32 1.442695, %v452_v60 }
  0xfb   :  { %8793 = vst [vmem:[#allocation27_spill] sm:$0xff] %v6118_v2  ;;  %5167 = vpow2.f32 %v486_v36  ;;  %v6130_v63 = vadd.f32 %v6030_v51, %v313_v50  ;;  %v1781_v36 = vld [vmem:[%s8704_s6 + $0x18] sm:$0xff]  ;;  %v454_v61 = vmin.f32 %v6118_v2, 20.0  ;;  %5072 = vmatpush3.bf16.msra.mxu0 %v5069_v39  ;;  %v553_v2 = vadd.f32 1.0, %v552_v44  ;;  %v1782_v39 = vld [vmem:[%s8704_s6 + $0x20] sm:$0x7f] }
  0xfc   :  { %8794 = vst [vmem:[#allocation28_spill] sm:$0xff] %v6127_v62  ;;  %5169 = vpow2.f32 %v484_v48  ;;  %v455_v48 = vmin.f32 %v6115_v54, 20.0  ;;  %v6147_v41 = vmul.f32 100.0, %v6127_v62  ;;  %v5073_v43 = vpack.c.bf16 %v1781_v36, %v1780_v31  ;;  %v1774_v62 = vld [vmem:[%s8703_s5] sm:$0xff] }
  0xfd   :  { %8795 = vst [vmem:[#allocation29_spill] sm:$0xff] %v6130_v63  ;;  %v4714_v5 = vpop.f32.mrb[14].mxu0  ;;  %5171 = vpow2.f32 %v490_v33  ;;  %v6150_v33 = vmul.f32 100.0, %v6130_v63  ;;  %v555_v44 = vand.u32 2147483647, %v6084_v52  ;;  %v544_v29 = vadd.f32 1.0, %v543_v59 }
  0xfe   :  { %v323_v37 = vpop.f32.mrb[15].mxu0  ;;  %v6140_v50 = vadd.f32 %v4714_v5, %v6030_v51  ;;  %8797 = vst [vmem:[#allocation31_spill] sm:$0xff] %v6147_v41  ;;  %5173 = vpow2.f32 %v488_v38  ;;  %5074 = vmatprep.subr.bf16.mxu0 %v5073_v43  ;;  %vm6208_vm6 = vcmp.lt.f32.partialorder %v546_v30, 0.0004427343 }
  0xff   :  { %8798 = vst [vmem:[#allocation32_spill] sm:$0xff] %v6150_v33  ;;  %v6153_v32 = vadd.f32 %v6030_v51, %v323_v37  ;;  %v1775_v37 = vld [vmem:[%s8703_s5 + $0x8] sm:$0xff]  ;;  %5175 = vpow2.f32 %v494_v35  ;;  %5076 = vmatpush3.bf16.msra.mxu0 %v5073_v43  ;;  %v496_v35 = vmul.f32 1.442695, %v454_v61  ;;  %v554_v61 = vmul.f32 %v6084_v52, %v553_v2 }
 0x100   :  { %8796 = vst [vmem:[#allocation30_spill] sm:$0xff] %v6140_v50  ;;  %v6168_v31 = vmul.f32 100.0, %v6140_v50  ;;  %5177 = vpow2.f32 %v492_v34  ;;  %v457_v50 = vmin.f32 %v6147_v41, 20.0  ;;  %4811 = vmatprep.subr.msk.mxu0 %vm183_vm1, %v1782_v39  ;;  %v5077_v46 = vpack.c.bf16 %v1775_v37, %v1774_v62 }
 0x101   :  { %8799 = vst [vmem:[#allocation33_spill] sm:$0xff] %v6153_v32  ;;  %v4717_v5 = vpop.f32.mrb[16].mxu0  ;;  %v5160_v63 = vpop.eup %5159  ;;  %v6180_v27 = vmul.f32 100.0, %v6153_v32  ;;  %vm6202_vm5 = vcmp.lt.f32.partialorder %v555_v44, 0.0004427343 }
 0x102   :  { %v6156_v60 = vadd.f32 %v4717_v5, %v6030_v51  ;;  %v333_v54 = vpop.f32.mrb[17].mxu0  ;;  %8801 = vst [vmem:[#allocation35_spill] sm:$0xff] %v6168_v31  ;;  %v6174_v36 = vpop.eup %5161  ;;  %v498_v5 = vmul.f32 1.442695, %v455_v48  ;;  %v551_v28 = vmul.f32 0.6931472, %v5160_v63 }
 0x103   :  { %v6171_v38 = vadd.f32 %v6030_v51, %v333_v54  ;;  %v6176_v47 = vpop.eup %5163  ;;  %v456_v63 = vmin.f32 %v6150_v33, 20.0  ;;  %v459_v41 = vmin.f32 %v6168_v31, 20.0  ;;  %4812 = vmatpush3.msk.msra.mxu0 %vm183_vm1, %v1782_v39  ;;  %v458_v44 = vmin.f32 %v6180_v27, 20.0 }
 0x104   :  { %8800 = vst [vmem:[#allocation34_spill] sm:$0xff] %v6156_v60  ;;  %v5166_v34 = vpop.eup %5165  ;;  %v6187_v43 = vmul.f32 100.0, %v6156_v60  ;;  %5179 = vpow2.f32 %v498_v5  ;;  %v557_v2 = vsel %vm6202_vm5, %v554_v61, %v551_v28  ;;  %v545_v5 = vmul.f32 %v6089_v58, %v544_v29  ;;  %5078 = vmatprep.subr.bf16.mxu0 %v5077_v46  ;;  %4814 = vmatmul.mubr.msk.f32.vlgmr.msra.gmra.mrb[32].mxu0 %vm86_vm0, %v5786_v8 }
 0x105   :  { %8802 = vst [vmem:[#allocation36_spill] sm:$0xff] %v6171_v38  ;;  %v4720_v54 = vpop.f32.mrb[18].mxu0  ;;  %v6193_v32 = vpop.eup %5167  ;;  %v6197_v62 = vmul.f32 100.0, %v6171_v38  ;;  %v500_v30 = vmul.f32 1.442695, %v456_v63  ;;  %5080 = vmatpush3.bf16.msra.mxu0 %v5077_v46  ;;  %4816 = vmatprep.mubr.msk.f32.mxu0 %vm86_vm0, %v5791_v9  ;;  %5181 = vpow2.f32 %v496_v35 }
 0x106   :  { %v6190_v59 = vadd.f32 %v4720_v54, %v6030_v51  ;;  %v343_v48 = vpop.f32.mrb[19].mxu0  ;;  %v6206_v60 = vpop.eup %5169  ;;  %v542_v54 = vmul.f32 0.6931472, %v5166_v34  ;;  %v461_v28 = vmin.f32 %v6187_v43, 20.0  ;;  %v506_v34 = vmul.f32 1.442695, %v459_v41 }
 0x107   :  { %v6200_v37 = vadd.f32 %v6030_v51, %v343_v48  ;;  %v6215_v38 = vpop.eup %5171  ;;  %v502_v48 = vmul.f32 1.442695, %v457_v50  ;;  %v460_v29 = vmin.f32 %v6197_v62, 20.0  ;;  %v830_v58 = vmul.f32 0.01, %v557_v2 }
 0x108   :  { %8803 = vst [vmem:[#allocation37_spill] sm:$0xff] %v6190_v59  ;;  %v6219_v31 = vmul.f32 100.0, %v6190_v59  ;;  %v548_v8 = vsel %vm6208_vm6, %v545_v5, %v542_v54  ;;  %v6236_v63 = vpop.eup %5173  ;;  %v504_v9 = vmul.f32 1.442695, %v458_v44  ;;  %v558_v54 = vadd.f32 1.0, %v6176_v47  ;;  %4817 = vmatmul.mubr.msk.f32.gmra.mrb[34].mxu0 %vm86_vm0, %v5801_v10 }
 0x109   :  { %8804 = vst [vmem:[#allocation38_spill] sm:$0xff] %v6200_v37  ;;  %v4723_v26 = vpop.f32.mrb[20].mxu0  ;;  %v6226_v33 = vmul.f32 100.0, %v6200_v37  ;;  %v6244_v46 = vpop.eup %5175  ;;  %5183 = vpow2.f32 %v502_v48  ;;  %v510_v52 = vmul.f32 1.442695, %v461_v28  ;;  %4819 = vmatprep.mubr.msk.f32.mxu0 %vm86_vm0, %v5806_v11  ;;  %v894_v10 = vsel %vm862_vm4, %v6033_v53, %v830_v58 }
 0x10a   :  { %v6229_v50 = vadd.f32 %v4723_v26, %v6030_v51  ;;  %v353_v39 = vpop.f32.mrb[21].mxu0  ;;  %v829_v26 = vmul.f32 0.01, %v548_v8  ;;  %v463_v41 = vmin.f32 %v6219_v31, 20.0  ;;  %v6250_v35 = vpop.eup %5177  ;;  %5185 = vpow2.f32 %v500_v30 }
 0x10b   :  { %v6242_v59 = vadd.f32 %v6030_v51, %v353_v39  ;;  %v462_v2 = vmin.f32 %v6226_v33, 20.0  ;;  %5187 = vpow2.f32 %v506_v34  ;;  %v508_v44 = vmul.f32 1.442695, %v460_v29 }
 0x10c   :  { %8809 = vst [vmem:[#allocation39_spill] sm:$0xff] %v6229_v50  ;;  %v6239_v61 = vmul.f32 100.0, %v6229_v50  ;;  %v893_v5 = vsel %vm861_vm3, %v6036_v55, %v829_v26  ;;  %5189 = vlog2.f32 %v558_v54  ;;  %v514_v11 = vmul.f32 1.442695, %v463_v41  ;;  %4820 = vmatmul.mubr.msk.f32.gmra.mrb[36].mxu0 %vm86_vm0, %v5815_v12 }
 0x10d   :  { %8810 = vst [vmem:[#allocation40_spill] sm:$0xff] %v6242_v59  ;;  %v4726_v37 = vpop.f32.mrb[22].mxu0  ;;  %4755 = vmatprep.mubr.msk.f32.mxu1 %vm940_vm2, %v893_v5  ;;  %v6264_v30 = vmul.f32 100.0, %v6242_v59  ;;  %5191 = vpow2.f32 %v504_v9  ;;  %v512_v53 = vmul.f32 1.442695, %v462_v2  ;;  %v561_v34 = vmul.f32 -0.5, %v6176_v47  ;;  %4822 = vmatprep.mubr.msk.f32.mxu0 %vm86_vm0, %v5820_v13 }
 0x10e   :  { %v363_v48 = vpop.f32.mrb[23].mxu0  ;;  %v465_v39 = vmin.f32 %v6239_v61, 20.0  ;;  %4756 = vmatmul.mubr.msk.f32.vlgmr.msra.gmra.mrb[0].mxu1 %vm940_vm2, %v894_v10  ;;  %v6268_v55 = vadd.f32 %v4726_v37, %v6030_v51  ;;  %v6275_v56 = vpop.eup %5179  ;;  %5193 = vpow2.f32 %v510_v52  ;;  %v567_v29 = vadd.f32 1.0, %v6174_v36 }
 0x10f   :  { %8811 = vst [vmem:[#allocation41_spill] sm:$0xff] %v6264_v30  ;;  %v6271_v57 = vadd.f32 %v6030_v51, %v363_v48  ;;  %5195 = vpow2.f32 %v508_v44  ;;  %v464_v58 = vmin.f32 %v6264_v30, 20.0  ;;  %v6293_v13 = vpop.eup %5181  ;;  %v562_v54 = vadd.f32 1.0, %v561_v34 }
 0x110   :  { %8812 = vst [vmem:[#allocation42_spill] sm:$0xff] %v6268_v55  ;;  %v518_v8 = vmul.f32 1.442695, %v465_v39  ;;  %v6283_v26 = vmul.f32 100.0, %v6268_v55  ;;  %5197 = vlog2.f32 %v567_v29  ;;  %4823 = vmatmul.mubr.msk.f32.gmra.mrb[38].mxu0 %vm86_vm0, %v5829_v14  ;;  %v570_v52 = vmul.f32 -0.5, %v6174_v36 }
 0x111   :  { %8813 = vst [vmem:[#allocation43_spill] sm:$0xff] %v6271_v57  ;;  %v4729_v28 = vpop.f32.mrb[24].mxu0  ;;  %5199 = vpow2.f32 %v514_v11  ;;  %v6286_v12 = vmul.f32 100.0, %v6271_v57  ;;  %v576_v2 = vadd.f32 1.0, %v6206_v60  ;;  %4825 = vmatprep.mubr.msk.f32.mxu0 %vm86_vm0, %v5834_v15  ;;  %v564_v48 = vand.u32 2147483647, %v6176_v47 }
 0x112   :  { %v373_v37 = vpop.f32.mrb[25].mxu0  ;;  %8814 = vst [vmem:[#allocation44_spill] sm:$0xff] %v6283_v26  ;;  %v6289_v9 = vadd.f32 %v4729_v28, %v6030_v51  ;;  %5201 = vpow2.f32 %v512_v53  ;;  %v516_v14 = vmul.f32 1.442695, %v464_v58  ;;  %v467_v10 = vmin.f32 %v6283_v26, 20.0 }
 0x113   :  { %8815 = vst [vmem:[#allocation45_spill] sm:$0xff] %v6286_v12  ;;  %v6299_v5 = vpop.eup %5183  ;;  %5203 = vpow2.f32 %v518_v8  ;;  %v585_v28 = vadd.f32 1.0, %v6193_v32  ;;  %v466_v15 = vmin.f32 %v6286_v12, 20.0  ;;  %v573_v34 = vand.u32 2147483647, %v6174_v36 }
 0x114   :  { %8816 = vst [vmem:[#allocation46_spill] sm:$0xff] %v6289_v9  ;;  %v6302_v39 = vpop.eup %5185  ;;  %v6306_v11 = vmul.f32 100.0, %v6289_v9  ;;  %5205 = vlog2.f32 %v576_v2  ;;  %4826 = vmatmul.mubr.msk.f32.gmra.mrb[40].mxu0 %vm86_vm0, %v5843_v16  ;;  %v563_v58 = vmul.f32 %v6176_v47, %v562_v54  ;;  %v571_v9 = vadd.f32 1.0, %v570_v52 }
 0x115   :  { %v4732_v41 = vpop.f32.mrb[26].mxu0  ;;  %v6309_v53 = vpop.eup %5187  ;;  %5207 = vlog2.f32 %v585_v28  ;;  %4828 = vmatprep.mubr.msk.f32.mxu0 %vm86_vm0, %v5848_v17  ;;  %vm6324_vm9 = vcmp.lt.f32.partialorder %v564_v48, 0.0004427343  ;;  %v579_v16 = vmul.f32 -0.5, %v6206_v60  ;;  %v6330_v47 = vadd.f32 %v6030_v51, %v373_v37 }
 0x116   :  { %v383_v44 = vpop.f32.mrb[27].mxu0  ;;  %8817 = vst [vmem:[#allocation47_spill] sm:$0xff] %v6306_v11  ;;  %v5190_v8 = vpop.eup %5189  ;;  %5209 = vpow2.f32 %v516_v14  ;;  %v522_v52 = vmul.f32 1.442695, %v467_v10  ;;  %v469_v17 = vmin.f32 %v6306_v11, 20.0  ;;  %v594_v28 = vadd.f32 1.0, %v6236_v63 }
 0x117   :  { %v6321_v57 = vpop.eup %5191  ;;  %v560_v2 = vmul.f32 0.6931472, %v5190_v8  ;;  %v520_v8 = vmul.f32 1.442695, %v466_v15  ;;  %vm6340_vm10 = vcmp.lt.f32.partialorder %v573_v34, 0.0004427343  ;;  %v572_v11 = vmul.f32 %v6174_v36, %v571_v9 }
 0x118   :  { %v6332_v54 = vpop.eup %5193  ;;  %v588_v37 = vmul.f32 -0.5, %v6193_v32  ;;  %4829 = vmatmul.mubr.msk.f32.gmra.mrb[42].mxu0 %vm86_vm0, %v5857_v18  ;;  %v582_v30 = vand.u32 2147483647, %v6206_v60  ;;  %5211 = vlog2.f32 %v594_v28  ;;  %v6361_v18 = vadd.f32 %v4732_v41, %v6030_v51 }
 0x119   :  { %v4735_v29 = vpop.f32.mrb[28].mxu0  ;;  %v6336_v26 = vpop.eup %5195  ;;  %v566_v48 = vsel %vm6324_vm9, %v563_v58, %v560_v2  ;;  %4831 = vmatprep.mubr.msk.f32.mxu0 %vm86_vm0, %v5862_v19  ;;  %v580_v58 = vadd.f32 1.0, %v579_v16  ;;  %v6358_v2 = vmul.f32 100.0, %v6330_v47  ;;  %5213 = vpow2.f32 %v522_v52 }
 0x11a   :  { %v6317_v55 = vpop.f32.mrb[29].mxu0  ;;  %v5198_v14 = vpop.eup %5197  ;;  %v831_v10 = vmul.f32 0.01, %v566_v48  ;;  %v526_v19 = vmul.f32 1.442695, %v469_v17  ;;  %v597_v9 = vmul.f32 -0.5, %v6236_v63  ;;  %5215 = vpow2.f32 %v520_v8 }
 0x11b   :  { %v6355_v15 = vpop.eup %5199  ;;  %v569_v34 = vmul.f32 0.6931472, %v5198_v14  ;;  %v589_v16 = vadd.f32 1.0, %v588_v37  ;;  %v6377_v14 = vadd.f32 %v6030_v51, %v383_v44  ;;  %v603_v52 = vadd.f32 1.0, %v6215_v38 }
 0x11c   :  { %v6363_v48 = vpop.eup %5201  ;;  %v895_v36 = vsel %vm863_vm7, %v6050_v3, %v831_v10  ;;  %4832 = vmatmul.mubr.msk.f32.gmra.mrb[44].mxu0 %vm86_vm0, %v5871_v20  ;;  %vm6382_vm13 = vcmp.lt.f32.partialorder %v582_v30, 0.0004427343  ;;  %v591_v17 = vand.u32 2147483647, %v6193_v32  ;;  %v581_v44 = vmul.f32 %v6206_v60, %v580_v58 }
 0x11d   :  { %v6345_v12 = vpop.f32.mrb[30].mxu0  ;;  %v6370_v28 = vpop.eup %5203  ;;  %4758 = vmatprep.mubr.msk.f32.mxu1 %vm940_vm2, %v895_v36  ;;  %v575_v41 = vsel %vm6340_vm10, %v572_v11, %v569_v34  ;;  %4834 = vmatprep.mubr.msk.f32.mxu0 %vm86_vm0, %v5876_v21  ;;  %v468_v11 = vmin.f32 %v6358_v2, 20.0  ;;  %v6392_v37 = vmul.f32 100.0, %v6361_v18  ;;  %v6395_v20 = vadd.f32 %v4735_v29, %v6030_v51 }
 0x11e   :  { %v6351_v50 = vpop.f32.mrb[31].mxu0  ;;  %v832_v3 = vmul.f32 0.01, %v575_v41  ;;  %v5206_v59 = vpop.eup %5205  ;;  %5217 = vpow2.f32 %v526_v19  ;;  %v598_v34 = vadd.f32 1.0, %v597_v9  ;;  %v590_v60 = vmul.f32 %v6193_v32, %v589_v16 }
 0x11f   :  { %v5208_v30 = vpop.eup %5207  ;;  %v578_v10 = vmul.f32 0.6931472, %v5206_v59  ;;  %v6404_v58 = vmul.f32 100.0, %v6377_v14  ;;  %5219 = vlog2.f32 %v603_v52  ;;  %vm592_vm15 = vcmp.lt.f32.partialorder %v591_v17, 0.0004427343 }
 0x120   :  { %v896_v8 = vsel %vm864_vm8, %v6047_v1, %v832_v3  ;;  %v587_v21 = vmul.f32 0.6931472, %v5208_v30  ;;  %4835 = vmatmul.mubr.msk.f32.gmra.mrb[46].mxu0 %vm86_vm0, %v5885_v22  ;;  %v6408_v29 = vpop.eup %5209  ;;  %v600_v6 = vand.u32 2147483647, %v6236_v63  ;;  %v612_v36 = vadd.f32 1.0, %v6250_v35 }
 0x121   :  { %4759 = vmatmul.mubr.msk.f32.gmra.mrb[2].mxu1 %vm940_vm2, %v896_v8  ;;  %v584_v1 = vsel %vm6382_vm13, %v581_v44, %v578_v10  ;;  %4837 = vmatprep.mubr.msk.f32.mxu0 %vm86_vm0, %v5890_v23  ;;  %v471_v9 = vmin.f32 %v6392_v37, 20.0  ;;  %v6418_v41 = vmul.f32 100.0, %v6395_v20  ;;  %v524_v16 = vmul.f32 1.442695, %v468_v11 }
 0x122   :  { %v833_v32 = vmul.f32 0.01, %v584_v1  ;;  %v593_v19 = vsel %vm592_vm15, %v590_v60, %v587_v21  ;;  %v5212_v22 = vpop.eup %5211  ;;  %v599_v3 = vmul.f32 %v6236_v63, %v598_v34  ;;  %v606_v40 = vmul.f32 -0.5, %v6215_v38  ;;  %v8824_v1 = vld [vmem:[#allocation5_spill] sm:$0xff] }
 0x123   :  { %v834_v52 = vmul.f32 0.01, %v593_v19  ;;  %v596_v59 = vmul.f32 0.6931472, %v5212_v22  ;;  %v470_v23 = vmin.f32 %v6404_v58, 20.0  ;;  %5221 = vlog2.f32 %v612_v36  ;;  %v6428_v44 = vpop.eup %5213  ;;  %v8825_v36 = vld [vmem:[#allocation19_spill] sm:$0xff] }
 0x124   :  { %v897_v17 = vsel %vm865_vm11, %v6059_v7, %v833_v32  ;;  %4838 = vmatmul.mubr.msk.f32.gmra.mrb[48].mxu0 %vm86_vm0, %v5899_v24  ;;  %vm601_vm1 = vcmp.lt.f32.partialorder %v600_v6, 0.0004427343  ;;  %v615_v11 = vmul.f32 -0.5, %v6250_v35  ;;  %v6437_v7 = vadd.f32 %v6030_v51, %v6317_v55  ;;  %v6444_v42 = vpop.eup %5215  ;;  %v8826_v22 = vld [vmem:[#allocation6_spill] sm:$0xff] }
 0x125   :  { %4761 = vmatprep.mubr.msk.f32.mxu1 %vm940_vm2, %v897_v17  ;;  %v898_v63 = vsel %vm866_vm12, %v6053_v4, %v834_v52  ;;  %4840 = vmatprep.mubr.msk.f32.mxu0 %vm86_vm0, %v5904_v25  ;;  %v530_v24 = vmul.f32 1.442695, %v471_v9  ;;  %v602_v45 = vsel %vm601_vm1, %v599_v3, %v596_v59  ;;  %v473_v30 = vmin.f32 %v6418_v41, 20.0 }
 0x126   :  { %4762 = vmatmul.mubr.msk.f32.gmra.mrb[4].mxu1 %vm940_vm2, %v898_v63  ;;  %v621_v8 = vadd.f32 1.0, %v6244_v46  ;;  %vm868_vm3 = vcmp.gt.f32.partialorder %v6079_v49, 20.0  ;;  %v835_v4 = vmul.f32 0.01, %v602_v45  ;;  %v607_v10 = vadd.f32 1.0, %v606_v40  ;;  %v8835_v49 = vld [vmem:[#allocation10_spill] sm:$0xff] }
 0x127   :  { %v609_v55 = vand.u32 2147483647, %v6215_v38  ;;  %v6449_v34 = vmul.f32 100.0, %v6437_v7  ;;  %v528_v25 = vmul.f32 1.442695, %v470_v23  ;;  %v624_v21 = vmul.f32 -0.5, %v6244_v46 }
 0x128   :  { %5223 = vlog2.f32 %v621_v8  ;;  %v6454_v60 = vadd.f32 %v6345_v12, %v6030_v51  ;;  %4841 = vmatmul.mubr.msk.f32.gmra.mrb[50].mxu0 %vm86_vm0, %v8824_v1  ;;  %v6458_v6 = vpop.eup %5217  ;;  %v899_v32 = vsel %vm867_vm14, %v8825_v36, %v835_v4  ;;  %v616_v19 = vadd.f32 1.0, %v615_v11  ;;  %v8828_v11 = vld [vmem:[#allocation7_spill] sm:$0xff]  ;;  %v8829_v4 = vld [vmem:[#allocation8_spill] sm:$0xff] }
 0x129   :  { %5225 = vpow2.f32 %v524_v16  ;;  %v630_v9 = vadd.f32 1.0, %v6293_v13  ;;  %4843 = vmatprep.mubr.msk.f32.mxu0 %vm86_vm0, %v8826_v22  ;;  %v5220_v52 = vpop.eup %5219  ;;  %4764 = vmatprep.mubr.msk.f32.mxu1 %vm940_vm2, %v899_v32  ;;  %v534_v12 = vmul.f32 1.442695, %v473_v30  ;;  %v472_v3 = vmin.f32 %v6449_v34, 20.0  ;;  %v8827_v16 = vld [vmem:[#allocation23_spill] sm:$0xff]  ;;  %v8833_v32 = vld [vmem:[#allocation18_spill] sm:$0xff] }
 0x12a   :  { %5227 = vpow2.f32 %v530_v24  ;;  %v6469_v40 = vmul.f32 100.0, %v6454_v60  ;;  %vm869_vm4 = vcmp.gt.f32.partialorder %v8827_v16, 20.0  ;;  %v605_v0 = vmul.f32 0.6931472, %v5220_v52 }
 0x12b   :  { %v608_v17 = vmul.f32 %v6215_v38, %v607_v10  ;;  %v618_v59 = vand.u32 2147483647, %v6250_v35  ;;  %5229 = vlog2.f32 %v630_v9  ;;  %vm610_vm5 = vcmp.lt.f32.partialorder %v609_v55, 0.0004427343 }
 0x12c   :  { %5231 = vpow2.f32 %v528_v25  ;;  %v625_v23 = vadd.f32 1.0, %v624_v21  ;;  %v475_v63 = vmin.f32 %v6469_v40, 20.0  ;;  %4844 = vmatmul.mubr.msk.f32.gmra.mrb[52].mxu0 %vm86_vm0, %v8828_v11  ;;  %v617_v45 = vmul.f32 %v6250_v35, %v616_v19  ;;  %v8830_v21 = vld [vmem:[#allocation22_spill] sm:$0xff] }
 0x12d   :  { %v611_v24 = vsel %vm610_vm5, %v608_v17, %v605_v0  ;;  %v633_v30 = vmul.f32 -0.5, %v6293_v13  ;;  %v639_v8 = vadd.f32 1.0, %v6275_v56  ;;  %4846 = vmatprep.mubr.msk.f32.mxu0 %vm86_vm0, %v8829_v4  ;;  %v5222_v38 = vpop.eup %5221  ;;  %5233 = vpow2.f32 %v534_v12  ;;  %v8836_v17 = vld [vmem:[#allocation27_spill] sm:$0xff]  ;;  %v8839_v4 = vld [vmem:[#allocation21_spill] sm:$0xff] }
 0x12e   :  { %v836_v10 = vmul.f32 0.01, %v611_v24  ;;  %v532_v55 = vmul.f32 1.442695, %v472_v3  ;;  %v6484_v25 = vadd.f32 %v6030_v51, %v6351_v50  ;;  %vm870_vm6 = vcmp.gt.f32.partialorder %v8830_v21, 20.0  ;;  %v8834_v50 = vld [vmem:[#allocation9_spill] sm:$0xff] }
 0x12f   :  { %v614_v1 = vmul.f32 0.6931472, %v5222_v38  ;;  %vm6487_vm7 = vcmp.lt.f32.partialorder %v618_v59, 0.0004427343  ;;  %v627_v36 = vand.u32 2147483647, %v6244_v46  ;;  %5235 = vlog2.f32 %v639_v8 }
 0x130   :  { %v900_v19 = vsel %vm868_vm3, %v8833_v32, %v836_v10  ;;  %v626_v9 = vmul.f32 %v6244_v46, %v625_v23  ;;  %v538_v22 = vmul.f32 1.442695, %v475_v63  ;;  %v636_v51 = vand.u32 2147483647, %v6293_v13  ;;  %4847 = vmatmul.mubr.msk.f32.gmra.mrb[54].mxu0 %vm86_vm0, %v8834_v50  ;;  %v8849_v21 = vld [vmem:[#allocation14_spill] sm:$0xff]  ;;  %v8850_v10 = vld [vmem:[#allocation32_spill] sm:$0xff] }
 0x131   :  { %4765 = vmatmul.mubr.msk.f32.gmra.mrb[6].mxu1 %vm940_vm2, %v900_v19  ;;  %v620_v52 = vsel %vm6487_vm7, %v617_v45, %v614_v1  ;;  %v634_v12 = vadd.f32 1.0, %v633_v30  ;;  %v642_v3 = vmul.f32 -0.5, %v6275_v56  ;;  %v648_v0 = vadd.f32 1.0, %v6302_v39  ;;  %4849 = vmatprep.mubr.msk.f32.mxu0 %vm86_vm0, %v8835_v49  ;;  %v8842_v1 = vld [vmem:[#allocation11_spill] sm:$0xff]  ;;  %v8843_v19 = vld [vmem:[#allocation12_spill] sm:$0xff] }
 0x132   :  { %v5224_v46 = vpop.eup %5223  ;;  %vm871_vm8 = vcmp.gt.f32.partialorder %v8836_v17, 20.0  ;;  %v837_v59 = vmul.f32 0.01, %v620_v52  ;;  %5237 = vpow2.f32 %v532_v55  ;;  %v6508_v23 = vmul.f32 100.0, %v6484_v25 }
 0x133   :  { %v657_v63 = vadd.f32 1.0, %v6299_v5  ;;  %v6511_v11 = vpop.eup %5225  ;;  %v623_v24 = vmul.f32 0.6931472, %v5224_v46  ;;  %vm6513_vm9 = vcmp.lt.f32.partialorder %v627_v36, 0.0004427343  ;;  %5239 = vlog2.f32 %v648_v0 }
 0x134   :  { %v645_v30 = vand.u32 2147483647, %v6275_v56  ;;  %v6518_v8 = vpop.eup %5227  ;;  %v901_v38 = vsel %vm869_vm4, %v8839_v4, %v837_v59  ;;  %5241 = vpow2.f32 %v538_v22  ;;  %vm6523_vm10 = vcmp.lt.f32.partialorder %v636_v51, 0.0004427343  ;;  %4850 = vmatmul.mubr.msk.f32.gmra.mrb[56].mxu0 %vm86_vm0, %v8842_v1  ;;  %v8844_v51 = vld [vmem:[#allocation26_spill] sm:$0xff]  ;;  %v8847_v59 = vld [vmem:[#allocation20_spill] sm:$0xff] }
 0x135   :  { %v651_v55 = vmul.f32 -0.5, %v6302_v39  ;;  %v5230_v35 = vpop.eup %5229  ;;  %4767 = vmatprep.mubr.msk.f32.mxu1 %vm940_vm2, %v901_v38  ;;  %v629_v36 = vsel %vm6513_vm9, %v626_v9, %v623_v24  ;;  %v635_v32 = vmul.f32 %v6293_v13, %v634_v12  ;;  %v643_v16 = vadd.f32 1.0, %v642_v3  ;;  %4852 = vmatprep.mubr.msk.f32.mxu0 %vm86_vm0, %v8843_v19  ;;  %v8848_v4 = vld [vmem:[#allocation13_spill] sm:$0xff] }
 0x136   :  { %5243 = vlog2.f32 %v657_v63  ;;  %v6536_v22 = vpop.eup %5231  ;;  %vm872_vm11 = vcmp.gt.f32.partialorder %v8844_v51, 20.0  ;;  %v838_v50 = vmul.f32 0.01, %v629_v36  ;;  %v632_v52 = vmul.f32 0.6931472, %v5230_v35  ;;  %v8863_v51 = vld [vmem:[#allocation35_spill] sm:$0xff] }
 0x137   :  { %v474_v0 = vmin.f32 %v6508_v23, 20.0  ;;  %v660_v49 = vmul.f32 -0.5, %v6299_v5  ;;  %vm6541_vm12 = vcmp.lt.f32.partialorder %v645_v30, 0.0004427343  ;;  %v654_v13 = vand.u32 2147483647, %v6302_v39  ;;  %v6548_v3 = vpop.eup %5233 }
 0x138   :  { %v666_v9 = vadd.f32 1.0, %v6321_v57  ;;  %v669_v12 = vmul.f32 -0.5, %v6321_v57  ;;  %v902_v63 = vsel %vm870_vm6, %v8847_v59, %v838_v50  ;;  %v638_v24 = vsel %vm6523_vm10, %v635_v32, %v632_v52  ;;  %4853 = vmatmul.mubr.msk.f32.gmra.mrb[58].mxu0 %vm86_vm0, %v8848_v4  ;;  %v8851_v50 = vld [vmem:[#allocation25_spill] sm:$0xff] }
 0x139   :  { %v652_v45 = vadd.f32 1.0, %v651_v55  ;;  %v675_v30 = vadd.f32 1.0, %v6309_v53  ;;  %v5236_v38 = vpop.eup %5235  ;;  %4768 = vmatmul.mubr.msk.f32.gmra.mrb[8].mxu1 %vm940_vm2, %v902_v63  ;;  %v839_v1 = vmul.f32 0.01, %v638_v24  ;;  %v644_v35 = vmul.f32 %v6275_v56, %v643_v16  ;;  %4855 = vmatprep.mubr.msk.f32.mxu0 %vm86_vm0, %v8849_v21  ;;  %v8852_v63 = vld [vmem:[#allocation31_spill] sm:$0xff] }
 0x13a   :  { %v663_v36 = vand.u32 2147483647, %v6299_v5  ;;  %5245 = vlog2.f32 %v666_v9  ;;  %vm873_vm13 = vcmp.gt.f32.partialorder %v8850_v10, 20.0  ;;  %v641_v55 = vmul.f32 0.6931472, %v5236_v38 }
 0x13b   :  { %v661_v32 = vadd.f32 1.0, %v660_v49  ;;  %v672_v19 = vand.u32 2147483647, %v6321_v57  ;;  %5247 = vlog2.f32 %v675_v30  ;;  %v903_v52 = vsel %vm871_vm8, %v8851_v50, %v839_v1  ;;  %v8858_v1 = vld [vmem:[#allocation16_spill] sm:$0xff] }
 0x13c   :  { %v6568_v59 = vmul.f32 1.442695, %v474_v0  ;;  %v670_v56 = vadd.f32 1.0, %v669_v12  ;;  %v684_v16 = vadd.f32 1.0, %v6336_v26  ;;  %v6571_v9 = vpop.eup %5237  ;;  %vm874_vm14 = vcmp.gt.f32.partialorder %v8852_v63, 20.0  ;;  %4770 = vmatprep.mubr.msk.f32.mxu1 %vm940_vm2, %v903_v52  ;;  %v8855_v0 = vld [vmem:[#allocation15_spill] sm:$0xff] }
 0x13d   :  { %v647_v49 = vsel %vm6541_vm12, %v644_v35, %v641_v55  ;;  %v653_v24 = vmul.f32 %v6302_v39, %v652_v45  ;;  %vm6578_vm15 = vcmp.lt.f32.partialorder %v654_v13, 0.0004427343  ;;  %v678_v17 = vmul.f32 -0.5, %v6309_v53  ;;  %4856 = vmatmul.mubr.msk.f32.gmra.mrb[60].mxu0 %vm86_vm0, %v8855_v0  ;;  %v5240_v12 = vpop.eup %5239  ;;  %v8861_v55 = vld [vmem:[#allocation24_spill] sm:$0xff]  ;;  %v8862_v0 = vld [vmem:[#allocation17_spill] sm:$0xff] }
 0x13e   :  { %v840_v4 = vmul.f32 0.01, %v647_v49  ;;  %vm6585_vm1 = vcmp.lt.f32.partialorder %v663_v36, 0.0004427343  ;;  %5249 = vlog2.f32 %v684_v16  ;;  %v693_v46 = vadd.f32 1.0, %v6332_v54  ;;  %4858 = vmatprep.mubr.msk.f32.mxu0 %vm86_vm0, %v8858_v1  ;;  %v6592_v39 = vpop.eup %5241  ;;  %v8866_v1 = vld [vmem:[#allocation29_spill] sm:$0xff] }
 0x13f   :  { %v650_v13 = vmul.f32 0.6931472, %v5240_v12  ;;  %v662_v45 = vmul.f32 %v6299_v5, %v661_v32  ;;  %vm6595_vm3 = vcmp.lt.f32.partialorder %v672_v19, 0.0004427343  ;;  %v681_v36 = vand.u32 2147483647, %v6309_v53 }
 0x140   :  { %v5244_v21 = vpop.eup %5243  ;;  %v904_v50 = vsel %vm872_vm11, %v8861_v55, %v840_v4  ;;  %v671_v52 = vmul.f32 %v6321_v57, %v670_v56  ;;  %v687_v16 = vmul.f32 -0.5, %v6336_v26  ;;  %5251 = vlog2.f32 %v693_v46 }
 0x141   :  { %vm875_vm4 = vcmp.gt.f32.partialorder %v6180_v27, 20.0  ;;  %4771 = vmatmul.mubr.msk.f32.gmra.mrb[10].mxu1 %vm940_vm2, %v904_v50  ;;  %v656_v5 = vsel %vm6578_vm15, %v653_v24, %v650_v13  ;;  %v659_v32 = vmul.f32 0.6931472, %v5244_v21  ;;  %v679_v19 = vadd.f32 1.0, %v678_v17  ;;  %4859 = vmatmul.mubr.msk.f32.gmra.mrb[62].mxu0 %vm86_vm0, %v8862_v0 }
 0x142   :  { %v702_v49 = vadd.f32 1.0, %v6363_v48  ;;  %vm876_vm5 = vcmp.gt.f32.partialorder %v8863_v51, 20.0  ;;  %v841_v57 = vmul.f32 0.01, %v656_v5  ;;  %v690_v56 = vand.u32 2147483647, %v6336_v26 }
 0x143   :  { %v696_v12 = vmul.f32 -0.5, %v6332_v54  ;;  %v711_v4 = vadd.f32 1.0, %v6355_v15  ;;  %v665_v30 = vsel %vm6585_vm1, %v662_v45, %v659_v32  ;;  %vm6618_vm6 = vcmp.lt.f32.partialorder %v681_v36, 0.0004427343  ;;  %v8867_v32 = vld [vmem:[#allocation28_spill] sm:$0xff] }
 0x144   :  { %v699_v17 = vand.u32 2147483647, %v6332_v54  ;;  %5253 = vlog2.f32 %v702_v49  ;;  %v5246_v46 = vpop.eup %5245  ;;  %v905_v13 = vsel %vm873_vm13, %v8866_v1, %v841_v57  ;;  %v842_v21 = vmul.f32 0.01, %v665_v30 }
 0x145   :  { %v688_v55 = vadd.f32 1.0, %v687_v16  ;;  %5255 = vlog2.f32 %v711_v4  ;;  %v5248_v50 = vpop.eup %5247  ;;  %vm877_vm0 = vcmp.gt.f32.partialorder %v6197_v62, 20.0  ;;  %4773 = vmatprep.mubr.msk.f32.mxu1 %vm940_vm2, %v905_v13  ;;  %v668_v38 = vmul.f32 0.6931472, %v5246_v46  ;;  %v8872_v13 = vld [vmem:[#allocation33_spill] sm:$0xff] }
 0x146   :  { %v680_v45 = vmul.f32 %v6309_v53, %v679_v19  ;;  %v705_v36 = vmul.f32 -0.5, %v6363_v48  ;;  %v720_v5 = vadd.f32 1.0, %v6408_v29  ;;  %v906_v10 = vsel %vm874_vm14, %v8867_v32, %v842_v21 }
 0x147   :  { %v677_v49 = vmul.f32 0.6931472, %v5248_v50  ;;  %vm6634_vm7 = vcmp.lt.f32.partialorder %v690_v56, 0.0004427343  ;;  %v697_v0 = vadd.f32 1.0, %v696_v12  ;;  %vm878_vm8 = vcmp.gt.f32.partialorder %v6187_v43, 20.0  ;;  %4774 = vmatmul.mubr.msk.f32.gmra.mrb[12].mxu1 %vm940_vm2, %v906_v10 }
 0x148   :  { %v674_v53 = vsel %vm6595_vm3, %v671_v52, %v668_v38  ;;  %vm6642_vm9 = vcmp.lt.f32.partialorder %v699_v17, 0.0004427343  ;;  %v714_v63 = vmul.f32 -0.5, %v6355_v15  ;;  %5257 = vlog2.f32 %v720_v5  ;;  %v5250_v57 = vpop.eup %5249 }
 0x149   :  { %v843_v56 = vmul.f32 0.01, %v674_v53  ;;  %v683_v4 = vsel %vm6618_vm6, %v680_v45, %v677_v49  ;;  %v708_v12 = vand.u32 2147483647, %v6363_v48  ;;  %v723_v30 = vmul.f32 -0.5, %v6408_v29  ;;  %v8873_v45 = vld [vmem:[#allocation30_spill] sm:$0xff] }
 0x14a   :  { %v844_v46 = vmul.f32 0.01, %v683_v4  ;;  %v686_v1 = vmul.f32 0.6931472, %v5250_v57  ;;  %v689_v35 = vmul.f32 %v6336_v26, %v688_v55  ;;  %v706_v52 = vadd.f32 1.0, %v705_v36  ;;  %v5252_v17 = vpop.eup %5251 }
 0x14b   :  { %vm879_vm10 = vcmp.gt.f32.partialorder %v6226_v33, 20.0  ;;  %v907_v21 = vsel %vm875_vm4, %v8872_v13, %v843_v56  ;;  %v698_v50 = vmul.f32 %v6332_v54, %v697_v0  ;;  %v717_v24 = vand.u32 2147483647, %v6355_v15 }
 0x14c   :  { %v729_v38 = vadd.f32 1.0, %v6370_v28  ;;  %vm880_vm11 = vcmp.gt.f32.partialorder %v6219_v31, 20.0  ;;  %4776 = vmatprep.mubr.msk.f32.mxu1 %vm940_vm2, %v907_v21  ;;  %v908_v26 = vsel %vm876_vm5, %v8873_v45, %v844_v46  ;;  %v692_v55 = vsel %vm6634_vm7, %v689_v35, %v686_v1  ;;  %v8879_v46 = vld [vmem:[#allocation34_spill] sm:$0xff] }
 0x14d   :  { %v695_v36 = vmul.f32 0.6931472, %v5252_v17  ;;  %v715_v27 = vadd.f32 1.0, %v714_v63  ;;  %4777 = vmatmul.mubr.msk.f32.gmra.mrb[14].mxu1 %vm940_vm2, %v908_v26  ;;  %v845_v54 = vmul.f32 0.01, %v692_v55  ;;  %v724_v32 = vadd.f32 1.0, %v723_v30 }
 0x14e   :  { %vm6667_vm12 = vcmp.lt.f32.partialorder %v708_v12, 0.0004427343  ;;  %5259 = vlog2.f32 %v729_v38  ;;  %v5254_v10 = vpop.eup %5253  ;;  %v707_v51 = vmul.f32 %v6363_v48, %v706_v52  ;;  %v732_v16 = vmul.f32 -0.5, %v6370_v28  ;;  %v8876_v63 = vld [vmem:[#allocation36_spill] sm:$0xff]  ;;  %v8881_v55 = vld [vmem:[#allocation37_spill] sm:$0xff]  ;;  %v8901_v12 = vld [vmem:[#allocation42_spill] sm:$0xff] }
 0x14f   :  { %v701_v49 = vsel %vm6642_vm9, %v698_v50, %v695_v36  ;;  %v738_v0 = vadd.f32 1.0, %v6444_v42  ;;  %v5256_v53 = vpop.eup %5255  ;;  %v909_v57 = vsel %vm877_vm0, %v8876_v63, %v845_v54  ;;  %v704_v4 = vmul.f32 0.6931472, %v5254_v10 }
 0x150   :  { %v846_v56 = vmul.f32 0.01, %v701_v49  ;;  %vm6679_vm13 = vcmp.lt.f32.partialorder %v717_v24, 0.0004427343  ;;  %4779 = vmatprep.mubr.msk.f32.mxu1 %vm940_vm2, %v909_v57  ;;  %v713_v19 = vmul.f32 0.6931472, %v5256_v53  ;;  %v716_v48 = vmul.f32 %v6355_v15, %v715_v27 }
 0x151   :  { %v726_v30 = vand.u32 2147483647, %v6408_v29  ;;  %5261 = vlog2.f32 %v738_v0  ;;  %v710_v62 = vsel %vm6667_vm12, %v707_v51, %v704_v4  ;;  %v725_v35 = vmul.f32 %v6408_v29, %v724_v32  ;;  %v8880_v29 = vld [vmem:[#allocation38_spill] sm:$0xff]  ;;  %v8882_v32 = vld [vmem:[#allocation41_spill] sm:$0xff]  ;;  %v8886_v53 = vld [vmem:[#allocation40_spill] sm:$0xff] }
 0x152   :  { %v910_v1 = vsel %vm878_vm8, %v8879_v46, %v846_v56  ;;  %v747_v52 = vadd.f32 1.0, %v6428_v44  ;;  %v5258_v17 = vpop.eup %5257  ;;  %v847_v13 = vmul.f32 0.01, %v710_v62  ;;  %v719_v15 = vsel %vm6679_vm13, %v716_v48, %v713_v19  ;;  %v8883_v49 = vld [vmem:[#allocation45_spill] sm:$0xff] }
 0x153   :  { %4780 = vmatmul.mubr.msk.f32.gmra.mrb[16].mxu1 %vm940_vm2, %v910_v1  ;;  %v733_v21 = vadd.f32 1.0, %v732_v16  ;;  %v735_v50 = vand.u32 2147483647, %v6370_v28  ;;  %v848_v24 = vmul.f32 0.01, %v719_v15  ;;  %v741_v38 = vmul.f32 -0.5, %v6444_v42 }
 0x154   :  { %v722_v43 = vmul.f32 0.6931472, %v5258_v17  ;;  %5263 = vlog2.f32 %v747_v52  ;;  %vm882_vm14 = vcmp.gt.f32.partialorder %v6239_v61, 20.0  ;;  %v911_v45 = vsel %vm879_vm10, %v8880_v29, %v847_v13 }
 0x155   :  { %5265 = vpow2.f32 %v6568_v59  ;;  %vm727_vm15 = vcmp.lt.f32.partialorder %v726_v30, 0.0004427343  ;;  %v756_v26 = vadd.f32 1.0, %v6511_v11  ;;  %4782 = vmatprep.mubr.msk.f32.mxu1 %vm940_vm2, %v911_v45  ;;  %v912_v36 = vsel %vm880_vm11, %v8881_v55, %v848_v24  ;;  %v8889_v30 = vld [vmem:[#allocation44_spill] sm:$0xff] }
 0x156   :  { %v728_v27 = vsel %vm727_vm15, %v725_v35, %v722_v43  ;;  %v744_v54 = vand.u32 2147483647, %v6444_v42  ;;  %v750_v5 = vmul.f32 -0.5, %v6428_v44  ;;  %vm881_vm1 = vcmp.gt.f32.partialorder %v8882_v32, 20.0  ;;  %v8892_v43 = vld [vmem:[#allocation39_spill] sm:$0xff] }
 0x157   :  { %4783 = vmatmul.mubr.msk.f32.gmra.mrb[18].mxu1 %vm940_vm2, %v912_v36  ;;  %v849_v33 = vmul.f32 0.01, %v728_v27  ;;  %v753_v59 = vand.u32 2147483647, %v6428_v44  ;;  %5267 = vlog2.f32 %v756_v26  ;;  %vm883_vm3 = vcmp.gt.f32.partialorder %v8883_v49, 20.0 }
 0x158   :  { %v5260_v10 = vpop.eup %5259  ;;  %v734_v51 = vmul.f32 %v6370_v28, %v733_v21  ;;  %vm6715_vm4 = vcmp.lt.f32.partialorder %v735_v50, 0.0004427343  ;;  %v742_v16 = vadd.f32 1.0, %v741_v38  ;;  %v765_v0 = vadd.f32 1.0, %v6458_v6 }
 0x159   :  { %v913_v63 = vsel %vm881_vm1, %v8886_v53, %v849_v33  ;;  %v731_v57 = vmul.f32 0.6931472, %v5260_v10  ;;  %v759_v56 = vmul.f32 -0.5, %v6511_v11  ;;  %v774_v4 = vadd.f32 1.0, %v6536_v22  ;;  %v8896_v10 = vld [vmem:[#allocation43_spill] sm:$0xff] }
 0x15a   :  { %4785 = vmatprep.mubr.msk.f32.mxu1 %vm940_vm2, %v913_v63  ;;  %vm6724_vm5 = vcmp.lt.f32.partialorder %v744_v54, 0.0004427343  ;;  %v751_v28 = vadd.f32 1.0, %v750_v5  ;;  %5269 = vlog2.f32 %v765_v0  ;;  %v768_v19 = vmul.f32 -0.5, %v6458_v6 }
 0x15b   :  { %v5262_v48 = vpop.eup %5261  ;;  %vm884_vm6 = vcmp.gt.f32.partialorder %v8889_v30, 20.0  ;;  %v737_v46 = vsel %vm6715_vm4, %v734_v51, %v731_v57  ;;  %vm6732_vm0 = vcmp.lt.f32.partialorder %v753_v59, 0.0004427343  ;;  %5271 = vlog2.f32 %v774_v4  ;;  %v8895_v59 = vld [vmem:[#allocation47_spill] sm:$0xff] }
 0x15c   :  { %v783_v62 = vadd.f32 1.0, %v6518_v8  ;;  %v850_v35 = vmul.f32 0.01, %v737_v46  ;;  %v740_v52 = vmul.f32 0.6931472, %v5262_v48  ;;  %v743_v17 = vmul.f32 %v6444_v42, %v742_v16 }
 0x15d   :  { %v762_v13 = vand.u32 2147483647, %v6511_v11  ;;  %v760_v15 = vadd.f32 1.0, %v759_v56  ;;  %v771_v21 = vand.u32 2147483647, %v6458_v6  ;;  %v777_v50 = vmul.f32 -0.5, %v6536_v22 }
 0x15e   :  { %5273 = vlog2.f32 %v783_v62  ;;  %v5264_v24 = vpop.eup %5263  ;;  %vm885_vm7 = vcmp.gt.f32.partialorder %v6358_v2, 20.0  ;;  %v914_v38 = vsel %vm882_vm14, %v8892_v43, %v850_v35  ;;  %v746_v29 = vsel %vm6724_vm5, %v743_v17, %v740_v52 }
 0x15f   :  { %v769_v45 = vadd.f32 1.0, %v768_v19  ;;  %v792_v42 = vadd.f32 1.0, %v6571_v9  ;;  %v6748_v26 = vpop.eup %5265  ;;  %4786 = vmatmul.mubr.msk.f32.gmra.mrb[20].mxu1 %vm940_vm2, %v914_v38  ;;  %v851_v55 = vmul.f32 0.01, %v746_v29  ;;  %v749_v36 = vmul.f32 0.6931472, %v5264_v24 }
 0x160   :  { %v752_v27 = vmul.f32 %v6428_v44, %v751_v28  ;;  %v780_v54 = vand.u32 2147483647, %v6536_v22  ;;  %vm6753_vm8 = vcmp.lt.f32.partialorder %v762_v13, 0.0004427343  ;;  %v786_v61 = vmul.f32 -0.5, %v6518_v8 }
 0x161   :  { %5275 = vlog2.f32 %v792_v42  ;;  %v801_v32 = vadd.f32 1.0, %v6548_v3  ;;  %v5268_v33 = vpop.eup %5267  ;;  %vm886_vm9 = vcmp.gt.f32.partialorder %v8895_v59, 20.0  ;;  %v915_v51 = vsel %vm883_vm3, %v8896_v10, %v851_v55  ;;  %v8902_v55 = vld [vmem:[#allocation46_spill] sm:$0xff] }
 0x162   :  { %v755_v44 = vsel %vm6732_vm0, %v752_v27, %v749_v36  ;;  %v761_v31 = vmul.f32 %v6511_v11, %v760_v15  ;;  %v778_v16 = vadd.f32 1.0, %v777_v50  ;;  %vm887_vm10 = vcmp.gt.f32.partialorder %v6404_v58, 20.0  ;;  %4788 = vmatprep.mubr.msk.f32.mxu1 %vm940_vm2, %v915_v51 }
 0x163   :  { %v852_v0 = vmul.f32 0.01, %v755_v44  ;;  %v758_v53 = vmul.f32 0.6931472, %v5268_v33  ;;  %v795_v63 = vmul.f32 -0.5, %v6571_v9  ;;  %5277 = vlog2.f32 %v801_v32 }
 0x164   :  { %v770_v57 = vmul.f32 %v6458_v6, %v769_v45  ;;  %vm6770_vm11 = vcmp.lt.f32.partialorder %v771_v21, 0.0004427343  ;;  %vm6774_vm12 = vcmp.lt.f32.partialorder %v780_v54, 0.0004427343  ;;  %v810_v11 = vadd.f32 1.0, %v6748_v26  ;;  %v5270_v4 = vpop.eup %5269 }
 0x165   :  { %v916_v28 = vsel %vm884_vm6, %v8901_v12, %v852_v0  ;;  %v764_v19 = vsel %vm6753_vm8, %v761_v31, %v758_v53  ;;  %v787_v48 = vadd.f32 1.0, %v786_v61  ;;  %v789_v6 = vand.u32 2147483647, %v6518_v8  ;;  %v5272_v46 = vpop.eup %5271 }
 0x166   :  { %4789 = vmatmul.mubr.msk.f32.gmra.mrb[22].mxu1 %vm940_vm2, %v916_v28  ;;  %v853_v1 = vmul.f32 0.01, %v764_v19  ;;  %v767_v62 = vmul.f32 0.6931472, %v5270_v4  ;;  %v804_v35 = vmul.f32 -0.5, %v6548_v3  ;;  %5279 = vlog2.f32 %v810_v11 }
 0x167   :  { %v776_v52 = vmul.f32 0.6931472, %v5272_v46  ;;  %v779_v17 = vmul.f32 %v6536_v22, %v778_v16  ;;  %v796_v13 = vadd.f32 1.0, %v795_v63  ;;  %v819_v30 = vadd.f32 1.0, %v6592_v39 }
 0x168   :  { %v5274_v15 = vpop.eup %5273  ;;  %v917_v21 = vsel %vm885_vm7, %v6330_v47, %v853_v1  ;;  %v773_v50 = vsel %vm6770_vm11, %v770_v57, %v767_v62  ;;  %v798_v24 = vand.u32 2147483647, %v6571_v9  ;;  %v813_v43 = vmul.f32 -0.5, %v6748_v26 }
 0x169   :  { %4791 = vmatprep.mubr.msk.f32.mxu1 %vm940_vm2, %v917_v21  ;;  %v854_v38 = vmul.f32 0.01, %v773_v50  ;;  %v782_v22 = vsel %vm6774_vm12, %v779_v17, %v776_v52  ;;  %v785_v29 = vmul.f32 0.6931472, %v5274_v15  ;;  %v788_v45 = vmul.f32 %v6518_v8, %v787_v48 }
 0x16a   :  { %v855_v42 = vmul.f32 0.01, %v782_v22  ;;  %vm790_vm13 = vcmp.lt.f32.partialorder %v789_v6, 0.0004427343  ;;  %v805_v2 = vadd.f32 1.0, %v804_v35  ;;  %5281 = vlog2.f32 %v819_v30 }
 0x16b   :  { %v5276_v47 = vpop.eup %5275  ;;  %v918_v36 = vsel %vm886_vm9, %v8902_v55, %v854_v38  ;;  %v791_v27 = vsel %vm790_vm13, %v788_v45, %v785_v29  ;;  %v797_v54 = vmul.f32 %v6571_v9, %v796_v13  ;;  %v807_v5 = vand.u32 2147483647, %v6548_v3 }
 0x16c   :  { %4792 = vmatmul.mubr.msk.f32.gmra.mrb[24].mxu1 %vm940_vm2, %v918_v36  ;;  %v919_v8 = vsel %vm887_vm10, %v6377_v14, %v855_v42  ;;  %v856_v61 = vmul.f32 0.01, %v791_v27  ;;  %v794_v32 = vmul.f32 0.6931472, %v5276_v47  ;;  %v814_v33 = vadd.f32 1.0, %v813_v43 }
 0x16d   :  { %v5278_v10 = vpop.eup %5277  ;;  %vm888_vm14 = vcmp.gt.f32.partialorder %v6392_v37, 20.0  ;;  %4794 = vmatprep.mubr.msk.f32.mxu1 %vm940_vm2, %v919_v8  ;;  %vm799_vm15 = vcmp.lt.f32.partialorder %v798_v24, 0.0004427343  ;;  %v822_v59 = vmul.f32 -0.5, %v6592_v39  ;;  %v806_v44 = vmul.f32 %v6548_v3, %v805_v2 }
 0x16e   :  { %v800_v9 = vsel %vm799_vm15, %v797_v54, %v794_v32  ;;  %v803_v51 = vmul.f32 0.6931472, %v5278_v10  ;;  %v816_v31 = vand.u32 2147483647, %v6748_v26  ;;  %v920_v58 = vsel %vm888_vm14, %v6361_v18, %v856_v61 }
 0x16f   :  { %v857_v14 = vmul.f32 0.01, %v800_v9  ;;  %vm808_vm1 = vcmp.lt.f32.partialorder %v807_v5, 0.0004427343  ;;  %vm889_vm3 = vcmp.gt.f32.partialorder %v6449_v34, 20.0  ;;  %v815_v0 = vmul.f32 %v6748_v26, %v814_v33 }
 0x170   :  { %v5280_v16 = vpop.eup %5279  ;;  %4795 = vmatmul.mubr.msk.f32.gmra.mrb[26].mxu1 %vm940_vm2, %v920_v58  ;;  %v809_v37 = vsel %vm808_vm1, %v806_v44, %v803_v51  ;;  %v823_v49 = vadd.f32 1.0, %v822_v59  ;;  %vm890_vm4 = vcmp.gt.f32.partialorder %v6418_v41, 20.0  ;;  %vm817_vm5 = vcmp.lt.f32.partialorder %v816_v31, 0.0004427343 }
 0x171   :  { %v921_v53 = vsel %vm889_vm3, %v6437_v7, %v857_v14  ;;  %v858_v63 = vmul.f32 0.01, %v809_v37  ;;  %v812_v57 = vmul.f32 0.6931472, %v5280_v16  ;;  %v825_v18 = vand.u32 2147483647, %v6592_v39 }
 0x172   :  { %4797 = vmatprep.mubr.msk.f32.mxu1 %vm940_vm2, %v921_v53  ;;  %vm891_vm6 = vcmp.gt.f32.partialorder %v6508_v23, 20.0  ;;  %v824_v26 = vmul.f32 %v6592_v39, %v823_v49  ;;  %vm892_vm7 = vcmp.gt.f32.partialorder %v6469_v40, 20.0  ;;  %v1776_v23 = vld [vmem:[%s8703_s5 + $0x10] sm:$0xff]  ;;  %v1777_v39 = vld [vmem:[%s8703_s5 + $0x18] sm:$0x1]  ;;  %vm2109_vm8 = vcmask 1040384  }
 0x173   :  { %v922_v3 = vsel %vm890_vm4, %v6395_v20, %v858_v63  ;;  %v818_v34 = vsel %vm817_vm5, %v815_v0, %v812_v57  ;;  %vm826_vm0 = vcmp.lt.f32.partialorder %v825_v18, 0.0004427343  ;;  %vm5691_vm9 = vmmov 1  }
 0x174   :  { %v5282_v56 = vpop.eup %5281  ;;  %4798 = vmatmul.mubr.msk.f32.gmra.mrb[28].mxu1 %vm940_vm2, %v922_v3  ;;  %v859_v11 = vmul.f32 0.01, %v818_v34  ;;  %vm5082_vm10 = vmpackc.low %vm2109_vm8, %vm5691_vm9  ;;  %vm2012_vm13 = vcmask 203776  }
 0x175   :  { %v821_v7 = vmul.f32 0.6931472, %v5282_v56 }
 0x176   :  { %v923_v4 = vsel %vm891_vm6, %v6484_v25, %v859_v11  ;;  %v5081_v25 = vpack.c.bf16 %v1777_v39, %v1776_v23 }
 0x177   :  { %4800 = vmatprep.mubr.msk.f32.mxu1 %vm940_vm2, %v923_v4  ;;  %v827_v41 = vsel %vm826_vm0, %v824_v26, %v821_v7 }
 0x178   :  { %v860_v12 = vmul.f32 0.01, %v827_v41  ;;  %5083 = vmatprep.subr.msk.bf16.mxu0 %vm5082_vm10, %v5081_v25 }
 0x179   :  { %5086 = vmatpush3.bf16.msk.msra.mxu0 %vm5082_vm10, %v5081_v25 }
 0x17a   :  { %v924_v20 = vsel %vm892_vm7, %v6454_v60, %v860_v12  ;;  %v6840_v60 = vld [vmem:[%s8702_s4] ss:$0 sm:$0xff] }
 0x17b   :  { %4801 = vmatmul.mubr.msk.f32.gmra.mrb[30].mxu1 %vm940_vm2, %v924_v20 }
 0x1e1   :  { %v4757_v40 = vpop.f32.mrb[0].mxu1 }
 0x1e2   :  { %v6843_v28 = vadd.f32 %v4757_v40, %v6840_v60  ;;  %v1103_v19 = vpop.f32.mrb[1].mxu1 }
 0x1e3   :  { %v6846_v48 = vadd.f32 %v6840_v60, %v1103_v19 }
 0x1e4   :  { %v6849_v6 = vmul.f32 100.0, %v6843_v28 }
 0x1e5   :  { %v6852_v46 = vmul.f32 100.0, %v6846_v48 }
 0x1e6   :  { %v1295_v1 = vmin.f32 %v6849_v6, 20.0  ;;  %vm1711_vm15 = vcmp.gt.f32.partialorder %v6849_v6, 20.0 }
 0x1e7   :  { %v1294_v62 = vmin.f32 %v6852_v46, 20.0  ;;  %vm1710_vm14 = vcmp.gt.f32.partialorder %v6852_v46, 20.0 }
 0x1e8   :  { %v1328_v35 = vmul.f32 1.442695, %v1295_v1 }
 0x1e9   :  { %v1326_v52 = vmul.f32 1.442695, %v1294_v62 }
 0x1ea   :  { %5283 = vpow2.f32 %v1328_v35 }
 0x1eb   :  { %5285 = vpow2.f32 %v1326_v52 }
 0x1f4   :  { %v5284_v17 = vpop.eup %5283  ;;  %v4760_v15 = vpop.f32.mrb[2].mxu1 }
 0x1f5   :  { %v5286_v13 = vpop.eup %5285  ;;  %v1399_v30 = vadd.f32 1.0, %v5284_v17  ;;  %v6857_v50 = vadd.f32 %v4760_v15, %v6840_v60  ;;  %v1113_v24 = vpop.f32.mrb[3].mxu1  ;;  %v1402_v22 = vmul.f32 -0.5, %v5284_v17  ;;  %v1405_v61 = vand.u32 2147483647, %v5284_v17 }
 0x1f6   :  { %v1390_v21 = vadd.f32 1.0, %v5286_v13  ;;  %v6860_v43 = vadd.f32 %v6840_v60, %v1113_v24  ;;  %v1393_v42 = vmul.f32 -0.5, %v5286_v13  ;;  %v1396_v59 = vand.u32 2147483647, %v5286_v13 }
 0x1f7   :  { %5287 = vlog2.f32 %v1399_v30  ;;  %v6863_v38 = vmul.f32 100.0, %v6857_v50  ;;  %v1403_v54 = vadd.f32 1.0, %v1402_v22  ;;  %vm1406_vm11 = vcmp.lt.f32.partialorder %v1405_v61, 0.0004427343  ;;  %v2920_v22 = vld [vmem:[%s8706_s8] sm:$0xff] }
 0x1f8   :  { %5289 = vlog2.f32 %v1390_v21  ;;  %v6866_v29 = vmul.f32 100.0, %v6860_v43  ;;  %v1394_v33 = vadd.f32 1.0, %v1393_v42  ;;  %vm1397_vm12 = vcmp.lt.f32.partialorder %v1396_v59, 0.0004427343 }
 0x1f9   :  { %v1297_v45 = vmin.f32 %v6863_v38, 20.0  ;;  %v4763_v47 = vpop.f32.mrb[4].mxu1  ;;  %v1404_v58 = vmul.f32 %v5284_v17, %v1403_v54  ;;  %vm1713_vm3 = vcmp.gt.f32.partialorder %v6863_v38, 20.0 }
 0x1fa   :  { %v1296_v2 = vmin.f32 %v6866_v29, 20.0  ;;  %v6871_v36 = vadd.f32 %v4763_v47, %v6840_v60  ;;  %v1123_v27 = vpop.f32.mrb[5].mxu1  ;;  %v1395_v0 = vmul.f32 %v5286_v13, %v1394_v33  ;;  %v2921_v47 = vld [vmem:[%s8706_s8 + $0x8] sm:$0xff]  ;;  %vm1712_vm5 = vcmp.gt.f32.partialorder %v6866_v29, 20.0 }
 0x1fb   :  { %v1332_v55 = vmul.f32 1.442695, %v1297_v45  ;;  %v6874_v8 = vadd.f32 %v6840_v60, %v1123_v27  ;;  %v2923_v27 = vld [vmem:[%s8706_s8 + $0x18] sm:$0xff] }
 0x1fc   :  { %v1330_v5 = vmul.f32 1.442695, %v1296_v2  ;;  %v6877_v32 = vmul.f32 100.0, %v6871_v36 }
 0x1fd   :  { %5291 = vpow2.f32 %v1332_v55  ;;  %v6880_v10 = vmul.f32 100.0, %v6874_v8  ;;  %v2922_v55 = vld [vmem:[%s8706_s8 + $0x10] sm:$0xff] }
 0x1fe   :  { %5293 = vpow2.f32 %v1330_v5  ;;  %v1299_v51 = vmin.f32 %v6877_v32, 20.0  ;;  %vm1715_vm8 = vcmp.gt.f32.partialorder %v6877_v32, 20.0 }
 0x1ff   :  { %v1298_v14 = vmin.f32 %v6880_v10, 20.0  ;;  %vm1714_vm7 = vcmp.gt.f32.partialorder %v6880_v10, 20.0 }
 0x200   :  { %v1336_v16 = vmul.f32 1.442695, %v1299_v51 }
 0x201   :  { %v5288_v9 = vpop.eup %5287  ;;  %v1334_v63 = vmul.f32 1.442695, %v1298_v14 }
 0x202   :  { %v5290_v44 = vpop.eup %5289  ;;  %v1401_v31 = vmul.f32 0.6931472, %v5288_v9  ;;  %5295 = vpow2.f32 %v1336_v16 }
 0x203   :  { %v1392_v37 = vmul.f32 0.6931472, %v5290_v44  ;;  %5297 = vpow2.f32 %v1334_v63  ;;  %v5087_v44 = vpack.c.bf16 %v2921_v47, %v2920_v22 }
 0x204   :  { %v1407_v53 = vsel %vm1406_vm11, %v1404_v58, %v1401_v31  ;;  %v4766_v3 = vpop.f32.mrb[6].mxu1  ;;  %v5091_v31 = vpack.c.bf16 %v2923_v27, %v2922_v55 }
 0x205   :  { %v1679_v57 = vmul.f32 0.01, %v1407_v53  ;;  %v1398_v49 = vsel %vm1397_vm12, %v1395_v0, %v1392_v37  ;;  %v6887_v34 = vadd.f32 %v4766_v3, %v6840_v60  ;;  %v1133_v56 = vpop.f32.mrb[7].mxu1  ;;  %5088 = vmatprep.subr.bf16.mxu1 %v5087_v44 }
 0x206   :  { %v1678_v18 = vmul.f32 0.01, %v1398_v49  ;;  %v6892_v4 = vadd.f32 %v6840_v60, %v1133_v56  ;;  %5090 = vmatpush3.bf16.msra.mxu1 %v5087_v44 }
 0x207   :  { %v5292_v7 = vpop.eup %5291  ;;  %v1743_v26 = vsel %vm1711_vm15, %v6843_v28, %v1679_v57  ;;  %v6896_v12 = vmul.f32 100.0, %v6887_v34  ;;  %5092 = vmatprep.subr.bf16.mxu1 %v5091_v31 }
 0x208   :  { %v1742_v11 = vsel %vm1710_vm14, %v6846_v48, %v1678_v18  ;;  %v5294_v41 = vpop.eup %5293  ;;  %v1417_v20 = vadd.f32 1.0, %v5292_v7  ;;  %v6900_v23 = vmul.f32 100.0, %v6892_v4  ;;  %v1420_v28 = vmul.f32 -0.5, %v5292_v7 }
 0x209   :  { %4869 = vmatprep.mubr.msk.f32.mxu0 %vm2012_vm13, %v1742_v11  ;;  %v1408_v39 = vadd.f32 1.0, %v5294_v41  ;;  %v1301_v25 = vmin.f32 %v6896_v12, 20.0  ;;  %v1411_v48 = vmul.f32 -0.5, %v5294_v41  ;;  %v1423_v24 = vand.u32 2147483647, %v5292_v7 }
 0x20a   :  { %4870 = vmatmul.mubr.msk.f32.vlgmr.msra.gmra.mrb[32].mxu0 %vm2012_vm13, %v1743_v26  ;;  %5299 = vlog2.f32 %v1417_v20  ;;  %v1300_v40 = vmin.f32 %v6900_v23, 20.0  ;;  %v1421_v13 = vadd.f32 1.0, %v1420_v28  ;;  %v1414_v5 = vand.u32 2147483647, %v5294_v41  ;;  %5094 = vmatpush3.bf16.msra.mxu1 %v5091_v31 }
 0x20b   :  { %5301 = vlog2.f32 %v1408_v39  ;;  %v1340_v19 = vmul.f32 1.442695, %v1301_v25  ;;  %v1412_v21 = vadd.f32 1.0, %v1411_v48  ;;  %vm6934_vm1 = vcmp.lt.f32.partialorder %v1423_v24, 0.0004427343 }
 0x20c   :  { %v6904_v6 = vpop.eup %5295  ;;  %v1338_v46 = vmul.f32 1.442695, %v1300_v40  ;;  %v4769_v1 = vpop.f32.mrb[8].mxu1  ;;  %v1422_v61 = vmul.f32 %v5292_v7, %v1421_v13  ;;  %vm1415_vm4 = vcmp.lt.f32.partialorder %v1414_v5, 0.0004427343  ;;  %vm1717_vm10 = vcmp.gt.f32.partialorder %v6896_v12, 20.0 }
 0x20d   :  { %v6906_v62 = vpop.eup %5297  ;;  %5303 = vpow2.f32 %v1340_v19  ;;  %v1143_v35 = vpop.f32.mrb[9].mxu1  ;;  %v1435_v52 = vadd.f32 1.0, %v6904_v6  ;;  %v6914_v15 = vadd.f32 %v4769_v1, %v6840_v60  ;;  %v1438_v2 = vmul.f32 -0.5, %v6904_v6 }
 0x20e   :  { %5305 = vpow2.f32 %v1338_v46  ;;  %v6910_v17 = vadd.f32 %v6840_v60, %v1143_v35  ;;  %v1426_v30 = vadd.f32 1.0, %v6906_v62  ;;  %v1429_v42 = vmul.f32 -0.5, %v6906_v62 }
 0x20f   :  { %5307 = vlog2.f32 %v1435_v52  ;;  %v1413_v9 = vmul.f32 %v5294_v41, %v1412_v21  ;;  %v6939_v14 = vmul.f32 100.0, %v6914_v15  ;;  %v1439_v53 = vadd.f32 1.0, %v1438_v2 }
 0x210   :  { %v6920_v45 = vmul.f32 100.0, %v6910_v17  ;;  %5309 = vlog2.f32 %v1426_v30  ;;  %v1430_v0 = vadd.f32 1.0, %v1429_v42  ;;  %v1441_v18 = vand.u32 2147483647, %v6904_v6 }
 0x211   :  { %v1303_v39 = vmin.f32 %v6939_v14, 20.0  ;;  %v1432_v40 = vand.u32 2147483647, %v6906_v62  ;;  %v1440_v28 = vmul.f32 %v6904_v6, %v1439_v53  ;;  %vm1716_vm11 = vcmp.gt.f32.partialorder %v6900_v23, 20.0 }
 0x212   :  { %v1302_v54 = vmin.f32 %v6920_v45, 20.0  ;;  %v1431_v46 = vmul.f32 %v6906_v62, %v1430_v0  ;;  %vm6963_vm6 = vcmp.lt.f32.partialorder %v1441_v18, 0.0004427343  ;;  %vm1718_vm14 = vcmp.gt.f32.partialorder %v6920_v45, 20.0 }
 0x213   :  { %v1344_v2 = vmul.f32 1.442695, %v1303_v39  ;;  %vm1433_vm0 = vcmp.lt.f32.partialorder %v1432_v40, 0.0004427343 }
 0x214   :  { %v5300_v33 = vpop.eup %5299  ;;  %v4772_v59 = vpop.f32.mrb[10].mxu1  ;;  %v1342_v63 = vmul.f32 1.442695, %v1302_v54 }
 0x215   :  { %v5302_v58 = vpop.eup %5301  ;;  %v1153_v16 = vpop.f32.mrb[11].mxu1  ;;  %v1419_v37 = vmul.f32 0.6931472, %v5300_v33  ;;  %v6947_v3 = vadd.f32 %v4772_v59, %v6840_v60 }
 0x216   :  { %v6942_v57 = vadd.f32 %v6840_v60, %v1153_v16  ;;  %v1410_v49 = vmul.f32 0.6931472, %v5302_v58  ;;  %5311 = vpow2.f32 %v1342_v63 }
 0x217   :  { %v1425_v56 = vsel %vm6934_vm1, %v1422_v61, %v1419_v37  ;;  %v6951_v11 = vpop.eup %5303  ;;  %v6969_v13 = vmul.f32 100.0, %v6947_v3  ;;  %vm1719_vm1 = vcmp.gt.f32.partialorder %v6939_v14, 20.0 }
 0x218   :  { %v6955_v7 = vmul.f32 100.0, %v6942_v57  ;;  %v1416_v26 = vsel %vm1415_vm4, %v1413_v9, %v1410_v49  ;;  %v1681_v41 = vmul.f32 0.01, %v1425_v56  ;;  %v6957_v20 = vpop.eup %5305  ;;  %v1453_v27 = vadd.f32 1.0, %v6951_v11 }
 0x219   :  { %v1680_v25 = vmul.f32 0.01, %v1416_v26  ;;  %v5308_v19 = vpop.eup %5307  ;;  %v1444_v35 = vadd.f32 1.0, %v6957_v20  ;;  %v1305_v5 = vmin.f32 %v6969_v13, 20.0  ;;  %v1447_v9 = vmul.f32 -0.5, %v6957_v20 }
 0x21a   :  { %v4775_v48 = vpop.f32.mrb[12].mxu1  ;;  %v5310_v52 = vpop.eup %5309  ;;  %v1304_v30 = vmin.f32 %v6955_v7, 20.0  ;;  %v1437_v24 = vmul.f32 0.6931472, %v5308_v19  ;;  %v1745_v22 = vsel %vm1713_vm3, %v6857_v50, %v1681_v41  ;;  %v1450_v49 = vand.u32 2147483647, %v6957_v20 }
 0x21b   :  { %v1163_v21 = vpop.f32.mrb[13].mxu1  ;;  %v1744_v6 = vsel %vm1712_vm5, %v6860_v43, %v1680_v25  ;;  %v1428_v42 = vmul.f32 0.6931472, %v5310_v52  ;;  %5313 = vlog2.f32 %v1444_v35  ;;  %v6986_v29 = vadd.f32 %v4775_v48, %v6840_v60 }
 0x21c   :  { %v6976_v62 = vadd.f32 %v6840_v60, %v1163_v21  ;;  %4872 = vmatprep.mubr.msk.f32.mxu0 %vm2012_vm13, %v1744_v6  ;;  %v1443_v43 = vsel %vm6963_vm6, %v1440_v28, %v1437_v24  ;;  %v1346_v38 = vmul.f32 1.442695, %v1304_v30  ;;  %5315 = vpow2.f32 %v1344_v2 }
 0x21d   :  { %4873 = vmatmul.mubr.msk.f32.gmra.mrb[34].mxu0 %vm2012_vm13, %v1745_v22  ;;  %v1434_v47 = vsel %vm1433_vm0, %v1431_v46, %v1428_v42  ;;  %v1683_v55 = vmul.f32 0.01, %v1443_v43  ;;  %v7004_v44 = vmul.f32 100.0, %v6986_v29  ;;  %5317 = vlog2.f32 %v1453_v27 }
 0x21e   :  { %v1682_v54 = vmul.f32 0.01, %v1434_v47  ;;  %v6992_v61 = vmul.f32 100.0, %v6976_v62  ;;  %5319 = vpow2.f32 %v1346_v38  ;;  %v1348_v32 = vmul.f32 1.442695, %v1305_v5 }
 0x21f   :  { %v1747_v31 = vsel %vm1715_vm8, %v6871_v36, %v1683_v55  ;;  %v1448_v0 = vadd.f32 1.0, %v1447_v9  ;;  %v1456_v18 = vmul.f32 -0.5, %v6951_v11  ;;  %v1307_v26 = vmin.f32 %v7004_v44, 20.0 }
 0x220   :  { %v4778_v50 = vpop.f32.mrb[14].mxu1  ;;  %v1746_v10 = vsel %vm1714_vm7, %v6874_v8, %v1682_v54  ;;  %v7009_v58 = vpop.eup %5311  ;;  %v1306_v16 = vmin.f32 %v6992_v61, 20.0  ;;  %5321 = vpow2.f32 %v1348_v32  ;;  %vm1451_vm9 = vcmp.lt.f32.partialorder %v1450_v49, 0.0004427343 }
 0x221   :  { %v6995_v33 = vadd.f32 %v4778_v50, %v6840_v60  ;;  %v1173_v59 = vpop.f32.mrb[15].mxu1  ;;  %4875 = vmatprep.mubr.msk.f32.mxu0 %vm2012_vm13, %v1746_v10  ;;  %v1462_v25 = vadd.f32 1.0, %v7009_v58  ;;  %v1449_v48 = vmul.f32 %v6957_v20, %v1448_v0  ;;  %v1457_v52 = vadd.f32 1.0, %v1456_v18 }
 0x222   :  { %v7000_v51 = vadd.f32 %v6840_v60, %v1173_v59  ;;  %4876 = vmatmul.mubr.msk.f32.gmra.mrb[36].mxu0 %vm2012_vm13, %v1747_v31  ;;  %v1350_v40 = vmul.f32 1.442695, %v1306_v16  ;;  %v1352_v30 = vmul.f32 1.442695, %v1307_v26  ;;  %v1459_v2 = vand.u32 2147483647, %v6951_v11 }
 0x223   :  { %v7013_v37 = vmul.f32 100.0, %v6995_v33  ;;  %5323 = vlog2.f32 %v1462_v25  ;;  %v1458_v54 = vmul.f32 %v6951_v11, %v1457_v52  ;;  %v1465_v23 = vmul.f32 -0.5, %v7009_v58 }
 0x224   :  { %v7016_v53 = vmul.f32 100.0, %v7000_v51  ;;  %5325 = vpow2.f32 %v1350_v40  ;;  %vm1460_vm12 = vcmp.lt.f32.partialorder %v1459_v2, 0.0004427343  ;;  %v1468_v32 = vand.u32 2147483647, %v7009_v58 }
 0x225   :  { %v5314_v56 = vpop.eup %5313  ;;  %v1309_v28 = vmin.f32 %v7013_v37, 20.0  ;;  %5327 = vpow2.f32 %v1352_v30  ;;  %v1466_v25 = vadd.f32 1.0, %v1465_v23  ;;  %vm1720_vm5 = vcmp.gt.f32.partialorder %v6955_v7, 20.0 }
 0x226   :  { %v4781_v8 = vpop.f32.mrb[16].mxu1  ;;  %v1446_v39 = vmul.f32 0.6931472, %v5314_v56  ;;  %v1308_v46 = vmin.f32 %v7016_v53, 20.0  ;;  %v7040_v22 = vpop.eup %5315  ;;  %vm7087_vm15 = vcmp.lt.f32.partialorder %v1468_v32, 0.0004427343 }
 0x227   :  { %v7019_v63 = vadd.f32 %v4781_v8, %v6840_v60  ;;  %v1183_v36 = vpop.f32.mrb[17].mxu1  ;;  %v5318_v43 = vpop.eup %5317  ;;  %v1356_v47 = vmul.f32 1.442695, %v1309_v28  ;;  %v1471_v31 = vadd.f32 1.0, %v7040_v22  ;;  %v1477_v23 = vand.u32 2147483647, %v7040_v22 }
 0x228   :  { %v7025_v41 = vadd.f32 %v6840_v60, %v1183_v36  ;;  %v1452_v24 = vsel %vm1451_vm9, %v1449_v48, %v1446_v39  ;;  %v7048_v55 = vpop.eup %5319  ;;  %v1354_v27 = vmul.f32 1.442695, %v1308_v46  ;;  %v1455_v9 = vmul.f32 0.6931472, %v5318_v43 }
 0x229   :  { %v7032_v1 = vmul.f32 100.0, %v7019_v63  ;;  %v1684_v42 = vmul.f32 0.01, %v1452_v24  ;;  %5329 = vpow2.f32 %v1356_v47  ;;  %v1480_v16 = vadd.f32 1.0, %v7048_v55 }
 0x22a   :  { %v4784_v19 = vpop.f32.mrb[18].mxu1  ;;  %v7035_v21 = vmul.f32 100.0, %v7025_v41  ;;  %v1461_v11 = vsel %vm1460_vm12, %v1458_v54, %v1455_v9  ;;  %5331 = vpow2.f32 %v1354_v27  ;;  %v7068_v18 = vpop.eup %5321  ;;  %v1474_v46 = vmul.f32 -0.5, %v7040_v22 }
 0x22b   :  { %v1193_v35 = vpop.f32.mrb[19].mxu1  ;;  %v7038_v6 = vadd.f32 %v4784_v19, %v6840_v60  ;;  %v1311_v38 = vmin.f32 %v7032_v1, 20.0  ;;  %v1748_v50 = vsel %vm1716_vm11, %v6892_v4, %v1684_v42  ;;  %v1685_v49 = vmul.f32 0.01, %v1461_v11 }
 0x22c   :  { %v7043_v20 = vadd.f32 %v6840_v60, %v1193_v35  ;;  %v1310_v5 = vmin.f32 %v7035_v21, 20.0  ;;  %4878 = vmatprep.mubr.msk.f32.mxu0 %vm2012_vm13, %v1748_v50  ;;  %5333 = vlog2.f32 %v1471_v31  ;;  %v1483_v12 = vmul.f32 -0.5, %v7048_v55 }
 0x22d   :  { %v7055_v59 = vmul.f32 100.0, %v7038_v6  ;;  %v1360_v8 = vmul.f32 1.442695, %v1311_v38  ;;  %v1749_v19 = vsel %vm1717_vm10, %v6887_v34, %v1685_v49  ;;  %5335 = vlog2.f32 %v1480_v16  ;;  %v5324_v35 = vpop.eup %5323 }
 0x22e   :  { %v7060_v10 = vmul.f32 100.0, %v7043_v20  ;;  %v1358_v56 = vmul.f32 1.442695, %v1310_v5  ;;  %4879 = vmatmul.mubr.msk.f32.gmra.mrb[38].mxu0 %vm2012_vm13, %v1749_v19  ;;  %v1489_v34 = vadd.f32 1.0, %v7068_v18  ;;  %v7093_v30 = vpop.eup %5325  ;;  %v1464_v2 = vmul.f32 0.6931472, %v5324_v35 }
 0x22f   :  { %v1313_v26 = vmin.f32 %v7055_v59, 20.0  ;;  %5337 = vpow2.f32 %v1360_v8  ;;  %v1467_v43 = vmul.f32 %v7009_v58, %v1466_v25  ;;  %v1475_v9 = vadd.f32 1.0, %v1474_v46  ;;  %v7104_v31 = vpop.eup %5327 }
 0x230   :  { %v1312_v40 = vmin.f32 %v7060_v10, 20.0  ;;  %5339 = vpow2.f32 %v1358_v56  ;;  %v1484_v58 = vadd.f32 1.0, %v1483_v12  ;;  %v1486_v11 = vand.u32 2147483647, %v7048_v55 }
 0x231   :  { %v1364_v24 = vmul.f32 1.442695, %v1313_v26  ;;  %5341 = vlog2.f32 %v1489_v34  ;;  %v1470_v5 = vsel %vm7087_vm15, %v1467_v43, %v1464_v2  ;;  %v1492_v32 = vmul.f32 -0.5, %v7068_v18 }
 0x232   :  { %v4787_v4 = vpop.f32.mrb[20].mxu1  ;;  %v1362_v47 = vmul.f32 1.442695, %v1312_v40  ;;  %v1498_v49 = vadd.f32 1.0, %v7093_v30  ;;  %v1476_v46 = vmul.f32 %v7040_v22, %v1475_v9  ;;  %vm7125_vm3 = vcmp.lt.f32.partialorder %v1477_v23, 0.0004427343 }
 0x233   :  { %v7066_v0 = vadd.f32 %v4787_v4, %v6840_v60  ;;  %v1203_v36 = vpop.f32.mrb[21].mxu1  ;;  %v1686_v4 = vmul.f32 0.01, %v1470_v5  ;;  %v7108_v16 = vpop.eup %5329  ;;  %5343 = vpow2.f32 %v1364_v24  ;;  %v1485_v24 = vmul.f32 %v7048_v55, %v1484_v58 }
 0x234   :  { %v7072_v39 = vadd.f32 %v6840_v60, %v1203_v36  ;;  %v7117_v56 = vpop.eup %5331  ;;  %5345 = vpow2.f32 %v1362_v47  ;;  %vm7133_vm4 = vcmp.lt.f32.partialorder %v1486_v11, 0.0004427343  ;;  %v1493_v45 = vadd.f32 1.0, %v1492_v32 }
 0x235   :  { %v7076_v28 = vmul.f32 100.0, %v7066_v0  ;;  %v1750_v25 = vsel %vm1718_vm14, %v6910_v17, %v1686_v4  ;;  %5347 = vlog2.f32 %v1498_v49  ;;  %v1501_v4 = vmul.f32 -0.5, %v7093_v30 }
 0x236   :  { %v7083_v48 = vmul.f32 100.0, %v7072_v39  ;;  %4881 = vmatprep.mubr.msk.f32.mxu0 %vm2012_vm13, %v1750_v25  ;;  %v5334_v52 = vpop.eup %5333  ;;  %v1507_v58 = vadd.f32 1.0, %v7104_v31  ;;  %vm1721_vm6 = vcmp.gt.f32.partialorder %v6969_v13, 20.0  ;;  %v1504_v17 = vand.u32 2147483647, %v7093_v30 }
 0x237   :  { %v1315_v27 = vmin.f32 %v7076_v28, 20.0  ;;  %v1473_v47 = vmul.f32 0.6931472, %v5334_v52  ;;  %vm1722_vm8 = vcmp.gt.f32.partialorder %v6992_v61, 20.0  ;;  %v1516_v13 = vadd.f32 1.0, %v7117_v56 }
 0x238   :  { %v1314_v54 = vmin.f32 %v7083_v48, 20.0  ;;  %vm7203_vm7 = vcmp.lt.f32.partialorder %v1504_v17, 0.0004427343  ;;  %vm1723_vm10 = vcmp.gt.f32.partialorder %v7004_v44, 20.0  ;;  %vm1724_vm11 = vcmp.gt.f32.partialorder %v7016_v53, 20.0 }
 0x239   :  { %v4790_v42 = vpop.f32.mrb[22].mxu1  ;;  %v1368_v26 = vmul.f32 1.442695, %v1315_v27  ;;  %v1479_v23 = vsel %vm7125_vm3, %v1476_v46, %v1473_v47  ;;  %vm1725_vm14 = vcmp.gt.f32.partialorder %v7013_v37, 20.0  ;;  %vm1726_vm3 = vcmp.gt.f32.partialorder %v7035_v21, 20.0 }
 0x23a   :  { %v7098_v38 = vadd.f32 %v4790_v42, %v6840_v60  ;;  %v1213_v50 = vpop.f32.mrb[23].mxu1  ;;  %v1366_v40 = vmul.f32 1.442695, %v1314_v54  ;;  %v5336_v42 = vpop.eup %5335  ;;  %v1495_v54 = vand.u32 2147483647, %v7068_v18 }
 0x23b   :  { %v7114_v36 = vadd.f32 %v6840_v60, %v1213_v50  ;;  %v7145_v27 = vpop.eup %5337  ;;  %5349 = vpow2.f32 %v1368_v26  ;;  %v1482_v50 = vmul.f32 0.6931472, %v5336_v42  ;;  %v1687_v25 = vmul.f32 0.01, %v1479_v23 }
 0x23c   :  { %v7111_v8 = vmul.f32 100.0, %v7098_v38  ;;  %v7151_v5 = vpop.eup %5339  ;;  %5351 = vpow2.f32 %v1366_v40  ;;  %v1494_v40 = vmul.f32 %v7068_v18, %v1493_v45  ;;  %v1502_v23 = vadd.f32 1.0, %v1501_v4 }
 0x23d   :  { %v7140_v2 = vmul.f32 100.0, %v7114_v36  ;;  %v5342_v11 = vpop.eup %5341  ;;  %v1488_v52 = vsel %vm7133_vm4, %v1485_v24, %v1482_v50  ;;  %v1751_v47 = vsel %vm1719_vm1, %v6914_v15, %v1687_v25  ;;  %5353 = vlog2.f32 %v1507_v58 }
 0x23e   :  { %v1317_v22 = vmin.f32 %v7111_v8, 20.0  ;;  %v7178_v18 = vpop.eup %5343  ;;  %4882 = vmatmul.mubr.msk.f32.gmra.mrb[40].mxu0 %vm2012_vm13, %v1751_v47  ;;  %vm1496_vm0 = vcmp.lt.f32.partialorder %v1495_v54, 0.0004427343  ;;  %v1537_v44 = vmul.f32 -0.5, %v7151_v5  ;;  %vm1727_vm4 = vcmp.gt.f32.partialorder %v7032_v1, 20.0 }
 0x23f   :  { %v4793_v19 = vpop.f32.mrb[24].mxu1  ;;  %v1316_v46 = vmin.f32 %v7140_v2, 20.0  ;;  %v7182_v24 = vpop.eup %5345 }
 0x240   :  { %v7130_v12 = vadd.f32 %v4793_v19, %v6840_v60  ;;  %v1223_v34 = vpop.f32.mrb[25].mxu1  ;;  %v1372_v19 = vmul.f32 1.442695, %v1317_v22  ;;  %v1491_v22 = vmul.f32 0.6931472, %v5342_v11  ;;  %v5348_v25 = vpop.eup %5347 }
 0x241   :  { %v7143_v43 = vadd.f32 %v6840_v60, %v1223_v34 }
 0x242   :  { %v7148_v55 = vmul.f32 100.0, %v7130_v12  ;;  %5355 = vpow2.f32 %v1372_v19  ;;  %v1503_v19 = vmul.f32 %v7093_v30, %v1502_v23 }
 0x243   :  { %v4796_v9 = vpop.f32.mrb[26].mxu1  ;;  %v7159_v32 = vmul.f32 100.0, %v7143_v43 }
 0x244   :  { %v7162_v49 = vadd.f32 %v4796_v9, %v6840_v60  ;;  %v1233_v26 = vpop.f32.mrb[27].mxu1  ;;  %v1319_v34 = vmin.f32 %v7148_v55, 20.0  ;;  %v1688_v9 = vmul.f32 0.01, %v1488_v52  ;;  %v1370_v52 = vmul.f32 1.442695, %v1316_v46 }
 0x245   :  { %v7167_v35 = vadd.f32 %v6840_v60, %v1233_v26  ;;  %v1318_v50 = vmin.f32 %v7159_v32, 20.0 }
 0x246   :  { %8913 = vst [vmem:[#allocation5_spill] sm:$0xff] %v7162_v49  ;;  %v7173_v42 = vmul.f32 100.0, %v7162_v49  ;;  %v1376_v58 = vmul.f32 1.442695, %v1319_v34  ;;  %v1752_v49 = vsel %vm1720_vm5, %v6942_v57, %v1688_v9  ;;  %v7208_v34 = vpop.eup %5349  ;;  %v1500_v57 = vmul.f32 0.6931472, %v5348_v25 }
 0x247   :  { %v4799_v45 = vpop.f32.mrb[28].mxu1  ;;  %v7186_v26 = vmul.f32 100.0, %v7167_v35  ;;  %4884 = vmatprep.mubr.msk.f32.mxu0 %vm2012_vm13, %v1752_v49  ;;  %5357 = vpow2.f32 %v1370_v52 }
 0x248   :  { %8914 = vst [vmem:[#allocation19_spill] sm:$0xff] %v7173_v42  ;;  %v7189_v15 = vadd.f32 %v4799_v45, %v6840_v60  ;;  %v1243_v14 = vpop.f32.mrb[29].mxu1  ;;  %v1321_v4 = vmin.f32 %v7173_v42, 20.0  ;;  %v1497_v45 = vsel %vm1496_vm0, %v1494_v40, %v1491_v22  ;;  %v7214_v40 = vpop.eup %5351  ;;  %5359 = vpow2.f32 %v1376_v58 }
 0x249   :  { %v7193_v11 = vadd.f32 %v6840_v60, %v1243_v14  ;;  %v1689_v54 = vmul.f32 0.01, %v1497_v45  ;;  %v1510_v14 = vmul.f32 -0.5, %v7104_v31  ;;  %v1320_v42 = vmin.f32 %v7186_v26, 20.0 }
 0x24a   :  { %8915 = vst [vmem:[#allocation6_spill] sm:$0xff] %v7189_v15  ;;  %v7196_v47 = vmul.f32 100.0, %v7189_v15  ;;  %v1374_v15 = vmul.f32 1.442695, %v1318_v50  ;;  %v1380_v49 = vmul.f32 1.442695, %v1321_v4  ;;  %v1506_v23 = vsel %vm7203_vm7, %v1503_v19, %v1500_v57 }
 0x24b   :  { %v7212_v7 = vmul.f32 100.0, %v7193_v11  ;;  %v1753_v9 = vsel %vm1721_vm6, %v6947_v3, %v1689_v54  ;;  %v1511_v17 = vadd.f32 1.0, %v1510_v14  ;;  %v1690_v52 = vmul.f32 0.01, %v1506_v23  ;;  %v5354_v54 = vpop.eup %5353 }
 0x24c   :  { %v1323_v30 = vmin.f32 %v7196_v47, 20.0  ;;  %4885 = vmatmul.mubr.msk.f32.gmra.mrb[42].mxu0 %vm2012_vm13, %v1753_v9  ;;  %v1513_v4 = vand.u32 2147483647, %v7104_v31  ;;  %5361 = vpow2.f32 %v1374_v15  ;;  %v1378_v3 = vmul.f32 1.442695, %v1320_v42 }
 0x24d   :  { %v1322_v58 = vmin.f32 %v7212_v7, 20.0  ;;  %5363 = vpow2.f32 %v1380_v49  ;;  %v1754_v14 = vsel %vm1722_vm8, %v6976_v62, %v1690_v52  ;;  %v1509_v42 = vmul.f32 0.6931472, %v5354_v54 }
 0x24e   :  { %v4802_v22 = vpop.f32.mrb[30].mxu1  ;;  %v1384_v19 = vmul.f32 1.442695, %v1323_v30  ;;  %4887 = vmatprep.mubr.msk.f32.mxu0 %vm2012_vm13, %v1754_v14  ;;  %v1512_v15 = vmul.f32 %v7104_v31, %v1511_v17  ;;  %5365 = vlog2.f32 %v1516_v13  ;;  %vm1514_vm9 = vcmp.lt.f32.partialorder %v1513_v4, 0.0004427343 }
 0x24f   :  { %v7225_v50 = vadd.f32 %v4802_v22, %v6840_v60  ;;  %v1253_v25 = vpop.f32.mrb[31].mxu1  ;;  %v1519_v30 = vmul.f32 -0.5, %v7117_v56  ;;  %v1525_v9 = vadd.f32 1.0, %v7108_v16  ;;  %5367 = vpow2.f32 %v1378_v3 }
 0x250   :  { %v7231_v45 = vadd.f32 %v6840_v60, %v1253_v25  ;;  %v7244_v60 = vpop.eup %5355  ;;  %v1382_v62 = vmul.f32 1.442695, %v1322_v58  ;;  %v1515_v61 = vsel %vm1514_vm9, %v1512_v15, %v1509_v42  ;;  %v1522_v31 = vand.u32 2147483647, %v7117_v56 }
 0x251   :  { %8918 = vst [vmem:[#allocation23_spill] sm:$0xff] %v7225_v50  ;;  %v7234_v46 = vmul.f32 100.0, %v7225_v50  ;;  %v1691_v23 = vmul.f32 0.01, %v1515_v61  ;;  %5369 = vlog2.f32 %v1525_v9  ;;  %v1534_v17 = vadd.f32 1.0, %v7151_v5  ;;  %v7253_v25 = vpop.eup %5357 }
 0x252   :  { %8919 = vst [vmem:[#allocation7_spill] sm:$0xff] %v7231_v45  ;;  %v7240_v57 = vmul.f32 100.0, %v7231_v45  ;;  %5371 = vpow2.f32 %v1384_v19  ;;  %v1520_v13 = vadd.f32 1.0, %v1519_v30  ;;  %v1528_v3 = vmul.f32 -0.5, %v7108_v16  ;;  %v7257_v58 = vpop.eup %5359 }
 0x253   :  { %8920 = vst [vmem:[#allocation8_spill] sm:$0xff] %v7234_v46  ;;  %v1325_v49 = vmin.f32 %v7234_v46, 20.0  ;;  %v1755_v4 = vsel %vm1723_vm10, %v6986_v29, %v1691_v23  ;;  %5373 = vpow2.f32 %v1382_v62  ;;  %v1543_v54 = vadd.f32 1.0, %v7145_v27 }
 0x254   :  { %8921 = vst [vmem:[#allocation22_spill] sm:$0xff] %v7240_v57  ;;  %v1324_v22 = vmin.f32 %v7240_v57, 20.0  ;;  %4888 = vmatmul.mubr.msk.f32.gmra.mrb[44].mxu0 %vm2012_vm13, %v1755_v4  ;;  %5375 = vlog2.f32 %v1534_v17  ;;  %v1546_v14 = vmul.f32 -0.5, %v7145_v27  ;;  %vm7266_vm12 = vcmp.lt.f32.partialorder %v1522_v31, 0.0004427343 }
 0x255   :  { %v1388_v52 = vmul.f32 1.442695, %v1325_v49  ;;  %v1531_v15 = vand.u32 2147483647, %v7108_v16  ;;  %5377 = vlog2.f32 %v1543_v54  ;;  %v1552_v49 = vadd.f32 1.0, %v7182_v24 }
 0x256   :  { %v1386_v19 = vmul.f32 1.442695, %v1324_v22  ;;  %v7264_v42 = vpop.eup %5361  ;;  %v1521_v9 = vmul.f32 %v7117_v56, %v1520_v13  ;;  %v1529_v62 = vadd.f32 1.0, %v1528_v3  ;;  %v1540_v61 = vand.u32 2147483647, %v7151_v5 }
 0x257   :  { %v7272_v30 = vpop.eup %5363  ;;  %5379 = vpow2.f32 %v1388_v52  ;;  %v1538_v23 = vadd.f32 1.0, %v1537_v44  ;;  %v1555_v31 = vmul.f32 -0.5, %v7182_v24  ;;  %v1561_v17 = vadd.f32 1.0, %v7178_v18 }
 0x258   :  { %v5366_v22 = vpop.eup %5365  ;;  %5381 = vlog2.f32 %v1552_v49  ;;  %v1547_v54 = vadd.f32 1.0, %v1546_v14  ;;  %v1549_v50 = vand.u32 2147483647, %v7145_v27  ;;  %vm7282_vm15 = vcmp.lt.f32.partialorder %v1531_v15, 0.0004427343 }
 0x259   :  { %5383 = vpow2.f32 %v1386_v19  ;;  %v1518_v4 = vmul.f32 0.6931472, %v5366_v22  ;;  %v7280_v52 = vpop.eup %5367  ;;  %v1564_v13 = vmul.f32 -0.5, %v7178_v18  ;;  %v1570_v3 = vadd.f32 1.0, %v7214_v40 }
 0x25a   :  { %5385 = vlog2.f32 %v1561_v17  ;;  %v1530_v19 = vmul.f32 %v7108_v16, %v1529_v62  ;;  %vm7291_vm1 = vcmp.lt.f32.partialorder %v1540_v61, 0.0004427343  ;;  %v1558_v15 = vand.u32 2147483647, %v7182_v24 }
 0x25b   :  { %v5370_v44 = vpop.eup %5369  ;;  %v1524_v49 = vsel %vm7266_vm12, %v1521_v9, %v1518_v4  ;;  %v1539_v45 = vmul.f32 %v7151_v5, %v1538_v23  ;;  %v1556_v57 = vadd.f32 1.0, %v1555_v31  ;;  %v1548_v29 = vmul.f32 %v7145_v27, %v1547_v54 }
 0x25c   :  { %v7296_v22 = vpop.eup %5371  ;;  %v1692_v17 = vmul.f32 0.01, %v1524_v49  ;;  %v1527_v46 = vmul.f32 0.6931472, %v5370_v44  ;;  %vm7302_vm5 = vcmp.lt.f32.partialorder %v1549_v50, 0.0004427343  ;;  %5387 = vlog2.f32 %v1570_v3 }
 0x25d   :  { %v1579_v9 = vadd.f32 1.0, %v7208_v34  ;;  %v7307_v62 = vpop.eup %5373  ;;  %v1565_v23 = vadd.f32 1.0, %v1564_v13  ;;  %v1573_v31 = vmul.f32 -0.5, %v7214_v40  ;;  %vm1728_vm6 = vcmp.gt.f32.partialorder %v7060_v10, 20.0 }
 0x25e   :  { %v1756_v61 = vsel %vm1724_vm11, %v7000_v51, %v1692_v17  ;;  %v1533_v5 = vsel %vm7282_vm15, %v1530_v19, %v1527_v46  ;;  %v5376_v27 = vpop.eup %5375  ;;  %vm7317_vm0 = vcmp.lt.f32.partialorder %v1558_v15, 0.0004427343  ;;  %v1588_v53 = vadd.f32 1.0, %v7253_v25 }
 0x25f   :  { %4890 = vmatprep.mubr.msk.f32.mxu0 %vm2012_vm13, %v1756_v61  ;;  %v1693_v50 = vmul.f32 0.01, %v1533_v5  ;;  %5389 = vlog2.f32 %v1579_v9  ;;  %v5378_v51 = vpop.eup %5377  ;;  %v1536_v54 = vmul.f32 0.6931472, %v5376_v27  ;;  %v1557_v46 = vmul.f32 %v7182_v24, %v1556_v57 }
 0x260   :  { %v1567_v56 = vand.u32 2147483647, %v7178_v18  ;;  %v1576_v13 = vand.u32 2147483647, %v7214_v40  ;;  %vm1729_vm7 = vcmp.gt.f32.partialorder %v7055_v59, 20.0  ;;  %v1582_v19 = vmul.f32 -0.5, %v7208_v34 }
 0x261   :  { %v7325_v3 = vpop.eup %5379  ;;  %v1757_v44 = vsel %vm1725_vm14, %v6995_v33, %v1693_v50  ;;  %v1545_v49 = vmul.f32 0.6931472, %v5378_v51  ;;  %5391 = vlog2.f32 %v1588_v53  ;;  %v1542_v24 = vsel %vm7291_vm1, %v1539_v45, %v1536_v54 }
 0x262   :  { %v5382_v15 = vpop.eup %5381  ;;  %4891 = vmatmul.mubr.msk.f32.gmra.mrb[46].mxu0 %vm2012_vm13, %v1757_v44  ;;  %v1566_v57 = vmul.f32 %v7178_v18, %v1565_v23  ;;  %v1574_v17 = vadd.f32 1.0, %v1573_v31  ;;  %v1597_v9 = vadd.f32 1.0, %v7244_v60  ;;  %v1694_v5 = vmul.f32 0.01, %v1542_v24 }
 0x263   :  { %v7337_v61 = vpop.eup %5383  ;;  %v1551_v33 = vsel %vm7302_vm5, %v1548_v29, %v1545_v49  ;;  %v1554_v37 = vmul.f32 0.6931472, %v5382_v15  ;;  %v1591_v27 = vmul.f32 -0.5, %v7253_v25  ;;  %vm1730_vm8 = vcmp.gt.f32.partialorder %v7083_v48, 20.0 }
 0x264   :  { %v5386_v50 = vpop.eup %5385  ;;  %v1695_v53 = vmul.f32 0.01, %v1551_v33  ;;  %vm7343_vm9 = vcmp.lt.f32.partialorder %v1567_v56, 0.0004427343  ;;  %v1585_v18 = vand.u32 2147483647, %v7208_v34  ;;  %5393 = vlog2.f32 %v1597_v9 }
 0x265   :  { %v1758_v14 = vsel %vm1726_vm3, %v7025_v41, %v1694_v5  ;;  %v1560_v29 = vsel %vm7317_vm0, %v1557_v46, %v1554_v37  ;;  %v1563_v16 = vmul.f32 0.6931472, %v5386_v50  ;;  %v1583_v23 = vadd.f32 1.0, %v1582_v19  ;;  %v2925_v46 = vld [vmem:[%s8706_s8 + $0x28] sm:$0xff] }
 0x266   :  { %vm1731_vm10 = vcmp.gt.f32.partialorder %v7076_v28, 20.0  ;;  %4893 = vmatprep.mubr.msk.f32.mxu0 %vm2012_vm13, %v1758_v14  ;;  %v1759_v31 = vsel %vm1727_vm4, %v7019_v63, %v1695_v53  ;;  %v1696_v51 = vmul.f32 0.01, %v1560_v29  ;;  %v1600_v54 = vmul.f32 -0.5, %v7244_v60  ;;  %v5388_v21 = vpop.eup %5387 }
 0x267   :  { %v1606_v56 = vadd.f32 1.0, %v7264_v42  ;;  %4894 = vmatmul.mubr.msk.f32.gmra.mrb[48].mxu0 %vm2012_vm13, %v1759_v31  ;;  %v1569_v41 = vsel %vm7343_vm9, %v1566_v57, %v1563_v16  ;;  %v1575_v4 = vmul.f32 %v7214_v40, %v1574_v17  ;;  %vm7364_vm11 = vcmp.lt.f32.partialorder %v1576_v13, 0.0004427343 }
 0x268   :  { %v1592_v44 = vadd.f32 1.0, %v1591_v27  ;;  %vm1732_vm12 = vcmp.gt.f32.partialorder %v7140_v2, 20.0  ;;  %v1760_v63 = vsel %vm1728_vm6, %v7043_v20, %v1696_v51  ;;  %v1697_v1 = vmul.f32 0.01, %v1569_v41 }
 0x269   :  { %v1572_v49 = vmul.f32 0.6931472, %v5388_v21  ;;  %vm7372_vm14 = vcmp.lt.f32.partialorder %v1585_v18, 0.0004427343  ;;  %v5390_v15 = vpop.eup %5389  ;;  %4896 = vmatprep.mubr.msk.f32.mxu0 %vm2012_vm13, %v1760_v63  ;;  %v1584_v40 = vmul.f32 %v7208_v34, %v1583_v23  ;;  %v1594_v13 = vand.u32 2147483647, %v7253_v25 }
 0x26a   :  { %5395 = vlog2.f32 %v1606_v56  ;;  %v1615_v24 = vadd.f32 1.0, %v7257_v58  ;;  %v1761_v20 = vsel %vm1729_vm7, %v7038_v6, %v1697_v1  ;;  %v1581_v57 = vmul.f32 0.6931472, %v5390_v15 }
 0x26b   :  { %v1578_v10 = vsel %vm7364_vm11, %v1575_v4, %v1572_v49  ;;  %v1601_v17 = vadd.f32 1.0, %v1600_v54  ;;  %v5392_v9 = vpop.eup %5391  ;;  %4897 = vmatmul.mubr.msk.f32.gmra.mrb[50].mxu0 %vm2012_vm13, %v1761_v20  ;;  %v1593_v34 = vmul.f32 %v7253_v25, %v1592_v44  ;;  %v1609_v33 = vmul.f32 -0.5, %v7264_v42 }
 0x26c   :  { %v1698_v5 = vmul.f32 0.01, %v1578_v10  ;;  %5397 = vlog2.f32 %v1615_v24  ;;  %v1587_v37 = vsel %vm7372_vm14, %v1584_v40, %v1581_v57  ;;  %v1590_v27 = vmul.f32 0.6931472, %v5392_v9 }
 0x26d   :  { %v1603_v6 = vand.u32 2147483647, %v7244_v60  ;;  %v1624_v59 = vadd.f32 1.0, %v7280_v52  ;;  %v1699_v53 = vmul.f32 0.01, %v1587_v37  ;;  %v1618_v45 = vmul.f32 -0.5, %v7257_v58 }
 0x26e   :  { %v1762_v50 = vsel %vm1730_vm8, %v7072_v39, %v1698_v5  ;;  %vm1595_vm15 = vcmp.lt.f32.partialorder %v1594_v13, 0.0004427343  ;;  %v5394_v25 = vpop.eup %5393  ;;  %v1602_v14 = vmul.f32 %v7244_v60, %v1601_v17  ;;  %v1612_v29 = vand.u32 2147483647, %v7264_v42 }
 0x26f   :  { %4899 = vmatprep.mubr.msk.f32.mxu0 %vm2012_vm13, %v1762_v50  ;;  %v1596_v18 = vsel %vm1595_vm15, %v1593_v34, %v1590_v27  ;;  %5399 = vlog2.f32 %v1624_v59  ;;  %v1763_v16 = vsel %vm1731_vm10, %v7066_v0, %v1699_v53  ;;  %v1599_v48 = vmul.f32 0.6931472, %v5394_v25 }
 0x270   :  { %v1700_v23 = vmul.f32 0.01, %v1596_v18  ;;  %v1610_v39 = vadd.f32 1.0, %v1609_v33  ;;  %4900 = vmatmul.mubr.msk.f32.gmra.mrb[52].mxu0 %vm2012_vm13, %v1763_v16  ;;  %vm1604_vm1 = vcmp.lt.f32.partialorder %v1603_v6, 0.0004427343  ;;  %v1627_v51 = vmul.f32 -0.5, %v7280_v52 }
 0x271   :  { %v1621_v31 = vand.u32 2147483647, %v7257_v58  ;;  %v1633_v54 = vadd.f32 1.0, %v7272_v30  ;;  %v1605_v56 = vsel %vm1604_vm1, %v1602_v14, %v1599_v48  ;;  %v1619_v21 = vadd.f32 1.0, %v1618_v45 }
 0x272   :  { %v1764_v60 = vsel %vm1732_vm12, %v7114_v36, %v1700_v23  ;;  %v1642_v0 = vadd.f32 1.0, %v7307_v62  ;;  %vm1733_vm3 = vcmp.gt.f32.partialorder %v7111_v8, 20.0  ;;  %v1701_v28 = vmul.f32 0.01, %v1605_v56 }
 0x273   :  { %4902 = vmatprep.mubr.msk.f32.mxu0 %vm2012_vm13, %v1764_v60  ;;  %5401 = vlog2.f32 %v1633_v54  ;;  %v1611_v4 = vmul.f32 %v7264_v42, %v1610_v39  ;;  %vm7413_vm4 = vcmp.lt.f32.partialorder %v1612_v29, 0.0004427343  ;;  %v1651_v36 = vadd.f32 1.0, %v7296_v22  ;;  %v8944_v60 = vld [vmem:[#allocation19_spill] sm:$0xff] }
 0x274   :  { %v5396_v41 = vpop.eup %5395  ;;  %5403 = vlog2.f32 %v1642_v0  ;;  %v1765_v2 = vsel %vm1733_vm3, %v7098_v38, %v1701_v28  ;;  %v1628_v63 = vadd.f32 1.0, %v1627_v51  ;;  %v1636_v8 = vmul.f32 -0.5, %v7272_v30 }
 0x275   :  { %v1608_v44 = vmul.f32 0.6931472, %v5396_v41  ;;  %4903 = vmatmul.mubr.msk.f32.gmra.mrb[54].mxu0 %vm2012_vm13, %v1765_v2  ;;  %v1620_v49 = vmul.f32 %v7257_v58, %v1619_v21  ;;  %vm7422_vm5 = vcmp.lt.f32.partialorder %v1621_v31, 0.0004427343  ;;  %v1645_v19 = vmul.f32 -0.5, %v7307_v62  ;;  %v8945_v21 = vld [vmem:[#allocation5_spill] sm:$0xff] }
 0x276   :  { %v5398_v1 = vpop.eup %5397  ;;  %5405 = vlog2.f32 %v1651_v36  ;;  %v1630_v40 = vand.u32 2147483647, %v7280_v52  ;;  %v1660_v13 = vadd.f32 1.0, %v7337_v61  ;;  %vm1734_vm6 = vcmp.gt.f32.partialorder %v7159_v32, 20.0 }
 0x277   :  { %v1614_v15 = vsel %vm7413_vm4, %v1611_v4, %v1608_v44  ;;  %v1617_v38 = vmul.f32 0.6931472, %v5398_v1  ;;  %v1639_v58 = vand.u32 2147483647, %v7272_v30  ;;  %v1654_v20 = vmul.f32 -0.5, %v7296_v22  ;;  %v8946_v1 = vld [vmem:[#allocation6_spill] sm:$0xff] }
 0x278   :  { %v1702_v24 = vmul.f32 0.01, %v1614_v15  ;;  %v1629_v17 = vmul.f32 %v7280_v52, %v1628_v63  ;;  %v1637_v9 = vadd.f32 1.0, %v1636_v8  ;;  %5407 = vlog2.f32 %v1660_v13 }
 0x279   :  { %v5400_v10 = vpop.eup %5399  ;;  %v1623_v57 = vsel %vm7422_vm5, %v1620_v49, %v1617_v38  ;;  %v1646_v37 = vadd.f32 1.0, %v1645_v19  ;;  %vm1735_vm0 = vcmp.gt.f32.partialorder %v7148_v55, 20.0  ;;  %vm1631_vm7 = vcmp.lt.f32.partialorder %v1630_v40, 0.0004427343  ;;  %v8947_v19 = vld [vmem:[#allocation22_spill] sm:$0xff]  ;;  %v8948_v38 = vld [vmem:[#allocation7_spill] sm:$0xff] }
 0x27a   :  { %v1766_v5 = vsel %vm1734_vm6, %v7143_v43, %v1702_v24  ;;  %v1703_v34 = vmul.f32 0.01, %v1623_v57  ;;  %v1626_v33 = vmul.f32 0.6931472, %v5400_v10  ;;  %v1663_v32 = vmul.f32 -0.5, %v7337_v61  ;;  %v8949_v24 = vld [vmem:[#allocation8_spill] sm:$0xff] }
 0x27b   :  { %4905 = vmatprep.mubr.msk.f32.mxu0 %vm2012_vm13, %v1766_v5  ;;  %v1669_v27 = vadd.f32 1.0, %v7325_v3  ;;  %v1648_v52 = vand.u32 2147483647, %v7307_v62  ;;  %v1655_v50 = vadd.f32 1.0, %v1654_v20  ;;  %vm1736_vm8 = vcmp.gt.f32.partialorder %v7186_v26, 20.0  ;;  %v2926_v10 = vld [vmem:[%s8706_s8 + $0x30] sm:$0xff] }
 0x27c   :  { %v1767_v6 = vsel %vm1735_vm0, %v7130_v12, %v1703_v34  ;;  %v1632_v59 = vsel %vm1631_vm7, %v1629_v17, %v1626_v33  ;;  %vm7446_vm9 = vcmp.lt.f32.partialorder %v1639_v58, 0.0004427343  ;;  %v1638_v18 = vmul.f32 %v7272_v30, %v1637_v9  ;;  %v8950_v58 = vld [vmem:[#allocation23_spill] sm:$0xff]  ;;  %v7493_v17 = vld [vmem:[%s8705_s7] ss:$0 sm:$0xff] }
 0x27d   :  { %v5402_v53 = vpop.eup %5401  ;;  %4906 = vmatmul.mubr.msk.f32.gmra.mrb[56].mxu0 %vm2012_vm13, %v1767_v6  ;;  %v1704_v43 = vmul.f32 0.01, %v1632_v59  ;;  %5409 = vlog2.f32 %v1669_v27  ;;  %v1647_v12 = vmul.f32 %v7307_v62, %v1646_v37  ;;  %v1657_v14 = vand.u32 2147483647, %v7296_v22 }
 0x27e   :  { %v5404_v45 = vpop.eup %5403  ;;  %v1635_v25 = vmul.f32 0.6931472, %v5402_v53  ;;  %v1664_v26 = vadd.f32 1.0, %v1663_v32  ;;  %v1672_v23 = vmul.f32 -0.5, %v7325_v3  ;;  %vm1649_vm10 = vcmp.lt.f32.partialorder %v1648_v52, 0.0004427343 }
 0x27f   :  { %v1768_v29 = vsel %vm1736_vm8, %v7167_v35, %v1704_v43  ;;  %v1644_v16 = vmul.f32 0.6931472, %v5404_v45  ;;  %v1656_v31 = vmul.f32 %v7296_v22, %v1655_v50  ;;  %v1666_v54 = vand.u32 2147483647, %v7337_v61  ;;  %v2924_v22 = vld [vmem:[%s8706_s8 + $0x20] sm:$0xff] }
 0x280   :  { %v5406_v48 = vpop.eup %5405  ;;  %4908 = vmatprep.mubr.msk.f32.mxu0 %vm2012_vm13, %v1768_v29  ;;  %v1641_v39 = vsel %vm7446_vm9, %v1638_v18, %v1635_v25  ;;  %vm1737_vm11 = vcmp.gt.f32.partialorder %v8944_v60, 20.0  ;;  %vm1738_vm12 = vcmp.gt.f32.partialorder %v7212_v7, 20.0  ;;  %vm1658_vm14 = vcmp.lt.f32.partialorder %v1657_v14, 0.0004427343 }
 0x281   :  { %v1705_v30 = vmul.f32 0.01, %v1641_v39  ;;  %v1650_v51 = vsel %vm1649_vm10, %v1647_v12, %v1644_v16  ;;  %v1653_v62 = vmul.f32 0.6931472, %v5406_v48  ;;  %v1665_v41 = vmul.f32 %v7337_v61, %v1664_v26 }
 0x282   :  { %v1706_v35 = vmul.f32 0.01, %v1650_v51  ;;  %v5408_v56 = vpop.eup %5407  ;;  %v1673_v4 = vadd.f32 1.0, %v1672_v23  ;;  %v5095_v44 = vpack.c.bf16 %v2925_v46, %v2924_v22  ;;  %vm1667_vm15 = vcmp.lt.f32.partialorder %v1666_v54, 0.0004427343 }
 0x283   :  { %v1769_v0 = vsel %vm1737_vm11, %v8945_v21, %v1705_v30  ;;  %v1659_v28 = vsel %vm1658_vm14, %v1656_v31, %v1653_v62  ;;  %v1662_v2 = vmul.f32 0.6931472, %v5408_v56  ;;  %v1675_v61 = vand.u32 2147483647, %v7325_v3 }
 0x284   :  { %4909 = vmatmul.mubr.msk.f32.gmra.mrb[58].mxu0 %vm2012_vm13, %v1769_v0  ;;  %v1770_v7 = vsel %vm1738_vm12, %v7193_v11, %v1706_v35  ;;  %v1707_v36 = vmul.f32 0.01, %v1659_v28  ;;  %vm1739_vm1 = vcmp.gt.f32.partialorder %v7196_v47, 20.0  ;;  %5096 = vmatprep.subr.bf16.mxu1 %v5095_v44  ;;  %vm1740_vm3 = vcmp.gt.f32.partialorder %v8947_v19, 20.0 }
 0x285   :  { %4911 = vmatprep.mubr.msk.f32.mxu0 %vm2012_vm13, %v1770_v7  ;;  %v1668_v63 = vsel %vm1667_vm15, %v1665_v41, %v1662_v2  ;;  %5098 = vmatpush3.bf16.msra.mxu1 %v5095_v44  ;;  %v1674_v15 = vmul.f32 %v7325_v3, %v1673_v4  ;;  %vm1676_vm4 = vcmp.lt.f32.partialorder %v1675_v61, 0.0004427343  ;;  %vm1741_vm5 = vcmp.gt.f32.partialorder %v8949_v24, 20.0  ;;  %v2927_v3 = vld [vmem:[%s8706_s8 + $0x38] sm:$0xff] }
 0x286   :  { %v1771_v49 = vsel %vm1739_vm1, %v8946_v1, %v1707_v36  ;;  %v1708_v42 = vmul.f32 0.01, %v1668_v63  ;;  %v5099_v57 = vpack.c.bf16 %v2927_v3, %v2926_v10 }
 0x287   :  { %v5410_v8 = vpop.eup %5409 }
 0x288   :  { %4912 = vmatmul.mubr.msk.f32.gmra.mrb[60].mxu0 %vm2012_vm13, %v1771_v49  ;;  %v1671_v11 = vmul.f32 0.6931472, %v5410_v8  ;;  %v1772_v40 = vsel %vm1740_vm3, %v8948_v38, %v1708_v42  ;;  %5100 = vmatprep.subr.bf16.mxu1 %v5099_v57 }
 0x289   :  { %4914 = vmatprep.mubr.msk.f32.mxu0 %vm2012_vm13, %v1772_v40  ;;  %5102 = vmatpush3.bf16.msra.mxu1 %v5099_v57 }
 0x28a   :  { %v1677_v47 = vsel %vm1676_vm4, %v1674_v15, %v1671_v11 }
 0x28b   :  { %v1709_v13 = vmul.f32 0.01, %v1677_v47 }
 0x28d   :  { %v1773_v20 = vsel %vm1741_vm5, %v8950_v58, %v1709_v13 }
 0x28e   :  { %4915 = vmatmul.mubr.msk.f32.gmra.mrb[62].mxu0 %vm2012_vm13, %v1773_v20 }
 0x2dd   :  { %v4871_v9 = vpop.f32.mrb[32].mxu0 }
 0x2de   :  { %v2339_v5 = vmul.f32 0.70710677, %v4871_v9  ;;  %v2179_v34 = vpop.f32.mrb[33].mxu0 }
 0x2df   :  { %v2338_v33 = vmul.f32 0.70710677, %v2179_v34 }
 0x2e0   :  { %v7496_v37 = vadd.f32 %v7493_v17, %v2339_v5 }
 0x2e1   :  { %v7499_v32 = vadd.f32 %v7493_v17, %v2338_v33 }
 0x2e2   :  { %v7502_v27 = vmul.f32 100.0, %v7496_v37 }
 0x2e3   :  { %v7505_v6 = vmul.f32 100.0, %v7499_v32 }
 0x2e4   :  { %v2441_v59 = vmin.f32 %v7502_v27, 20.0  ;;  %vm2857_vm7 = vcmp.gt.f32.partialorder %v7502_v27, 20.0 }
 0x2e5   :  { %v2440_v52 = vmin.f32 %v7505_v6, 20.0  ;;  %vm2856_vm0 = vcmp.gt.f32.partialorder %v7505_v6, 20.0 }
 0x2e6   :  { %v2474_v50 = vmul.f32 1.442695, %v2441_v59 }
 0x2e7   :  { %v2472_v53 = vmul.f32 1.442695, %v2440_v52 }
 0x2e8   :  { %5411 = vpow2.f32 %v2474_v50 }
 0x2e9   :  { %5413 = vpow2.f32 %v2472_v53 }
 0x2f0   :  { %v4874_v55 = vpop.f32.mrb[34].mxu0 }
 0x2f1   :  { %v2341_v18 = vmul.f32 0.70710677, %v4874_v55  ;;  %v2189_v12 = vpop.f32.mrb[35].mxu0 }
 0x2f2   :  { %v5412_v43 = vpop.eup %5411  ;;  %v2340_v16 = vmul.f32 0.70710677, %v2189_v12 }
 0x2f3   :  { %v5414_v45 = vpop.eup %5413  ;;  %v2545_v25 = vadd.f32 1.0, %v5412_v43  ;;  %v7510_v29 = vadd.f32 %v7493_v17, %v2341_v18  ;;  %v2548_v23 = vmul.f32 -0.5, %v5412_v43  ;;  %v2551_v41 = vand.u32 2147483647, %v5412_v43 }
 0x2f4   :  { %v2536_v14 = vadd.f32 1.0, %v5414_v45  ;;  %v7516_v48 = vadd.f32 %v7493_v17, %v2340_v16  ;;  %v2539_v62 = vmul.f32 -0.5, %v5414_v45  ;;  %v2542_v36 = vand.u32 2147483647, %v5414_v45 }
 0x2f5   :  { %5415 = vlog2.f32 %v2545_v25  ;;  %v7513_v26 = vmul.f32 100.0, %v7510_v29  ;;  %v4877_v39 = vpop.f32.mrb[36].mxu0  ;;  %v2549_v21 = vadd.f32 1.0, %v2548_v23  ;;  %vm2552_vm13 = vcmp.lt.f32.partialorder %v2551_v41, 0.0004427343 }
 0x2f6   :  { %5417 = vlog2.f32 %v2536_v14  ;;  %v2343_v30 = vmul.f32 0.70710677, %v4877_v39  ;;  %v2199_v51 = vpop.f32.mrb[37].mxu0  ;;  %v7520_v54 = vmul.f32 100.0, %v7516_v48  ;;  %v2540_v22 = vadd.f32 1.0, %v2539_v62 }
 0x2f7   :  { %v2443_v31 = vmin.f32 %v7513_v26, 20.0  ;;  %v2342_v60 = vmul.f32 0.70710677, %v2199_v51  ;;  %v2550_v8 = vmul.f32 %v5412_v43, %v2549_v21  ;;  %vm2543_vm6 = vcmp.lt.f32.partialorder %v2542_v36, 0.0004427343 }
 0x2f8   :  { %v7523_v56 = vadd.f32 %v7493_v17, %v2343_v30  ;;  %v2442_v0 = vmin.f32 %v7520_v54, 20.0  ;;  %v2541_v19 = vmul.f32 %v5414_v45, %v2540_v22  ;;  %vm2859_vm10 = vcmp.gt.f32.partialorder %v7513_v26, 20.0 }
 0x2f9   :  { %v2478_v35 = vmul.f32 1.442695, %v2443_v31  ;;  %v7527_v28 = vadd.f32 %v7493_v17, %v2342_v60  ;;  %vm2858_vm11 = vcmp.gt.f32.partialorder %v7520_v54, 20.0 }
 0x2fa   :  { %v7530_v4 = vmul.f32 100.0, %v7523_v56  ;;  %v2476_v46 = vmul.f32 1.442695, %v2442_v0 }
 0x2fb   :  { %5419 = vpow2.f32 %v2478_v35  ;;  %v7533_v7 = vmul.f32 100.0, %v7527_v28 }
 0x2fc   :  { %v2445_v44 = vmin.f32 %v7530_v4, 20.0  ;;  %5421 = vpow2.f32 %v2476_v46  ;;  %vm2861_vm1 = vcmp.gt.f32.partialorder %v7530_v4, 20.0  ;;  %v3769_v4 = vld [vmem:[%s8708_s10 + $0x8] sm:$0xff] }
 0x2fd   :  { %v2444_v1 = vmin.f32 %v7533_v7, 20.0  ;;  %vm2860_vm15 = vcmp.gt.f32.partialorder %v7533_v7, 20.0 }
 0x2fe   :  { %v2482_v49 = vmul.f32 1.442695, %v2445_v44 }
 0x2ff   :  { %v5416_v2 = vpop.eup %5415  ;;  %v2480_v15 = vmul.f32 1.442695, %v2444_v1 }
 0x300   :  { %v5418_v61 = vpop.eup %5417  ;;  %v2547_v63 = vmul.f32 0.6931472, %v5416_v2  ;;  %5423 = vpow2.f32 %v2482_v49 }
 0x301   :  { %v2538_v42 = vmul.f32 0.6931472, %v5418_v61  ;;  %5425 = vpow2.f32 %v2480_v15  ;;  %v4880_v10 = vpop.f32.mrb[38].mxu0 }
 0x302   :  { %v2553_v11 = vsel %vm2552_vm13, %v2550_v8, %v2547_v63  ;;  %v2345_v57 = vmul.f32 0.70710677, %v4880_v10  ;;  %v2209_v9 = vpop.f32.mrb[39].mxu0 }
 0x303   :  { %v2825_v38 = vmul.f32 0.01, %v2553_v11  ;;  %v2544_v40 = vsel %vm2543_vm6, %v2541_v19, %v2538_v42  ;;  %v2344_v5 = vmul.f32 0.70710677, %v2209_v9 }
 0x304   :  { %v2824_v47 = vmul.f32 0.01, %v2544_v40  ;;  %v7544_v33 = vadd.f32 %v7493_v17, %v2345_v57 }
 0x305   :  { %v5420_v24 = vpop.eup %5419  ;;  %v2889_v58 = vsel %vm2857_vm7, %v7496_v37, %v2825_v38 }
 0x306   :  { %v2888_v13 = vsel %vm2856_vm0, %v7499_v32, %v2824_v47  ;;  %v2563_v20 = vadd.f32 1.0, %v5420_v24  ;;  %v5422_v3 = vpop.eup %5421  ;;  %v7547_v32 = vadd.f32 %v7493_v17, %v2344_v5  ;;  %v2566_v37 = vmul.f32 -0.5, %v5420_v24 }
 0x307   :  { %4933 = vmatprep.mubr.msk.f32.mxu1 %vm940_vm2, %v2888_v13  ;;  %v2554_v34 = vadd.f32 1.0, %v5422_v3  ;;  %v7550_v59 = vmul.f32 100.0, %v7544_v33  ;;  %v2557_v55 = vmul.f32 -0.5, %v5422_v3  ;;  %v2569_v12 = vand.u32 2147483647, %v5420_v24 }
 0x308   :  { %4934 = vmatmul.mubr.msk.f32.vlgmr.msra.gmra.mrb[32].mxu1 %vm940_vm2, %v2889_v58  ;;  %5427 = vlog2.f32 %v2563_v20  ;;  %v7553_v50 = vmul.f32 100.0, %v7547_v32  ;;  %v2567_v25 = vadd.f32 1.0, %v2566_v37  ;;  %v2560_v30 = vand.u32 2147483647, %v5422_v3 }
 0x309   :  { %5429 = vlog2.f32 %v2554_v34  ;;  %v2447_v43 = vmin.f32 %v7550_v59, 20.0  ;;  %v2558_v39 = vadd.f32 1.0, %v2557_v55  ;;  %vm7557_vm8 = vcmp.lt.f32.partialorder %v2569_v12, 0.0004427343 }
 0x30a   :  { %v5424_v27 = vpop.eup %5423  ;;  %v2446_v45 = vmin.f32 %v7553_v50, 20.0  ;;  %v2568_v62 = vmul.f32 %v5420_v24, %v2567_v25  ;;  %vm2561_vm9 = vcmp.lt.f32.partialorder %v2560_v30, 0.0004427343  ;;  %vm2862_vm5 = vcmp.gt.f32.partialorder %v7553_v50, 20.0 }
 0x30b   :  { %v5426_v6 = vpop.eup %5425  ;;  %v2581_v52 = vadd.f32 1.0, %v5424_v27  ;;  %v2486_v18 = vmul.f32 1.442695, %v2447_v43  ;;  %v2584_v16 = vmul.f32 -0.5, %v5424_v27  ;;  %v2559_v22 = vmul.f32 %v5422_v3, %v2558_v39 }
 0x30c   :  { %v2572_v53 = vadd.f32 1.0, %v5426_v6  ;;  %v2484_v14 = vmul.f32 1.442695, %v2446_v45  ;;  %v2575_v31 = vmul.f32 -0.5, %v5426_v6  ;;  %v2587_v36 = vand.u32 2147483647, %v5424_v27 }
 0x30d   :  { %5431 = vlog2.f32 %v2581_v52  ;;  %v2585_v0 = vadd.f32 1.0, %v2584_v16  ;;  %v2578_v44 = vand.u32 2147483647, %v5426_v6  ;;  %vm2863_vm13 = vcmp.gt.f32.partialorder %v7550_v59, 20.0 }
 0x30e   :  { %5433 = vlog2.f32 %v2572_v53  ;;  %v2576_v46 = vadd.f32 1.0, %v2575_v31  ;;  %vm2588_vm12 = vcmp.lt.f32.partialorder %v2587_v36, 0.0004427343 }
 0x30f   :  { %5435 = vpow2.f32 %v2486_v18  ;;  %v2586_v38 = vmul.f32 %v5424_v27, %v2585_v0  ;;  %vm2579_vm14 = vcmp.lt.f32.partialorder %v2578_v44, 0.0004427343 }
 0x310   :  { %5437 = vpow2.f32 %v2484_v14  ;;  %v2577_v13 = vmul.f32 %v5426_v6, %v2576_v46  ;;  %v3771_v14 = vld [vmem:[%s8708_s10 + $0x18] sm:$0xff] }
 0x311   :  { %v4883_v2 = vpop.f32.mrb[40].mxu0 }
 0x312   :  { %v5428_v23 = vpop.eup %5427  ;;  %v2347_v63 = vmul.f32 0.70710677, %v4883_v2  ;;  %v2219_v8 = vpop.f32.mrb[41].mxu0 }
 0x313   :  { %v2565_v51 = vmul.f32 0.6931472, %v5428_v23  ;;  %v5430_v35 = vpop.eup %5429  ;;  %v2346_v19 = vmul.f32 0.70710677, %v2219_v8 }
 0x314   :  { %v2556_v41 = vmul.f32 0.6931472, %v5430_v35  ;;  %v7566_v40 = vadd.f32 %v7493_v17, %v2347_v63 }
 0x315   :  { %v2571_v21 = vsel %vm7557_vm8, %v2568_v62, %v2565_v51  ;;  %v7569_v24 = vadd.f32 %v7493_v17, %v2346_v19 }
 0x316   :  { %v2562_v1 = vsel %vm2561_vm9, %v2559_v22, %v2556_v41  ;;  %v2827_v49 = vmul.f32 0.01, %v2571_v21  ;;  %v7575_v10 = vmul.f32 100.0, %v7566_v40 }
 0x317   :  { %v5432_v61 = vpop.eup %5431  ;;  %v2826_v11 = vmul.f32 0.01, %v2562_v1  ;;  %v7582_v34 = vmul.f32 100.0, %v7569_v24 }
 0x318   :  { %v5434_v42 = vpop.eup %5433  ;;  %v2583_v15 = vmul.f32 0.6931472, %v5432_v61  ;;  %v2891_v3 = vsel %vm2859_vm10, %v7510_v29, %v2827_v49  ;;  %v2449_v37 = vmin.f32 %v7575_v10, 20.0  ;;  %vm2865_vm7 = vcmp.gt.f32.partialorder %v7575_v10, 20.0 }
 0x319   :  { %v2574_v47 = vmul.f32 0.6931472, %v5434_v42  ;;  %v2890_v58 = vsel %vm2858_vm11, %v7516_v48, %v2826_v11  ;;  %v7572_v54 = vpop.eup %5435  ;;  %v2448_v26 = vmin.f32 %v7582_v34, 20.0  ;;  %vm2864_vm0 = vcmp.gt.f32.partialorder %v7582_v34, 20.0 }
 0x31a   :  { %v2589_v20 = vsel %vm2588_vm12, %v2586_v38, %v2583_v15  ;;  %4936 = vmatprep.mubr.msk.f32.mxu1 %vm940_vm2, %v2890_v58  ;;  %v5438_v5 = vpop.eup %5437  ;;  %v2599_v27 = vadd.f32 1.0, %v7572_v54  ;;  %v2490_v55 = vmul.f32 1.442695, %v2449_v37  ;;  %v2602_v31 = vmul.f32 -0.5, %v7572_v54 }
 0x31b   :  { %v2580_v57 = vsel %vm2579_vm14, %v2577_v13, %v2574_v47  ;;  %v2829_v9 = vmul.f32 0.01, %v2589_v20  ;;  %4937 = vmatmul.mubr.msk.f32.gmra.mrb[34].mxu1 %vm940_vm2, %v2891_v3  ;;  %v2590_v52 = vadd.f32 1.0, %v5438_v5  ;;  %v2488_v18 = vmul.f32 1.442695, %v2448_v26 }
 0x31c   :  { %v2828_v48 = vmul.f32 0.01, %v2580_v57  ;;  %v2593_v23 = vmul.f32 -0.5, %v5438_v5  ;;  %v2596_v22 = vand.u32 2147483647, %v5438_v5  ;;  %v2603_v46 = vadd.f32 1.0, %v2602_v31 }
 0x31d   :  { %v2893_v25 = vsel %vm2861_vm1, %v7523_v56, %v2829_v9  ;;  %5439 = vlog2.f32 %v2590_v52  ;;  %v3770_v56 = vld [vmem:[%s8708_s10 + $0x10] sm:$0xff]  ;;  %v2605_v44 = vand.u32 2147483647, %v7572_v54 }
 0x31e   :  { %v2892_v43 = vsel %vm2860_vm15, %v7527_v28, %v2828_v48  ;;  %5441 = vlog2.f32 %v2599_v27  ;;  %v3768_v28 = vld [vmem:[%s8708_s10] sm:$0xff]  ;;  %v5107_v62 = vpack.c.bf16 %v3771_v14, %v3770_v56  ;;  %v2594_v21 = vadd.f32 1.0, %v2593_v23 }
 0x31f   :  { %v4886_v6 = vpop.f32.mrb[42].mxu0  ;;  %4939 = vmatprep.mubr.msk.f32.mxu1 %vm940_vm2, %v2892_v43  ;;  %5443 = vpow2.f32 %v2490_v55  ;;  %v5103_v30 = vpack.c.bf16 %v3769_v4, %v3768_v28  ;;  %vm2597_vm3 = vcmp.lt.f32.partialorder %v2596_v22, 0.0004427343  ;;  %v2604_v38 = vmul.f32 %v7572_v54, %v2603_v46 }
 0x320   :  { %v2349_v29 = vmul.f32 0.70710677, %v4886_v6  ;;  %v2229_v53 = vpop.f32.mrb[43].mxu0  ;;  %4940 = vmatmul.mubr.msk.f32.gmra.mrb[36].mxu1 %vm940_vm2, %v2893_v25  ;;  %5445 = vpow2.f32 %v2488_v18  ;;  %v2595_v42 = vmul.f32 %v5438_v5, %v2594_v21  ;;  %vm2606_vm4 = vcmp.lt.f32.partialorder %v2605_v44, 0.0004427343 }
 0x321   :  { %v2348_v45 = vmul.f32 0.70710677, %v2229_v53  ;;  %5104 = vmatprep.subr.bf16.mxu1 %v5103_v30 }
 0x322   :  { %v7594_v12 = vadd.f32 %v7493_v17, %v2349_v29  ;;  %5106 = vmatpush3.bf16.msra.mxu1 %v5103_v30 }
 0x323   :  { %v7604_v7 = vadd.f32 %v7493_v17, %v2348_v45  ;;  %5108 = vmatprep.subr.bf16.mxu1 %v5107_v62 }
 0x324   :  { %v7613_v16 = vmul.f32 100.0, %v7594_v12 }
 0x325   :  { %v7616_v39 = vmul.f32 100.0, %v7604_v7 }
 0x326   :  { %v2451_v51 = vmin.f32 %v7613_v16, 20.0  ;;  %5110 = vmatpush3.bf16.msra.mxu1 %v5107_v62  ;;  %vm2867_vm10 = vcmp.gt.f32.partialorder %v7613_v16, 20.0 }
 0x327   :  { %v2450_v60 = vmin.f32 %v7616_v39, 20.0  ;;  %v4889_v41 = vpop.f32.mrb[44].mxu0  ;;  %v5440_v61 = vpop.eup %5439  ;;  %vm2866_vm12 = vcmp.gt.f32.partialorder %v7616_v39, 20.0 }
 0x328   :  { %v2494_v35 = vmul.f32 1.442695, %v2451_v51  ;;  %v2351_v36 = vmul.f32 0.70710677, %v4889_v41  ;;  %v2239_v2 = vpop.f32.mrb[45].mxu0  ;;  %v5442_v8 = vpop.eup %5441 }
 0x329   :  { %v2492_v0 = vmul.f32 1.442695, %v2450_v60  ;;  %v2350_v63 = vmul.f32 0.70710677, %v2239_v2  ;;  %v2592_v49 = vmul.f32 0.6931472, %v5440_v61  ;;  %v7625_v19 = vpop.eup %5443 }
 0x32a   :  { %5447 = vpow2.f32 %v2494_v35  ;;  %v7623_v1 = vadd.f32 %v7493_v17, %v2351_v36  ;;  %v2601_v15 = vmul.f32 0.6931472, %v5442_v8  ;;  %v5446_v47 = vpop.eup %5445  ;;  %v2617_v20 = vadd.f32 1.0, %v7625_v19 }
 0x32b   :  { %5449 = vpow2.f32 %v2492_v0  ;;  %v7628_v11 = vadd.f32 %v7493_v17, %v2350_v63  ;;  %v2598_v58 = vsel %vm2597_vm3, %v2595_v42, %v2592_v49  ;;  %v2608_v5 = vadd.f32 1.0, %v5446_v47 }
 0x32c   :  { %v7632_v13 = vmul.f32 100.0, %v7623_v1  ;;  %v2830_v57 = vmul.f32 0.01, %v2598_v58  ;;  %v2607_v9 = vsel %vm2606_vm4, %v2604_v38, %v2601_v15  ;;  %v2611_v50 = vmul.f32 -0.5, %v5446_v47 }
 0x32d   :  { %v7636_v3 = vmul.f32 100.0, %v7628_v11  ;;  %v2831_v48 = vmul.f32 0.01, %v2607_v9  ;;  %5451 = vlog2.f32 %v2608_v5  ;;  %v2614_v53 = vand.u32 2147483647, %v5446_v47 }
 0x32e   :  { %v2894_v54 = vsel %vm2862_vm5, %v7547_v32, %v2830_v57  ;;  %v2453_v6 = vmin.f32 %v7632_v13, 20.0  ;;  %5453 = vlog2.f32 %v2617_v20  ;;  %v2620_v32 = vmul.f32 -0.5, %v7625_v19 }
 0x32f   :  { %v2452_v27 = vmin.f32 %v7636_v3, 20.0  ;;  %4942 = vmatprep.mubr.msk.f32.mxu1 %vm940_vm2, %v2894_v54  ;;  %v2895_v37 = vsel %vm2863_vm13, %v7544_v33, %v2831_v48  ;;  %v2612_v18 = vadd.f32 1.0, %v2611_v50  ;;  %v2623_v14 = vand.u32 2147483647, %v7625_v19 }
 0x330   :  { %4943 = vmatmul.mubr.msk.f32.gmra.mrb[38].mxu1 %vm940_vm2, %v2895_v37  ;;  %v2498_v33 = vmul.f32 1.442695, %v2453_v6  ;;  %v2621_v56 = vadd.f32 1.0, %v2620_v32  ;;  %vm7658_vm6 = vcmp.lt.f32.partialorder %v2614_v53, 0.0004427343  ;;  %vm2868_vm15 = vcmp.gt.f32.partialorder %v7636_v3, 20.0 }
 0x331   :  { %v2496_v52 = vmul.f32 1.442695, %v2452_v27  ;;  %v2613_v41 = vmul.f32 %v5446_v47, %v2612_v18  ;;  %vm7676_vm8 = vcmp.lt.f32.partialorder %v2623_v14, 0.0004427343  ;;  %vm2869_vm3 = vcmp.gt.f32.partialorder %v7632_v13, 20.0 }
 0x332   :  { %v2622_v44 = vmul.f32 %v7625_v19, %v2621_v56 }
 0x333   :  { %5455 = vpow2.f32 %v2496_v52 }
 0x334   :  { %v7646_v26 = vpop.eup %5447 }
 0x335   :  { %v7648_v29 = vpop.eup %5449  ;;  %v2635_v59 = vadd.f32 1.0, %v7646_v26  ;;  %v4892_v55 = vpop.f32.mrb[46].mxu0  ;;  %v2638_v28 = vmul.f32 -0.5, %v7646_v26  ;;  %v2641_v63 = vand.u32 2147483647, %v7646_v26 }
 0x336   :  { %v2626_v43 = vadd.f32 1.0, %v7648_v29  ;;  %v2353_v45 = vmul.f32 0.70710677, %v4892_v55  ;;  %v2249_v25 = vpop.f32.mrb[47].mxu0  ;;  %v2629_v62 = vmul.f32 -0.5, %v7648_v29 }
 0x337   :  { %5457 = vlog2.f32 %v2635_v59  ;;  %v2352_v4 = vmul.f32 0.70710677, %v2249_v25  ;;  %v5452_v30 = vpop.eup %5451  ;;  %v2632_v60 = vand.u32 2147483647, %v7648_v29  ;;  %v2639_v22 = vadd.f32 1.0, %v2638_v28 }
 0x338   :  { %5459 = vlog2.f32 %v2626_v43  ;;  %v7656_v23 = vadd.f32 %v7493_v17, %v2353_v45  ;;  %v2610_v0 = vmul.f32 0.6931472, %v5452_v30  ;;  %v5454_v46 = vpop.eup %5453  ;;  %v2630_v20 = vadd.f32 1.0, %v2629_v62 }
 0x339   :  { %5461 = vpow2.f32 %v2498_v33  ;;  %v7664_v51 = vadd.f32 %v7493_v17, %v2352_v4  ;;  %v2619_v15 = vmul.f32 0.6931472, %v5454_v46  ;;  %vm7686_vm9 = vcmp.lt.f32.partialorder %v2632_v60, 0.0004427343 }
 0x33a   :  { %v7670_v35 = vmul.f32 100.0, %v7656_v23  ;;  %v4895_v21 = vpop.f32.mrb[48].mxu0  ;;  %v2616_v42 = vsel %vm7658_vm6, %v2613_v41, %v2610_v0  ;;  %v2640_v27 = vmul.f32 %v7646_v26, %v2639_v22  ;;  %v2631_v34 = vmul.f32 %v7648_v29, %v2630_v20 }
 0x33b   :  { %v7673_v36 = vmul.f32 100.0, %v7664_v51  ;;  %v2259_v2 = vpop.f32.mrb[49].mxu0  ;;  %v2355_v8 = vmul.f32 0.70710677, %v4895_v21  ;;  %v2832_v58 = vmul.f32 0.01, %v2616_v42  ;;  %v2625_v48 = vsel %vm7676_vm8, %v2622_v44, %v2619_v15 }
 0x33c   :  { %v2354_v49 = vmul.f32 0.70710677, %v2259_v2  ;;  %v2455_v57 = vmin.f32 %v7670_v35, 20.0  ;;  %v2833_v33 = vmul.f32 0.01, %v2625_v48  ;;  %vm2871_vm13 = vcmp.gt.f32.partialorder %v7670_v35, 20.0 }
 0x33d   :  { %v7683_v38 = vpop.eup %5455  ;;  %v2454_v47 = vmin.f32 %v7673_v36, 20.0  ;;  %v2896_v50 = vsel %vm2864_vm0, %v7569_v24, %v2832_v58  ;;  %v7703_v53 = vadd.f32 %v7493_v17, %v2355_v8  ;;  %vm2642_vm11 = vcmp.lt.f32.partialorder %v2641_v63, 0.0004427343 }
 0x33e   :  { %v7692_v9 = vadd.f32 %v7493_v17, %v2354_v49  ;;  %v4898_v5 = vpop.f32.mrb[50].mxu0  ;;  %v2644_v32 = vadd.f32 1.0, %v7683_v38  ;;  %4945 = vmatprep.mubr.msk.f32.mxu1 %vm940_vm2, %v2896_v50  ;;  %v2897_v18 = vsel %vm2865_vm7, %v7566_v40, %v2833_v33  ;;  %v2502_v56 = vmul.f32 1.442695, %v2455_v57 }
 0x33f   :  { %v2500_v37 = vmul.f32 1.442695, %v2454_v47  ;;  %v2357_v6 = vmul.f32 0.70710677, %v4898_v5  ;;  %v2269_v52 = vpop.f32.mrb[51].mxu0  ;;  %4946 = vmatmul.mubr.msk.f32.gmra.mrb[40].mxu1 %vm940_vm2, %v2897_v18  ;;  %v7726_v29 = vmul.f32 100.0, %v7703_v53 }
 0x340   :  { %v7706_v43 = vmul.f32 100.0, %v7692_v9  ;;  %v2356_v26 = vmul.f32 0.70710677, %v2269_v52  ;;  %v2647_v63 = vmul.f32 -0.5, %v7683_v38  ;;  %v2650_v20 = vand.u32 2147483647, %v7683_v38 }
 0x341   :  { %v5458_v54 = vpop.eup %5457  ;;  %5463 = vpow2.f32 %v2500_v37  ;;  %v7710_v55 = vadd.f32 %v7493_v17, %v2357_v6  ;;  %v2457_v8 = vmin.f32 %v7726_v29, 20.0  ;;  %vm2870_vm4 = vcmp.gt.f32.partialorder %v7673_v36, 20.0 }
 0x342   :  { %v5460_v59 = vpop.eup %5459  ;;  %v2456_v45 = vmin.f32 %v7706_v43, 20.0  ;;  %v7715_v25 = vadd.f32 %v7493_v17, %v2356_v26  ;;  %v2637_v28 = vmul.f32 0.6931472, %v5458_v54  ;;  %5465 = vlog2.f32 %v2644_v32 }
 0x343   :  { %v2628_v24 = vmul.f32 0.6931472, %v5460_v59  ;;  %v7720_v4 = vpop.eup %5461  ;;  %v4901_v14 = vpop.f32.mrb[52].mxu0  ;;  %v7729_v30 = vmul.f32 100.0, %v7710_v55  ;;  %5467 = vpow2.f32 %v2502_v56  ;;  %v2648_v57 = vadd.f32 1.0, %v2647_v63 }
 0x344   :  { %v2359_v10 = vmul.f32 0.70710677, %v4901_v14  ;;  %v2279_v40 = vpop.f32.mrb[53].mxu0  ;;  %v2643_v62 = vsel %vm2642_vm11, %v2640_v27, %v2637_v28  ;;  %v7732_v60 = vmul.f32 100.0, %v7715_v25  ;;  %v2504_v41 = vmul.f32 1.442695, %v2456_v45 }
 0x345   :  { %v2634_v31 = vsel %vm7686_vm9, %v2631_v34, %v2628_v24  ;;  %v2358_v21 = vmul.f32 0.70710677, %v2279_v40  ;;  %v2835_v46 = vmul.f32 0.01, %v2643_v62  ;;  %v2653_v2 = vadd.f32 1.0, %v7720_v4 }
 0x346   :  { %v2834_v0 = vmul.f32 0.01, %v2634_v31  ;;  %v7736_v22 = vadd.f32 %v7493_v17, %v2359_v10  ;;  %v2459_v49 = vmin.f32 %v7729_v30, 20.0  ;;  %v2458_v47 = vmin.f32 %v7732_v60, 20.0 }
 0x347   :  { %v7740_v44 = vadd.f32 %v7493_v17, %v2358_v21  ;;  %v2899_v15 = vsel %vm2867_vm10, %v7594_v12, %v2835_v46  ;;  %5469 = vpow2.f32 %v2504_v41  ;;  %v2506_v16 = vmul.f32 1.442695, %v2457_v8 }
 0x348   :  { %v2898_v61 = vsel %vm2866_vm12, %v7604_v7, %v2834_v0  ;;  %v7747_v39 = vmul.f32 100.0, %v7736_v22  ;;  %v4904_v42 = vpop.f32.mrb[54].mxu0  ;;  %5471 = vlog2.f32 %v2653_v2  ;;  %v2510_v54 = vmul.f32 1.442695, %v2459_v49 }
 0x349   :  { %4948 = vmatprep.mubr.msk.f32.mxu1 %vm940_vm2, %v2898_v61  ;;  %v2361_v58 = vmul.f32 0.70710677, %v4904_v42  ;;  %v2289_v7 = vpop.f32.mrb[55].mxu0  ;;  %v7760_v27 = vmul.f32 100.0, %v7740_v44  ;;  %v2508_v52 = vmul.f32 1.442695, %v2458_v47  ;;  %v2649_v33 = vmul.f32 %v7683_v38, %v2648_v57 }
 0x34a   :  { %4949 = vmatmul.mubr.msk.f32.gmra.mrb[42].mxu1 %vm940_vm2, %v2899_v15  ;;  %v2360_v19 = vmul.f32 0.70710677, %v2289_v7  ;;  %v2461_v48 = vmin.f32 %v7747_v39, 20.0  ;;  %vm7768_vm14 = vcmp.lt.f32.partialorder %v2650_v20, 0.0004427343  ;;  %v2656_v24 = vmul.f32 -0.5, %v7720_v4 }
 0x34b   :  { %v7756_v5 = vpop.eup %5463  ;;  %v7763_v12 = vadd.f32 %v7493_v17, %v2361_v58  ;;  %v2460_v45 = vmin.f32 %v7760_v27, 20.0  ;;  %v2659_v10 = vand.u32 2147483647, %v7720_v4  ;;  %vm2872_vm7 = vcmp.gt.f32.partialorder %v7706_v43, 20.0 }
 0x34c   :  { %v7766_v37 = vadd.f32 %v7493_v17, %v2360_v19  ;;  %v5466_v6 = vpop.eup %5465  ;;  %v2662_v32 = vadd.f32 1.0, %v7756_v5  ;;  %v2514_v34 = vmul.f32 1.442695, %v2461_v48  ;;  %v2665_v21 = vmul.f32 -0.5, %v7756_v5 }
 0x34d   :  { %v7774_v59 = vmul.f32 100.0, %v7763_v12  ;;  %v2646_v26 = vmul.f32 0.6931472, %v5466_v6  ;;  %v7786_v40 = vpop.eup %5467  ;;  %v2657_v46 = vadd.f32 1.0, %v2656_v24  ;;  %v2512_v2 = vmul.f32 1.442695, %v2460_v45 }
 0x34e   :  { %v7780_v18 = vmul.f32 100.0, %v7766_v37  ;;  %5473 = vlog2.f32 %v2662_v32  ;;  %v2671_v49 = vadd.f32 1.0, %v7786_v40  ;;  %vm7805_vm1 = vcmp.lt.f32.partialorder %v2659_v10, 0.0004427343 }
 0x34f   :  { %v2652_v31 = vsel %vm7768_vm14, %v2649_v33, %v2646_v26  ;;  %5475 = vpow2.f32 %v2506_v16  ;;  %v2463_v0 = vmin.f32 %v7774_v59, 20.0  ;;  %v2658_v19 = vmul.f32 %v7720_v4, %v2657_v46 }
 0x350   :  { %v4907_v28 = vpop.f32.mrb[56].mxu0  ;;  %v2836_v62 = vmul.f32 0.01, %v2652_v31  ;;  %5477 = vpow2.f32 %v2510_v54  ;;  %v2462_v3 = vmin.f32 %v7780_v18, 20.0  ;;  %v2668_v4 = vand.u32 2147483647, %v7756_v5 }
 0x351   :  { %v2363_v56 = vmul.f32 0.70710677, %v4907_v28  ;;  %v2299_v14 = vpop.f32.mrb[57].mxu0  ;;  %v7795_v63 = vpop.eup %5469  ;;  %5479 = vpow2.f32 %v2508_v52  ;;  %v2518_v58 = vmul.f32 1.442695, %v2463_v0  ;;  %v2674_v33 = vmul.f32 -0.5, %v7786_v40 }
 0x352   :  { %v2362_v38 = vmul.f32 0.70710677, %v2299_v14  ;;  %v2900_v61 = vsel %vm2868_vm15, %v7628_v11, %v2836_v62  ;;  %v5472_v42 = vpop.eup %5471  ;;  %5481 = vpow2.f32 %v2514_v34  ;;  %v2666_v11 = vadd.f32 1.0, %v2665_v21 }
 0x353   :  { %v7791_v41 = vadd.f32 %v7493_v17, %v2363_v56  ;;  %4951 = vmatprep.mubr.msk.f32.mxu1 %vm940_vm2, %v2900_v61  ;;  %v2655_v20 = vmul.f32 0.6931472, %v5472_v42  ;;  %5483 = vlog2.f32 %v2671_v49  ;;  %v2516_v57 = vmul.f32 1.442695, %v2462_v3 }
 0x354   :  { %v7798_v8 = vadd.f32 %v7493_v17, %v2362_v38  ;;  %5485 = vpow2.f32 %v2512_v2  ;;  %v2680_v50 = vadd.f32 1.0, %v7795_v63  ;;  %v2667_v45 = vmul.f32 %v7756_v5, %v2666_v11 }
 0x355   :  { %v7803_v15 = vmul.f32 100.0, %v7791_v41  ;;  %v2661_v52 = vsel %vm7805_vm1, %v2658_v19, %v2655_v20  ;;  %5487 = vpow2.f32 %v2518_v58  ;;  %v2677_v38 = vand.u32 2147483647, %v7786_v40 }
 0x356   :  { %v7812_v54 = vmul.f32 100.0, %v7798_v8  ;;  %v2837_v26 = vmul.f32 0.01, %v2661_v52  ;;  %5489 = vlog2.f32 %v2680_v50  ;;  %vm2669_vm5 = vcmp.lt.f32.partialorder %v2668_v4, 0.0004427343 }
 0x357   :  { %v4910_v7 = vpop.f32.mrb[58].mxu0  ;;  %v2465_v32 = vmin.f32 %v7803_v15, 20.0  ;;  %v2675_v13 = vadd.f32 1.0, %v2674_v33  ;;  %v2683_v42 = vmul.f32 -0.5, %v7795_v63  ;;  %5491 = vpow2.f32 %v2516_v57 }
 0x358   :  { %v2365_v48 = vmul.f32 0.70710677, %v4910_v7  ;;  %v2309_v16 = vpop.f32.mrb[59].mxu0  ;;  %v5474_v28 = vpop.eup %5473  ;;  %v2901_v10 = vsel %vm2869_vm3, %v7623_v1, %v2837_v26  ;;  %v2464_v21 = vmin.f32 %v7812_v54, 20.0  ;;  %vm7860_vm6 = vcmp.lt.f32.partialorder %v2677_v38, 0.0004427343 }
 0x359   :  { %v2364_v6 = vmul.f32 0.70710677, %v2309_v16  ;;  %v7832_v62 = vpop.eup %5475  ;;  %4952 = vmatmul.mubr.msk.f32.gmra.mrb[44].mxu1 %vm940_vm2, %v2901_v10  ;;  %v2664_v5 = vmul.f32 0.6931472, %v5474_v28  ;;  %v2522_v2 = vmul.f32 1.442695, %v2465_v32  ;;  %v2676_v57 = vmul.f32 %v7786_v40, %v2675_v13 }
 0x35a   :  { %v7821_v24 = vadd.f32 %v7493_v17, %v2365_v48  ;;  %v7836_v46 = vpop.eup %5477  ;;  %v2689_v20 = vadd.f32 1.0, %v7832_v62  ;;  %v2520_v48 = vmul.f32 1.442695, %v2464_v21  ;;  %v2684_v28 = vadd.f32 1.0, %v2683_v42 }
 0x35b   :  { %v4913_v34 = vpop.f32.mrb[60].mxu0  ;;  %v7826_v56 = vadd.f32 %v7493_v17, %v2364_v6  ;;  %v7841_v1 = vpop.eup %5479  ;;  %v2670_v49 = vsel %vm2669_vm5, %v2667_v45, %v2664_v5  ;;  %5493 = vpow2.f32 %v2522_v2  ;;  %v2686_v21 = vand.u32 2147483647, %v7795_v63 }
 0x35c   :  { %v2367_v14 = vmul.f32 0.70710677, %v4913_v34  ;;  %v2319_v31 = vpop.f32.mrb[61].mxu0  ;;  %v7844_v61 = vmul.f32 100.0, %v7821_v24  ;;  %v7848_v47 = vpop.eup %5481  ;;  %v2838_v7 = vmul.f32 0.01, %v2670_v49  ;;  %5495 = vlog2.f32 %v2689_v20 }
 0x35d   :  { %v2366_v0 = vmul.f32 0.70710677, %v2319_v31  ;;  %v7851_v11 = vmul.f32 100.0, %v7826_v56  ;;  %v5484_v19 = vpop.eup %5483  ;;  %5497 = vpow2.f32 %v2520_v48  ;;  %v2692_v2 = vmul.f32 -0.5, %v7832_v62 }
 0x35e   :  { %v7839_v3 = vadd.f32 %v7493_v17, %v2367_v14  ;;  %v7864_v50 = vpop.eup %5485  ;;  %v2902_v4 = vsel %vm2870_vm4, %v7664_v51, %v2838_v7  ;;  %v2467_v33 = vmin.f32 %v7844_v61, 20.0  ;;  %v2673_v45 = vmul.f32 0.6931472, %v5484_v19 }
 0x35f   :  { %v7854_v58 = vadd.f32 %v7493_v17, %v2366_v0  ;;  %4954 = vmatprep.mubr.msk.f32.mxu1 %vm940_vm2, %v2902_v4  ;;  %v2466_v14 = vmin.f32 %v7851_v11, 20.0  ;;  %v7879_v36 = vpop.eup %5487  ;;  %v2698_v7 = vadd.f32 1.0, %v7841_v1  ;;  %vm2687_vm0 = vcmp.lt.f32.partialorder %v2686_v21, 0.0004427343 }
 0x360   :  { %v7858_v16 = vmul.f32 100.0, %v7839_v3  ;;  %v2679_v38 = vsel %vm7860_vm6, %v2676_v57, %v2673_v45  ;;  %v5490_v13 = vpop.eup %5489  ;;  %v2526_v49 = vmul.f32 1.442695, %v2467_v33  ;;  %v2693_v4 = vadd.f32 1.0, %v2692_v2 }
 0x361   :  { %v4916_v6 = vpop.f32.mrb[62].mxu0  ;;  %v7874_v31 = vmul.f32 100.0, %v7854_v58  ;;  %v2839_v5 = vmul.f32 0.01, %v2679_v38  ;;  %v2524_v20 = vmul.f32 1.442695, %v2466_v14  ;;  %5499 = vlog2.f32 %v2698_v7  ;;  %v7905_v33 = vpop.eup %5491 }
 0x362   :  { %v2369_v32 = vmul.f32 0.70710677, %v4916_v6  ;;  %v2329_v26 = vpop.f32.mrb[63].mxu0  ;;  %v2469_v51 = vmin.f32 %v7858_v16, 20.0  ;;  %v2682_v6 = vmul.f32 0.6931472, %v5490_v13  ;;  %5501 = vpow2.f32 %v2526_v49 }
 0x363   :  { %v2368_v34 = vmul.f32 0.70710677, %v2329_v26  ;;  %v2468_v19 = vmin.f32 %v7874_v31, 20.0  ;;  %v2903_v48 = vsel %vm2871_vm13, %v7656_v23, %v2839_v5  ;;  %v2707_v57 = vadd.f32 1.0, %v7836_v46 }
 0x364   :  { %v7877_v10 = vadd.f32 %v7493_v17, %v2369_v32  ;;  %v2530_v52 = vmul.f32 1.442695, %v2469_v51  ;;  %4955 = vmatmul.mubr.msk.f32.gmra.mrb[46].mxu1 %vm940_vm2, %v2903_v48  ;;  %5503 = vpow2.f32 %v2524_v20  ;;  %v2716_v38 = vadd.f32 1.0, %v7864_v50 }
 0x365   :  { %v7883_v40 = vadd.f32 %v7493_v17, %v2368_v34  ;;  %v2685_v17 = vmul.f32 %v7795_v63, %v2684_v28  ;;  %v2701_v63 = vmul.f32 -0.5, %v7841_v1  ;;  %v7908_v34 = vpop.eup %5493  ;;  %v2528_v45 = vmul.f32 1.442695, %v2468_v19 }
 0x366   :  { %v7889_v0 = vmul.f32 100.0, %v7877_v10  ;;  %v2695_v28 = vand.u32 2147483647, %v7832_v62  ;;  %5505 = vpow2.f32 %v2530_v52  ;;  %v5496_v21 = vpop.eup %5495  ;;  %v2694_v5 = vmul.f32 %v7832_v62, %v2693_v4 }
 0x367   :  { %v7893_v42 = vmul.f32 100.0, %v7883_v40  ;;  %v2688_v26 = vsel %vm2687_vm0, %v2685_v17, %v2682_v6  ;;  %v2702_v2 = vadd.f32 1.0, %v2701_v63  ;;  %5507 = vlog2.f32 %v2707_v57  ;;  %v7917_v43 = vpop.eup %5497 }
 0x368   :  { %v2471_v32 = vmin.f32 %v7889_v0, 20.0  ;;  %v2840_v23 = vmul.f32 0.01, %v2688_v26  ;;  %v2691_v49 = vmul.f32 0.6931472, %v5496_v21  ;;  %v2710_v17 = vmul.f32 -0.5, %v7836_v46 }
 0x369   :  { %v2470_v35 = vmin.f32 %v7893_v42, 20.0  ;;  %5509 = vlog2.f32 %v2716_v38  ;;  %vm2696_vm8 = vcmp.lt.f32.partialorder %v2695_v28, 0.0004427343  ;;  %vm2873_vm9 = vcmp.gt.f32.partialorder %v7726_v29, 20.0 }
 0x36a   :  { %v2534_v14 = vmul.f32 1.442695, %v2471_v32  ;;  %v2904_v51 = vsel %vm2872_vm7, %v7692_v9, %v2840_v23  ;;  %5511 = vpow2.f32 %v2528_v45  ;;  %v2725_v9 = vadd.f32 1.0, %v7848_v47 }
 0x36b   :  { %4957 = vmatprep.mubr.msk.f32.mxu1 %vm940_vm2, %v2904_v51  ;;  %v2532_v13 = vmul.f32 1.442695, %v2470_v35  ;;  %v2697_v7 = vsel %vm2696_vm8, %v2694_v5, %v2691_v49  ;;  %v2704_v20 = vand.u32 2147483647, %v7841_v1  ;;  %vm2874_vm10 = vcmp.gt.f32.partialorder %v7732_v60, 20.0  ;;  %v5500_v6 = vpop.eup %5499 }
 0x36c   :  { %5513 = vpow2.f32 %v2534_v14  ;;  %v2841_v62 = vmul.f32 0.01, %v2697_v7  ;;  %v2713_v19 = vand.u32 2147483647, %v7836_v46  ;;  %v2719_v48 = vmul.f32 -0.5, %v7864_v50  ;;  %v7930_v35 = vpop.eup %5501 }
 0x36d   :  { %5515 = vlog2.f32 %v2725_v9  ;;  %v2703_v52 = vmul.f32 %v7841_v1, %v2702_v2  ;;  %v2711_v32 = vadd.f32 1.0, %v2710_v17  ;;  %v2734_v29 = vadd.f32 1.0, %v7905_v33 }
 0x36e   :  { %5517 = vpow2.f32 %v2532_v13  ;;  %v2905_v26 = vsel %vm2873_vm9, %v7703_v53, %v2841_v62  ;;  %v2700_v4 = vmul.f32 0.6931472, %v5500_v6  ;;  %v2722_v63 = vand.u32 2147483647, %v7864_v50  ;;  %v7935_v23 = vpop.eup %5503 }
 0x36f   :  { %v2728_v57 = vmul.f32 -0.5, %v7848_v47  ;;  %4958 = vmatmul.mubr.msk.f32.gmra.mrb[48].mxu1 %vm940_vm2, %v2905_v26  ;;  %vm2705_vm11 = vcmp.lt.f32.partialorder %v2704_v20, 0.0004427343  ;;  %vm2875_vm12 = vcmp.gt.f32.partialorder %v7729_v30, 20.0  ;;  %5519 = vlog2.f32 %v2734_v29 }
 0x370   :  { %v2743_v1 = vadd.f32 1.0, %v7879_v36  ;;  %v2706_v45 = vsel %vm2705_vm11, %v2703_v52, %v2700_v4  ;;  %vm7937_vm14 = vcmp.lt.f32.partialorder %v2713_v19, 0.0004427343  ;;  %v2720_v28 = vadd.f32 1.0, %v2719_v48  ;;  %v7942_v51 = vpop.eup %5505 }
 0x371   :  { %v2731_v14 = vand.u32 2147483647, %v7848_v47  ;;  %v2842_v38 = vmul.f32 0.01, %v2706_v45  ;;  %v2737_v21 = vmul.f32 -0.5, %v7905_v33  ;;  %v2752_v5 = vadd.f32 1.0, %v7917_v43  ;;  %v5508_v2 = vpop.eup %5507 }
 0x372   :  { %5521 = vlog2.f32 %v2743_v1  ;;  %v2712_v13 = vmul.f32 %v7836_v46, %v2711_v32  ;;  %vm7947_vm15 = vcmp.lt.f32.partialorder %v2722_v63, 0.0004427343  ;;  %vm2876_vm1 = vcmp.gt.f32.partialorder %v7760_v27, 20.0 }
 0x373   :  { %v2729_v17 = vadd.f32 1.0, %v2728_v57  ;;  %v5510_v9 = vpop.eup %5509  ;;  %v2906_v7 = vsel %vm2874_vm10, %v7715_v25, %v2842_v38  ;;  %v2709_v20 = vmul.f32 0.6931472, %v5508_v2  ;;  %vm2877_vm3 = vcmp.gt.f32.partialorder %v7747_v39, 20.0  ;;  %v3772_v38 = vld [vmem:[%s8708_s10 + $0x20] sm:$0xff] }
 0x374   :  { %v2746_v62 = vmul.f32 -0.5, %v7879_v36  ;;  %5523 = vlog2.f32 %v2752_v5  ;;  %v7957_v19 = vpop.eup %5511  ;;  %4960 = vmatprep.mubr.msk.f32.mxu1 %vm940_vm2, %v2906_v7  ;;  %v2718_v46 = vmul.f32 0.6931472, %v5510_v9  ;;  %v2721_v48 = vmul.f32 %v7864_v50, %v2720_v28 }
 0x375   :  { %vm7961_vm4 = vcmp.lt.f32.partialorder %v2731_v14, 0.0004427343  ;;  %v2740_v60 = vand.u32 2147483647, %v7905_v33  ;;  %v2715_v52 = vsel %vm7937_vm14, %v2712_v13, %v2709_v20  ;;  %v2738_v32 = vadd.f32 1.0, %v2737_v21 }
 0x376   :  { %v7966_v25 = vpop.eup %5513  ;;  %v2755_v29 = vmul.f32 -0.5, %v7917_v43  ;;  %v2761_v26 = vadd.f32 1.0, %v7908_v34  ;;  %v2843_v63 = vmul.f32 0.01, %v2715_v52  ;;  %v2724_v50 = vsel %vm7947_vm15, %v2721_v48, %v2718_v46 }
 0x377   :  { %v5516_v4 = vpop.eup %5515  ;;  %v2730_v57 = vmul.f32 %v7848_v47, %v2729_v17  ;;  %vm2878_vm5 = vcmp.gt.f32.partialorder %v7780_v18, 20.0  ;;  %v2844_v45 = vmul.f32 0.01, %v2724_v50  ;;  %v2747_v53 = vadd.f32 1.0, %v2746_v62 }
 0x378   :  { %v7976_v1 = vpop.eup %5517  ;;  %v2727_v28 = vmul.f32 0.6931472, %v5516_v4  ;;  %5525 = vlog2.f32 %v2761_v26  ;;  %v2907_v14 = vsel %vm2875_vm12, %v7710_v55, %v2843_v63  ;;  %vm7981_vm13 = vcmp.lt.f32.partialorder %v2740_v60, 0.0004427343 }
 0x379   :  { %v2749_v21 = vand.u32 2147483647, %v7879_v36  ;;  %v2770_v47 = vadd.f32 1.0, %v7935_v23  ;;  %v5520_v5 = vpop.eup %5519  ;;  %4961 = vmatmul.mubr.msk.f32.gmra.mrb[50].mxu1 %vm940_vm2, %v2907_v14  ;;  %v2908_v2 = vsel %vm2876_vm1, %v7740_v44, %v2844_v45  ;;  %v2739_v55 = vmul.f32 %v7905_v33, %v2738_v32 }
 0x37a   :  { %v2733_v13 = vsel %vm7961_vm4, %v2730_v57, %v2727_v28  ;;  %v2756_v30 = vadd.f32 1.0, %v2755_v29  ;;  %4963 = vmatprep.mubr.msk.f32.mxu1 %vm940_vm2, %v2908_v2  ;;  %v2736_v17 = vmul.f32 0.6931472, %v5520_v5  ;;  %v2764_v9 = vmul.f32 -0.5, %v7908_v34 }
 0x37b   :  { %v2845_v49 = vmul.f32 0.01, %v2733_v13  ;;  %5527 = vlog2.f32 %v2770_v47  ;;  %v2748_v20 = vmul.f32 %v7879_v36, %v2747_v53  ;;  %vm2879_vm6 = vcmp.gt.f32.partialorder %v7774_v59, 20.0 }
 0x37c   :  { %v5522_v7 = vpop.eup %5521  ;;  %v2758_v44 = vand.u32 2147483647, %v7917_v43  ;;  %v2779_v27 = vadd.f32 1.0, %v7930_v35  ;;  %v2742_v62 = vsel %vm7981_vm13, %v2739_v55, %v2736_v17  ;;  %v2773_v48 = vmul.f32 -0.5, %v7935_v23 }
 0x37d   :  { %v2909_v33 = vsel %vm2877_vm3, %v7736_v22, %v2845_v49  ;;  %v2745_v46 = vmul.f32 0.6931472, %v5522_v7  ;;  %v2846_v36 = vmul.f32 0.01, %v2742_v62  ;;  %vm2750_vm0 = vcmp.lt.f32.partialorder %v2749_v21, 0.0004427343 }
 0x37e   :  { %v5524_v6 = vpop.eup %5523  ;;  %4964 = vmatmul.mubr.msk.f32.gmra.mrb[52].mxu1 %vm940_vm2, %v2909_v33  ;;  %v2757_v60 = vmul.f32 %v7917_v43, %v2756_v30  ;;  %5529 = vlog2.f32 %v2779_v27  ;;  %v2765_v29 = vadd.f32 1.0, %v2764_v9  ;;  %v2788_v39 = vadd.f32 1.0, %v7957_v19 }
 0x37f   :  { %v2751_v52 = vsel %vm2750_vm0, %v2748_v20, %v2745_v46  ;;  %v2754_v32 = vmul.f32 0.6931472, %v5524_v6  ;;  %v2910_v22 = vsel %vm2878_vm5, %v7766_v37, %v2846_v36  ;;  %vm2759_vm7 = vcmp.lt.f32.partialorder %v2758_v44, 0.0004427343 }
 0x380   :  { %v2847_v26 = vmul.f32 0.01, %v2751_v52  ;;  %v2767_v4 = vand.u32 2147483647, %v7908_v34  ;;  %4966 = vmatprep.mubr.msk.f32.mxu1 %vm940_vm2, %v2910_v22  ;;  %v2774_v50 = vadd.f32 1.0, %v2773_v48  ;;  %v2782_v43 = vmul.f32 -0.5, %v7930_v35 }
 0x381   :  { %v2760_v63 = vsel %vm2759_vm7, %v2757_v60, %v2754_v32  ;;  %5531 = vlog2.f32 %v2788_v39  ;;  %vm2880_vm8 = vcmp.gt.f32.partialorder %v7812_v54, 20.0  ;;  %v2797_v37 = vadd.f32 1.0, %v7942_v51 }
 0x382   :  { %v5526_v57 = vpop.eup %5525  ;;  %v2911_v45 = vsel %vm2879_vm6, %v7763_v12, %v2847_v26  ;;  %v2848_v28 = vmul.f32 0.01, %v2760_v63  ;;  %v2766_v53 = vmul.f32 %v7908_v34, %v2765_v29  ;;  %v2776_v14 = vand.u32 2147483647, %v7935_v23  ;;  %v3773_v12 = vld [vmem:[%s8708_s10 + $0x28] sm:$0xff] }
 0x383   :  { %4967 = vmatmul.mubr.msk.f32.gmra.mrb[54].mxu1 %vm940_vm2, %v2911_v45  ;;  %v2763_v18 = vmul.f32 0.6931472, %v5526_v57  ;;  %vm2768_vm9 = vcmp.lt.f32.partialorder %v2767_v4, 0.0004427343  ;;  %v2791_v54 = vmul.f32 -0.5, %v7957_v19  ;;  %5533 = vlog2.f32 %v2797_v37 }
 0x384   :  { %v2912_v59 = vsel %vm2880_vm8, %v7798_v8, %v2848_v28  ;;  %v2775_v47 = vmul.f32 %v7935_v23, %v2774_v50  ;;  %v2783_v5 = vadd.f32 1.0, %v2782_v43  ;;  %v2806_v2 = vadd.f32 1.0, %v7976_v1 }
 0x385   :  { %v5528_v21 = vpop.eup %5527  ;;  %4969 = vmatprep.mubr.msk.f32.mxu1 %vm940_vm2, %v2912_v59  ;;  %v2769_v34 = vsel %vm2768_vm9, %v2766_v53, %v2763_v18  ;;  %v2785_v30 = vand.u32 2147483647, %v7930_v35  ;;  %v5111_v49 = vpack.c.bf16 %v3773_v12, %v3772_v38  ;;  %vm2881_vm10 = vcmp.gt.f32.partialorder %v7803_v15, 20.0  ;;  %v3774_v38 = vld [vmem:[%s8708_s10 + $0x30] sm:$0xff] }
 0x386   :  { %v2849_v13 = vmul.f32 0.01, %v2769_v34  ;;  %v2772_v55 = vmul.f32 0.6931472, %v5528_v21  ;;  %vm2777_vm11 = vcmp.lt.f32.partialorder %v2776_v14, 0.0004427343  ;;  %5535 = vlog2.f32 %v2806_v2 }
 0x387   :  { %v2800_v8 = vmul.f32 -0.5, %v7942_v51  ;;  %v2792_v20 = vadd.f32 1.0, %v2791_v54  ;;  %v2815_v23 = vadd.f32 1.0, %v7966_v25  ;;  %5112 = vmatprep.subr.bf16.mxu1 %v5111_v49  ;;  %v2784_v33 = vmul.f32 %v7930_v35, %v2783_v5 }
 0x388   :  { %v5530_v17 = vpop.eup %5529  ;;  %v2913_v9 = vsel %vm2881_vm10, %v7791_v41, %v2849_v13  ;;  %v2778_v7 = vsel %vm2777_vm11, %v2775_v47, %v2772_v55  ;;  %v2794_v15 = vand.u32 2147483647, %v7957_v19  ;;  %vm2882_vm12 = vcmp.gt.f32.partialorder %v7851_v11, 20.0  ;;  %5114 = vmatpush3.bf16.msra.mxu1 %v5111_v49 }
 0x389   :  { %4970 = vmatmul.mubr.msk.f32.gmra.mrb[56].mxu1 %vm940_vm2, %v2913_v9  ;;  %v2850_v44 = vmul.f32 0.01, %v2778_v7  ;;  %v2781_v27 = vmul.f32 0.6931472, %v5530_v17  ;;  %vm2786_vm14 = vcmp.lt.f32.partialorder %v2785_v30, 0.0004427343  ;;  %5537 = vlog2.f32 %v2815_v23 }
 0x38a   :  { %v2809_v62 = vmul.f32 -0.5, %v7976_v1  ;;  %v2801_v6 = vadd.f32 1.0, %v2800_v8  ;;  %v2793_v35 = vmul.f32 %v7957_v19, %v2792_v20  ;;  %v2803_v52 = vand.u32 2147483647, %v7942_v51 }
 0x38b   :  { %v5532_v41 = vpop.eup %5531  ;;  %v2914_v46 = vsel %vm2882_vm12, %v7826_v56, %v2850_v44  ;;  %v2787_v48 = vsel %vm2786_vm14, %v2784_v33, %v2781_v27  ;;  %vm2883_vm15 = vcmp.gt.f32.partialorder %v7844_v61, 20.0  ;;  %vm2795_vm1 = vcmp.lt.f32.partialorder %v2794_v15, 0.0004427343 }
 0x38c   :  { %4972 = vmatprep.mubr.msk.f32.mxu1 %vm940_vm2, %v2914_v46  ;;  %v2851_v36 = vmul.f32 0.01, %v2787_v48  ;;  %v2790_v60 = vmul.f32 0.6931472, %v5532_v41  ;;  %v2818_v11 = vmul.f32 -0.5, %v7966_v25  ;;  %v2810_v56 = vadd.f32 1.0, %v2809_v62 }
 0x38d   :  { %v5534_v32 = vpop.eup %5533  ;;  %v2802_v4 = vmul.f32 %v7942_v51, %v2801_v6  ;;  %v2812_v19 = vand.u32 2147483647, %v7976_v1  ;;  %vm2884_vm3 = vcmp.gt.f32.partialorder %v7874_v31, 20.0  ;;  %vm2804_vm4 = vcmp.lt.f32.partialorder %v2803_v52, 0.0004427343 }
 0x38e   :  { %v2915_v29 = vsel %vm2883_vm15, %v7821_v24, %v2851_v36  ;;  %v2796_v39 = vsel %vm2795_vm1, %v2793_v35, %v2790_v60  ;;  %v2799_v26 = vmul.f32 0.6931472, %v5534_v32  ;;  %v2819_v43 = vadd.f32 1.0, %v2818_v11 }
 0x38f   :  { %4973 = vmatmul.mubr.msk.f32.gmra.mrb[58].mxu1 %vm940_vm2, %v2915_v29  ;;  %v2852_v22 = vmul.f32 0.01, %v2796_v39  ;;  %v2811_v45 = vmul.f32 %v7976_v1, %v2810_v56  ;;  %v2821_v28 = vand.u32 2147483647, %v7966_v25  ;;  %vm2885_vm5 = vcmp.gt.f32.partialorder %v7858_v16, 20.0 }
 0x390   :  { %v5536_v61 = vpop.eup %5535  ;;  %v2805_v50 = vsel %vm2804_vm4, %v2802_v4, %v2799_v26  ;;  %vm2813_vm13 = vcmp.lt.f32.partialorder %v2812_v19, 0.0004427343  ;;  %v2820_v53 = vmul.f32 %v7966_v25, %v2819_v43  ;;  %vm2886_vm6 = vcmp.gt.f32.partialorder %v7893_v42, 20.0  ;;  %v3775_v42 = vld [vmem:[%s8708_s10 + $0x38] sm:$0xff] }
 0x391   :  { %v2916_v63 = vsel %vm2884_vm3, %v7854_v58, %v2852_v22  ;;  %v2853_v24 = vmul.f32 0.01, %v2805_v50  ;;  %v2808_v57 = vmul.f32 0.6931472, %v5536_v61  ;;  %vm2822_vm0 = vcmp.lt.f32.partialorder %v2821_v28, 0.0004427343 }
 0x392   :  { %4975 = vmatprep.mubr.msk.f32.mxu1 %vm940_vm2, %v2916_v63  ;;  %vm2887_vm7 = vcmp.gt.f32.partialorder %v7889_v0, 20.0  ;;  %v5115_v25 = vpack.c.bf16 %v3775_v42, %v3774_v38 }
 0x393   :  { %v5538_v51 = vpop.eup %5537  ;;  %v2917_v31 = vsel %vm2885_vm5, %v7839_v3, %v2853_v24  ;;  %v2814_v37 = vsel %vm2813_vm13, %v2811_v45, %v2808_v57 }
 0x394   :  { %4976 = vmatmul.mubr.msk.f32.gmra.mrb[60].mxu1 %vm940_vm2, %v2917_v31  ;;  %v2854_v58 = vmul.f32 0.01, %v2814_v37  ;;  %v2817_v18 = vmul.f32 0.6931472, %v5538_v51  ;;  %5116 = vmatprep.subr.bf16.mxu1 %v5115_v25 }
 0x395   :  { %5118 = vmatpush3.bf16.msra.mxu1 %v5115_v25 }
 0x396   :  { %v2918_v1 = vsel %vm2886_vm6, %v7883_v40, %v2854_v58  ;;  %v2823_v14 = vsel %vm2822_vm0, %v2820_v53, %v2817_v18  ;;  %v8078_v40 = vld [vmem:[%s8707_s9] ss:$0 sm:$0xff] }
 0x397   :  { %4978 = vmatprep.mubr.msk.f32.mxu1 %vm940_vm2, %v2918_v1  ;;  %v2855_v16 = vmul.f32 0.01, %v2823_v14 }
 0x399   :  { %v2919_v3 = vsel %vm2887_vm7, %v7877_v10, %v2855_v16 }
 0x39a   :  { %4979 = vmatmul.mubr.msk.f32.gmra.mrb[62].mxu1 %vm940_vm2, %v2919_v3 }
 0x3db   :  { %v4935_v0 = vpop.f32.mrb[32].mxu1 }
 0x3dc   :  { %v8081_v10 = vadd.f32 %v4935_v0, %v8078_v40  ;;  %v3097_v12 = vpop.f32.mrb[33].mxu1 }
 0x3dd   :  { %v3098_v59 = vadd.f32 %v8078_v40, %v3097_v12 }
 0x3de   :  { %v3257_v54 = vmul.f32 100.0, %v8081_v10 }
 0x3df   :  { %v3256_v21 = vmul.f32 100.0, %v3098_v59 }
 0x3e0   :  { %v3289_v34 = vmin.f32 %v3257_v54, 20.0  ;;  %vm3705_vm11 = vcmp.gt.f32.partialorder %v3257_v54, 20.0 }
 0x3e1   :  { %v3288_v47 = vmin.f32 %v3256_v21, 20.0  ;;  %vm3704_vm10 = vcmp.gt.f32.partialorder %v3256_v21, 20.0 }
 0x3e2   :  { %v3322_v5 = vmul.f32 1.442695, %v3289_v34 }
 0x3e3   :  { %v3320_v2 = vmul.f32 1.442695, %v3288_v47 }
 0x3e4   :  { %5539 = vpow2.f32 %v3322_v5 }
 0x3e5   :  { %5541 = vpow2.f32 %v3320_v2 }
 0x3ee   :  { %v5540_v13 = vpop.eup %5539  ;;  %v4938_v8 = vpop.f32.mrb[34].mxu1 }
 0x3ef   :  { %v5542_v55 = vpop.eup %5541  ;;  %v3393_v30 = vadd.f32 1.0, %v5540_v13  ;;  %v8086_v17 = vadd.f32 %v4938_v8, %v8078_v40  ;;  %v3107_v9 = vpop.f32.mrb[35].mxu1  ;;  %v3396_v7 = vmul.f32 -0.5, %v5540_v13  ;;  %v3399_v36 = vand.u32 2147483647, %v5540_v13 }
 0x3f0   :  { %v3384_v49 = vadd.f32 1.0, %v5542_v55  ;;  %v8089_v20 = vadd.f32 %v8078_v40, %v3107_v9  ;;  %v3387_v44 = vmul.f32 -0.5, %v5542_v55  ;;  %v3390_v29 = vand.u32 2147483647, %v5542_v55 }
 0x3f1   :  { %5543 = vlog2.f32 %v3393_v30  ;;  %v8092_v23 = vmul.f32 100.0, %v8086_v17  ;;  %v3397_v46 = vadd.f32 1.0, %v3396_v7  ;;  %vm3400_vm8 = vcmp.lt.f32.partialorder %v3399_v36, 0.0004427343 }
 0x3f2   :  { %5545 = vlog2.f32 %v3384_v49  ;;  %v8095_v27 = vmul.f32 100.0, %v8089_v20  ;;  %v3388_v52 = vadd.f32 1.0, %v3387_v44  ;;  %vm3391_vm9 = vcmp.lt.f32.partialorder %v3390_v29, 0.0004427343 }
 0x3f3   :  { %v4941_v33 = vpop.f32.mrb[36].mxu1  ;;  %v3291_v15 = vmin.f32 %v8092_v23, 20.0  ;;  %v3398_v4 = vmul.f32 %v5540_v13, %v3397_v46  ;;  %vm3707_vm3 = vcmp.gt.f32.partialorder %v8092_v23, 20.0 }
 0x3f4   :  { %v8099_v62 = vadd.f32 %v4941_v33, %v8078_v40  ;;  %v3117_v41 = vpop.f32.mrb[37].mxu1  ;;  %v3290_v48 = vmin.f32 %v8095_v27, 20.0  ;;  %v3389_v50 = vmul.f32 %v5542_v55, %v3388_v52  ;;  %vm3706_vm15 = vcmp.gt.f32.partialorder %v8095_v27, 20.0 }
 0x3f5   :  { %v8103_v6 = vadd.f32 %v8078_v40, %v3117_v41  ;;  %v3326_v60 = vmul.f32 1.442695, %v3291_v15 }
 0x3f6   :  { %v8106_v35 = vmul.f32 100.0, %v8099_v62  ;;  %v3324_v11 = vmul.f32 1.442695, %v3290_v48 }
 0x3f7   :  { %v8109_v32 = vmul.f32 100.0, %v8103_v6  ;;  %5547 = vpow2.f32 %v3326_v60 }
 0x3f8   :  { %v3293_v56 = vmin.f32 %v8106_v35, 20.0  ;;  %5549 = vpow2.f32 %v3324_v11  ;;  %vm3709_vm13 = vcmp.gt.f32.partialorder %v8106_v35, 20.0 }
 0x3f9   :  { %v3292_v19 = vmin.f32 %v8109_v32, 20.0  ;;  %vm3708_vm5 = vcmp.gt.f32.partialorder %v8109_v32, 20.0 }
 0x3fa   :  { %v3330_v61 = vmul.f32 1.442695, %v3293_v56 }
 0x3fb   :  { %v5544_v39 = vpop.eup %5543  ;;  %v3328_v24 = vmul.f32 1.442695, %v3292_v19 }
 0x3fc   :  { %v5546_v22 = vpop.eup %5545  ;;  %v3395_v26 = vmul.f32 0.6931472, %v5544_v39  ;;  %5551 = vpow2.f32 %v3330_v61 }
 0x3fd   :  { %v3386_v63 = vmul.f32 0.6931472, %v5546_v22  ;;  %5553 = vpow2.f32 %v3328_v24 }
 0x3fe   :  { %v3401_v43 = vsel %vm3400_vm8, %v3398_v4, %v3395_v26 }
 0x3ff   :  { %v3673_v57 = vmul.f32 0.01, %v3401_v43  ;;  %v3392_v45 = vsel %vm3391_vm9, %v3389_v50, %v3386_v63 }
 0x400   :  { %v3672_v28 = vmul.f32 0.01, %v3392_v45 }
 0x401   :  { %v3737_v31 = vsel %vm3705_vm11, %v8081_v10, %v3673_v57  ;;  %v5548_v37 = vpop.eup %5547 }
 0x402   :  { %v3736_v51 = vsel %vm3704_vm10, %v3098_v59, %v3672_v28  ;;  %v5550_v58 = vpop.eup %5549  ;;  %v3411_v18 = vadd.f32 1.0, %v5548_v37  ;;  %v3414_v12 = vmul.f32 -0.5, %v5548_v37  ;;  %v3417_v13 = vand.u32 2147483647, %v5548_v37 }
 0x403   :  { %4997 = vmatprep.mubr.msk.f32.mxu1 %vm940_vm2, %v3736_v51  ;;  %v4944_v53 = vpop.f32.mrb[38].mxu1  ;;  %v3402_v1 = vadd.f32 1.0, %v5550_v58  ;;  %v3405_v21 = vmul.f32 -0.5, %v5550_v58  ;;  %v3408_v8 = vand.u32 2147483647, %v5550_v58 }
 0x404   :  { %4998 = vmatmul.mubr.msk.f32.vlgmr.msra.gmra.mrb[64].mxu1 %vm940_vm2, %v3737_v31  ;;  %v8117_v14 = vadd.f32 %v4944_v53, %v8078_v40  ;;  %v3127_v16 = vpop.f32.mrb[39].mxu1  ;;  %5555 = vlog2.f32 %v3411_v18  ;;  %v3415_v2 = vadd.f32 1.0, %v3414_v12  ;;  %vm3418_vm12 = vcmp.lt.f32.partialorder %v3417_v13, 0.0004427343 }
 0x405   :  { %v8120_v38 = vadd.f32 %v8078_v40, %v3127_v16  ;;  %5557 = vlog2.f32 %v3402_v1  ;;  %v3406_v30 = vadd.f32 1.0, %v3405_v21  ;;  %vm3409_vm14 = vcmp.lt.f32.partialorder %v3408_v8, 0.0004427343 }
 0x406   :  { %v5552_v3 = vpop.eup %5551  ;;  %v8123_v25 = vmul.f32 100.0, %v8117_v14  ;;  %v3416_v33 = vmul.f32 %v5548_v37, %v3415_v2 }
 0x407   :  { %v5554_v42 = vpop.eup %5553  ;;  %v3429_v0 = vadd.f32 1.0, %v5552_v3  ;;  %v8126_v10 = vmul.f32 100.0, %v8120_v38  ;;  %v3432_v55 = vmul.f32 -0.5, %v5552_v3  ;;  %v3407_v46 = vmul.f32 %v5550_v58, %v3406_v30 }
 0x408   :  { %v3420_v59 = vadd.f32 1.0, %v5554_v42  ;;  %v3295_v54 = vmin.f32 %v8123_v25, 20.0  ;;  %v3423_v49 = vmul.f32 -0.5, %v5554_v42  ;;  %v3435_v36 = vand.u32 2147483647, %v5552_v3 }
 0x409   :  { %5559 = vlog2.f32 %v3429_v0  ;;  %v3294_v34 = vmin.f32 %v8126_v10, 20.0  ;;  %v3433_v15 = vadd.f32 1.0, %v3432_v55  ;;  %v3426_v52 = vand.u32 2147483647, %v5554_v42 }
 0x40a   :  { %5561 = vlog2.f32 %v3420_v59  ;;  %v3334_v47 = vmul.f32 1.442695, %v3295_v54  ;;  %v3424_v48 = vadd.f32 1.0, %v3423_v49  ;;  %vm3436_vm1 = vcmp.lt.f32.partialorder %v3435_v36, 0.0004427343 }
 0x40b   :  { %v3332_v5 = vmul.f32 1.442695, %v3294_v34  ;;  %v3434_v4 = vmul.f32 %v5552_v3, %v3433_v15  ;;  %vm3427_vm4 = vcmp.lt.f32.partialorder %v3426_v52, 0.0004427343  ;;  %vm3710_vm7 = vcmp.gt.f32.partialorder %v8126_v10, 20.0 }
 0x40c   :  { %5563 = vpow2.f32 %v3334_v47  ;;  %v3425_v61 = vmul.f32 %v5554_v42, %v3424_v48  ;;  %vm3711_vm8 = vcmp.gt.f32.partialorder %v8123_v25, 20.0 }
 0x40d   :  { %5565 = vpow2.f32 %v3332_v5 }
 0x40e   :  { %v5556_v9 = vpop.eup %5555 }
 0x40f   :  { %v5558_v7 = vpop.eup %5557  ;;  %v3413_v44 = vmul.f32 0.6931472, %v5556_v9 }
 0x410   :  { %v3404_v41 = vmul.f32 0.6931472, %v5558_v7 }
 0x411   :  { %v3419_v60 = vsel %vm3418_vm12, %v3416_v33, %v3413_v44 }
 0x412   :  { %v3410_v29 = vsel %vm3409_vm14, %v3407_v46, %v3404_v41  ;;  %v3675_v39 = vmul.f32 0.01, %v3419_v60  ;;  %v4947_v63 = vpop.f32.mrb[40].mxu1 }
 0x413   :  { %v5560_v11 = vpop.eup %5559  ;;  %v3674_v22 = vmul.f32 0.01, %v3410_v29  ;;  %v8134_v57 = vadd.f32 %v4947_v63, %v8078_v40  ;;  %v3137_v45 = vpop.f32.mrb[41].mxu1 }
 0x414   :  { %v5562_v56 = vpop.eup %5561  ;;  %v3431_v26 = vmul.f32 0.6931472, %v5560_v11  ;;  %v3739_v28 = vsel %vm3707_vm3, %v8086_v17, %v3675_v39  ;;  %v8139_v37 = vadd.f32 %v8078_v40, %v3137_v45 }
 0x415   :  { %v3422_v19 = vmul.f32 0.6931472, %v5562_v56  ;;  %v3738_v50 = vsel %vm3706_vm15, %v8089_v20, %v3674_v22  ;;  %v8144_v58 = vmul.f32 100.0, %v8134_v57 }
 0x416   :  { %v3437_v43 = vsel %vm3436_vm1, %v3434_v4, %v3431_v26  ;;  %v5564_v24 = vpop.eup %5563  ;;  %5000 = vmatprep.mubr.msk.f32.mxu1 %vm940_vm2, %v3738_v50  ;;  %v8148_v17 = vmul.f32 100.0, %v8139_v37 }
 0x417   :  { %v3428_v27 = vsel %vm3427_vm4, %v3425_v61, %v3422_v19  ;;  %v3677_v51 = vmul.f32 0.01, %v3437_v43  ;;  %v5566_v31 = vpop.eup %5565  ;;  %5001 = vmatmul.mubr.msk.f32.gmra.mrb[66].mxu1 %vm940_vm2, %v3739_v28  ;;  %v3447_v23 = vadd.f32 1.0, %v5564_v24  ;;  %v3297_v1 = vmin.f32 %v8144_v58, 20.0 }
 0x418   :  { %v3676_v20 = vmul.f32 0.01, %v3428_v27  ;;  %v3438_v18 = vadd.f32 1.0, %v5566_v31  ;;  %v3296_v32 = vmin.f32 %v8148_v17, 20.0  ;;  %v3450_v12 = vmul.f32 -0.5, %v5564_v24 }
 0x419   :  { %5567 = vlog2.f32 %v3447_v23  ;;  %v3741_v16 = vsel %vm3709_vm13, %v8099_v62, %v3677_v51  ;;  %v3338_v42 = vmul.f32 1.442695, %v3297_v1  ;;  %v3441_v54 = vmul.f32 -0.5, %v5566_v31 }
 0x41a   :  { %v3740_v53 = vsel %vm3708_vm5, %v8103_v6, %v3676_v20  ;;  %5569 = vlog2.f32 %v3438_v18  ;;  %v3336_v6 = vmul.f32 1.442695, %v3296_v32  ;;  %v3451_v47 = vadd.f32 1.0, %v3450_v12 }
 0x41b   :  { %5003 = vmatprep.mubr.msk.f32.mxu1 %vm940_vm2, %v3740_v53  ;;  %5571 = vpow2.f32 %v3338_v42  ;;  %v3442_v2 = vadd.f32 1.0, %v3441_v54  ;;  %v3453_v13 = vand.u32 2147483647, %v5564_v24  ;;  %v3444_v30 = vand.u32 2147483647, %v5566_v31 }
 0x41c   :  { %5004 = vmatmul.mubr.msk.f32.gmra.mrb[68].mxu1 %vm940_vm2, %v3741_v16  ;;  %5573 = vpow2.f32 %v3336_v6  ;;  %v3452_v44 = vmul.f32 %v5564_v24, %v3451_v47  ;;  %vm3713_vm11 = vcmp.gt.f32.partialorder %v8144_v58, 20.0  ;;  %vm3712_vm12 = vcmp.gt.f32.partialorder %v8148_v17, 20.0 }
 0x41d   :  { %v4950_v3 = vpop.f32.mrb[42].mxu1  ;;  %v3443_v15 = vmul.f32 %v5566_v31, %v3442_v2  ;;  %vm3454_vm6 = vcmp.lt.f32.partialorder %v3453_v13, 0.0004427343  ;;  %vm3445_vm0 = vcmp.lt.f32.partialorder %v3444_v30, 0.0004427343 }
 0x41e   :  { %v8157_v35 = vadd.f32 %v4950_v3, %v8078_v40  ;;  %v3147_v0 = vpop.f32.mrb[43].mxu1 }
 0x41f   :  { %v8160_v59 = vadd.f32 %v8078_v40, %v3147_v0 }
 0x420   :  { %v8163_v62 = vmul.f32 100.0, %v8157_v35 }
 0x421   :  { %v8166_v21 = vmul.f32 100.0, %v8160_v59 }
 0x422   :  { %v3299_v34 = vmin.f32 %v8163_v62, 20.0  ;;  %vm3715_vm3 = vcmp.gt.f32.partialorder %v8163_v62, 20.0 }
 0x423   :  { %v3298_v5 = vmin.f32 %v8166_v21, 20.0  ;;  %v5568_v49 = vpop.eup %5567  ;;  %vm3714_vm1 = vcmp.gt.f32.partialorder %v8166_v21, 20.0 }
 0x424   :  { %v3342_v55 = vmul.f32 1.442695, %v3299_v34  ;;  %v5570_v9 = vpop.eup %5569  ;;  %v3449_v7 = vmul.f32 0.6931472, %v5568_v49 }
 0x425   :  { %v3340_v8 = vmul.f32 1.442695, %v3298_v5  ;;  %v3440_v33 = vmul.f32 0.6931472, %v5570_v9  ;;  %v5572_v36 = vpop.eup %5571 }
 0x426   :  { %5575 = vpow2.f32 %v3342_v55  ;;  %v3455_v41 = vsel %vm3454_vm6, %v3452_v44, %v3449_v7  ;;  %v5574_v52 = vpop.eup %5573  ;;  %v3465_v11 = vadd.f32 1.0, %v5572_v36  ;;  %v3468_v4 = vmul.f32 -0.5, %v5572_v36 }
 0x427   :  { %5577 = vpow2.f32 %v3340_v8  ;;  %v3446_v46 = vsel %vm3445_vm0, %v3443_v15, %v3440_v33  ;;  %v3679_v48 = vmul.f32 0.01, %v3455_v41  ;;  %v3456_v39 = vadd.f32 1.0, %v5574_v52 }
 0x428   :  { %v3678_v60 = vmul.f32 0.01, %v3446_v46  ;;  %5579 = vlog2.f32 %v3465_v11  ;;  %v3459_v25 = vmul.f32 -0.5, %v5574_v52  ;;  %v3469_v24 = vadd.f32 1.0, %v3468_v4 }
 0x429   :  { %v3743_v56 = vsel %vm3711_vm8, %v8117_v14, %v3679_v48  ;;  %5581 = vlog2.f32 %v3456_v39  ;;  %v3471_v45 = vand.u32 2147483647, %v5572_v36  ;;  %v3462_v31 = vand.u32 2147483647, %v5574_v52 }
 0x42a   :  { %v3742_v29 = vsel %vm3710_vm7, %v8120_v38, %v3678_v60  ;;  %v3460_v27 = vadd.f32 1.0, %v3459_v25  ;;  %v3470_v3 = vmul.f32 %v5572_v36, %v3469_v24 }
 0x42b   :  { %5006 = vmatprep.mubr.msk.f32.mxu1 %vm940_vm2, %v3742_v29  ;;  %vm3472_vm9 = vcmp.lt.f32.partialorder %v3471_v45, 0.0004427343  ;;  %vm3463_vm10 = vcmp.lt.f32.partialorder %v3462_v31, 0.0004427343 }
 0x42c   :  { %5007 = vmatmul.mubr.msk.f32.gmra.mrb[70].mxu1 %vm940_vm2, %v3743_v56  ;;  %v4953_v26 = vpop.f32.mrb[44].mxu1  ;;  %v3461_v0 = vmul.f32 %v5574_v52, %v3460_v27 }
 0x42d   :  { %v8177_v10 = vadd.f32 %v4953_v26, %v8078_v40  ;;  %v3157_v61 = vpop.f32.mrb[45].mxu1 }
 0x42e   :  { %v8180_v38 = vadd.f32 %v8078_v40, %v3157_v61 }
 0x42f   :  { %v8183_v14 = vmul.f32 100.0, %v8177_v10 }
 0x430   :  { %v5576_v22 = vpop.eup %5575  ;;  %v8186_v43 = vmul.f32 100.0, %v8180_v38 }
 0x431   :  { %v5578_v19 = vpop.eup %5577  ;;  %v3483_v63 = vadd.f32 1.0, %v5576_v22  ;;  %v3301_v28 = vmin.f32 %v8183_v14, 20.0  ;;  %v3486_v20 = vmul.f32 -0.5, %v5576_v22  ;;  %v3489_v12 = vand.u32 2147483647, %v5576_v22 }
 0x432   :  { %v3474_v50 = vadd.f32 1.0, %v5578_v19  ;;  %v3300_v51 = vmin.f32 %v8186_v43, 20.0  ;;  %v5580_v23 = vpop.eup %5579  ;;  %v3477_v53 = vmul.f32 -0.5, %v5578_v19  ;;  %v3480_v55 = vand.u32 2147483647, %v5578_v19 }
 0x433   :  { %5583 = vlog2.f32 %v3483_v63  ;;  %v3346_v18 = vmul.f32 1.442695, %v3301_v28  ;;  %v5582_v1 = vpop.eup %5581  ;;  %v3467_v32 = vmul.f32 0.6931472, %v5580_v23  ;;  %v3487_v54 = vadd.f32 1.0, %v3486_v20 }
 0x434   :  { %5585 = vlog2.f32 %v3474_v50  ;;  %v3344_v16 = vmul.f32 1.442695, %v3300_v51  ;;  %v3458_v42 = vmul.f32 0.6931472, %v5582_v1  ;;  %v3478_v5 = vadd.f32 1.0, %v3477_v53 }
 0x435   :  { %5587 = vpow2.f32 %v3346_v18  ;;  %v3473_v6 = vsel %vm3472_vm9, %v3470_v3, %v3467_v32  ;;  %vm8195_vm14 = vcmp.lt.f32.partialorder %v3489_v12, 0.0004427343  ;;  %v3488_v41 = vmul.f32 %v5576_v22, %v3487_v54 }
 0x436   :  { %5589 = vpow2.f32 %v3344_v16  ;;  %v3464_v34 = vsel %vm3463_vm10, %v3461_v0, %v3458_v42  ;;  %v3681_v47 = vmul.f32 0.01, %v3473_v6  ;;  %v3479_v48 = vmul.f32 %v5578_v19, %v3478_v5 }
 0x437   :  { %v4956_v2 = vpop.f32.mrb[46].mxu1  ;;  %v3680_v13 = vmul.f32 0.01, %v3464_v34  ;;  %vm3481_vm15 = vcmp.lt.f32.partialorder %v3480_v55, 0.0004427343  ;;  %vm3717_vm13 = vcmp.gt.f32.partialorder %v8183_v14, 20.0 }
 0x438   :  { %v8193_v49 = vadd.f32 %v4956_v2, %v8078_v40  ;;  %v3167_v8 = vpop.f32.mrb[47].mxu1  ;;  %v3745_v17 = vsel %vm3713_vm11, %v8134_v57, %v3681_v47  ;;  %vm3716_vm6 = vcmp.gt.f32.partialorder %v8186_v43, 20.0 }
 0x439   :  { %v8200_v44 = vadd.f32 %v8078_v40, %v3167_v8  ;;  %v3744_v33 = vsel %vm3712_vm12, %v8139_v37, %v3680_v13 }
 0x43a   :  { %v8204_v58 = vmul.f32 100.0, %v8193_v49  ;;  %5009 = vmatprep.mubr.msk.f32.mxu1 %vm940_vm2, %v3744_v33 }
 0x43b   :  { %v8209_v36 = vmul.f32 100.0, %v8200_v44  ;;  %5010 = vmatmul.mubr.msk.f32.gmra.mrb[72].mxu1 %vm940_vm2, %v3745_v17 }
 0x43c   :  { %v3303_v60 = vmin.f32 %v8204_v58, 20.0  ;;  %vm3719_vm0 = vcmp.gt.f32.partialorder %v8204_v58, 20.0 }
 0x43d   :  { %v5584_v30 = vpop.eup %5583  ;;  %v3302_v29 = vmin.f32 %v8209_v36, 20.0  ;;  %vm3718_vm8 = vcmp.gt.f32.partialorder %v8209_v36, 20.0 }
 0x43e   :  { %v5586_v7 = vpop.eup %5585  ;;  %v3485_v15 = vmul.f32 0.6931472, %v5584_v30  ;;  %v3350_v57 = vmul.f32 1.442695, %v3303_v60 }
 0x43f   :  { %v3476_v46 = vmul.f32 0.6931472, %v5586_v7  ;;  %v5588_v56 = vpop.eup %5587  ;;  %v3348_v26 = vmul.f32 1.442695, %v3302_v29 }
 0x440   :  { %v3491_v37 = vsel %vm8195_vm14, %v3488_v41, %v3485_v15  ;;  %v5590_v22 = vpop.eup %5589  ;;  %v3501_v19 = vadd.f32 1.0, %v5588_v56  ;;  %5591 = vpow2.f32 %v3350_v57  ;;  %v3504_v45 = vmul.f32 -0.5, %v5588_v56 }
 0x441   :  { %v3482_v52 = vsel %vm3481_vm15, %v3479_v48, %v3476_v46  ;;  %v3683_v11 = vmul.f32 0.01, %v3491_v37  ;;  %v3492_v25 = vadd.f32 1.0, %v5590_v22  ;;  %5593 = vpow2.f32 %v3348_v26 }
 0x442   :  { %v3682_v39 = vmul.f32 0.01, %v3482_v52  ;;  %v4959_v63 = vpop.f32.mrb[48].mxu1  ;;  %v3498_v31 = vand.u32 2147483647, %v5590_v22  ;;  %v3505_v18 = vadd.f32 1.0, %v3504_v45 }
 0x443   :  { %v3747_v61 = vsel %vm3715_vm3, %v8157_v35, %v3683_v11  ;;  %5595 = vlog2.f32 %v3492_v25  ;;  %v8223_v21 = vadd.f32 %v4959_v63, %v8078_v40  ;;  %v3177_v62 = vpop.f32.mrb[49].mxu1  ;;  %v3507_v16 = vand.u32 2147483647, %v5588_v56 }
 0x444   :  { %v3746_v4 = vsel %vm3714_vm1, %v8160_v59, %v3682_v39  ;;  %5597 = vlog2.f32 %v3501_v19  ;;  %v8226_v50 = vadd.f32 %v8078_v40, %v3177_v62  ;;  %v3495_v59 = vmul.f32 -0.5, %v5590_v22 }
 0x445   :  { %5012 = vmatprep.mubr.msk.f32.mxu1 %vm940_vm2, %v3746_v4  ;;  %v8229_v24 = vmul.f32 100.0, %v8223_v21  ;;  %vm3499_vm4 = vcmp.lt.f32.partialorder %v3498_v31, 0.0004427343  ;;  %v3506_v2 = vmul.f32 %v5588_v56, %v3505_v18  ;;  %vm3508_vm5 = vcmp.lt.f32.partialorder %v3507_v16, 0.0004427343 }
 0x446   :  { %5013 = vmatmul.mubr.msk.f32.gmra.mrb[74].mxu1 %vm940_vm2, %v3747_v61  ;;  %v8232_v35 = vmul.f32 100.0, %v8226_v50  ;;  %v3496_v51 = vadd.f32 1.0, %v3495_v59 }
 0x447   :  { %v3305_v28 = vmin.f32 %v8229_v24, 20.0  ;;  %vm3721_vm14 = vcmp.gt.f32.partialorder %v8229_v24, 20.0 }
 0x448   :  { %v3304_v27 = vmin.f32 %v8232_v35, 20.0  ;;  %v3497_v54 = vmul.f32 %v5590_v22, %v3496_v51  ;;  %vm3720_vm10 = vcmp.gt.f32.partialorder %v8232_v35, 20.0 }
 0x449   :  { %v3354_v23 = vmul.f32 1.442695, %v3305_v28 }
 0x44a   :  { %v8236_v20 = vpop.eup %5591  ;;  %v3352_v1 = vmul.f32 1.442695, %v3304_v27 }
 0x44b   :  { %v8238_v53 = vpop.eup %5593  ;;  %v3519_v32 = vadd.f32 1.0, %v8236_v20  ;;  %5599 = vpow2.f32 %v3354_v23  ;;  %v3522_v60 = vmul.f32 -0.5, %v8236_v20  ;;  %v3525_v19 = vand.u32 2147483647, %v8236_v20 }
 0x44c   :  { %v3510_v42 = vadd.f32 1.0, %v8238_v53  ;;  %5601 = vpow2.f32 %v3352_v1  ;;  %v4962_v12 = vpop.f32.mrb[50].mxu1  ;;  %v3513_v7 = vmul.f32 -0.5, %v8238_v53  ;;  %v3516_v26 = vand.u32 2147483647, %v8238_v53 }
 0x44d   :  { %v5596_v3 = vpop.eup %5595  ;;  %v8243_v34 = vadd.f32 %v4962_v12, %v8078_v40  ;;  %v3187_v47 = vpop.f32.mrb[51].mxu1  ;;  %v3523_v4 = vadd.f32 1.0, %v3522_v60  ;;  %vm3526_vm9 = vcmp.lt.f32.partialorder %v3525_v19, 0.0004427343 }
 0x44e   :  { %v5598_v0 = vpop.eup %5597  ;;  %v3494_v6 = vmul.f32 0.6931472, %v5596_v3  ;;  %5603 = vlog2.f32 %v3510_v42  ;;  %v8246_v13 = vadd.f32 %v8078_v40, %v3187_v47  ;;  %v3514_v39 = vadd.f32 1.0, %v3513_v7 }
 0x44f   :  { %v3503_v5 = vmul.f32 0.6931472, %v5598_v0  ;;  %5605 = vlog2.f32 %v3519_v32  ;;  %v8249_v30 = vmul.f32 100.0, %v8243_v34  ;;  %vm3517_vm7 = vcmp.lt.f32.partialorder %v3516_v26, 0.0004427343 }
 0x450   :  { %v3500_v55 = vsel %vm3499_vm4, %v3497_v54, %v3494_v6  ;;  %v8255_v33 = vmul.f32 100.0, %v8246_v13  ;;  %v3515_v28 = vmul.f32 %v8238_v53, %v3514_v39  ;;  %v3524_v32 = vmul.f32 %v8236_v20, %v3523_v4 }
 0x451   :  { %v3684_v8 = vmul.f32 0.01, %v3500_v55  ;;  %v3509_v9 = vsel %vm3508_vm5, %v3506_v2, %v3503_v5  ;;  %v4965_v15 = vpop.f32.mrb[52].mxu1  ;;  %v3307_v17 = vmin.f32 %v8249_v30, 20.0  ;;  %vm3723_vm4 = vcmp.gt.f32.partialorder %v8249_v30, 20.0 }
 0x452   :  { %v3685_v41 = vmul.f32 0.01, %v3509_v9  ;;  %v8259_v46 = vadd.f32 %v4965_v15, %v8078_v40  ;;  %v3197_v48 = vpop.f32.mrb[53].mxu1  ;;  %v3306_v52 = vmin.f32 %v8255_v33, 20.0  ;;  %vm3722_vm3 = vcmp.gt.f32.partialorder %v8255_v33, 20.0 }
 0x453   :  { %v3748_v37 = vsel %vm3716_vm6, %v8180_v38, %v3684_v8  ;;  %v8265_v14 = vadd.f32 %v8078_v40, %v3197_v48  ;;  %v3358_v11 = vmul.f32 1.442695, %v3307_v17 }
 0x454   :  { %5015 = vmatprep.mubr.msk.f32.mxu1 %vm940_vm2, %v3748_v37  ;;  %v3749_v43 = vsel %vm3717_vm13, %v8177_v10, %v3685_v41  ;;  %v8270_v29 = vmul.f32 100.0, %v8259_v46  ;;  %v3356_v56 = vmul.f32 1.442695, %v3306_v52 }
 0x455   :  { %5016 = vmatmul.mubr.msk.f32.gmra.mrb[76].mxu1 %vm940_vm2, %v3749_v43  ;;  %v8274_v38 = vmul.f32 100.0, %v8265_v14  ;;  %v8276_v57 = vpop.eup %5599 }
 0x456   :  { %v4968_v22 = vpop.f32.mrb[54].mxu1  ;;  %v8280_v10 = vpop.eup %5601  ;;  %5607 = vpow2.f32 %v3356_v56  ;;  %v3309_v61 = vmin.f32 %v8270_v29, 20.0  ;;  %v3537_v6 = vadd.f32 1.0, %v8276_v57  ;;  %v3543_v39 = vand.u32 2147483647, %v8276_v57 }
 0x457   :  { %v3308_v25 = vmin.f32 %v8274_v38, 20.0  ;;  %v8285_v63 = vadd.f32 %v4968_v22, %v8078_v40  ;;  %v3207_v62 = vpop.f32.mrb[55].mxu1  ;;  %5609 = vpow2.f32 %v3358_v11  ;;  %v3528_v18 = vadd.f32 1.0, %v8280_v10 }
 0x458   :  { %v5604_v59 = vpop.eup %5603  ;;  %v8289_v45 = vadd.f32 %v8078_v40, %v3207_v62  ;;  %v3362_v3 = vmul.f32 1.442695, %v3309_v61  ;;  %v3531_v9 = vmul.f32 -0.5, %v8280_v10  ;;  %v3534_v58 = vand.u32 2147483647, %v8280_v10 }
 0x459   :  { %v5606_v27 = vpop.eup %5605  ;;  %v3360_v51 = vmul.f32 1.442695, %v3308_v25  ;;  %v8293_v31 = vmul.f32 100.0, %v8285_v63  ;;  %v3512_v23 = vmul.f32 0.6931472, %v5604_v59  ;;  %vm3724_vm13 = vcmp.gt.f32.partialorder %v8274_v38, 20.0 }
 0x45a   :  { %v8297_v1 = vmul.f32 100.0, %v8289_v45  ;;  %v3521_v16 = vmul.f32 0.6931472, %v5606_v27  ;;  %v3532_v52 = vadd.f32 1.0, %v3531_v9  ;;  %vm8352_vm11 = vcmp.lt.f32.partialorder %v3534_v58, 0.0004427343 }
 0x45b   :  { %v3518_v42 = vsel %vm3517_vm7, %v3515_v28, %v3512_v23  ;;  %5611 = vpow2.f32 %v3360_v51  ;;  %v3311_v54 = vmin.f32 %v8293_v31, 20.0  ;;  %vm8356_vm12 = vcmp.lt.f32.partialorder %v3543_v39, 0.0004427343 }
 0x45c   :  { %v4971_v53 = vpop.f32.mrb[56].mxu1  ;;  %v3686_v0 = vmul.f32 0.01, %v3518_v42  ;;  %v3527_v12 = vsel %vm3526_vm9, %v3524_v32, %v3521_v16  ;;  %5613 = vlog2.f32 %v3528_v18  ;;  %v3310_v20 = vmin.f32 %v8297_v1, 20.0 }
 0x45d   :  { %v8304_v47 = vadd.f32 %v4971_v53, %v8078_v40  ;;  %v3217_v5 = vpop.f32.mrb[57].mxu1  ;;  %v3687_v2 = vmul.f32 0.01, %v3527_v12  ;;  %v3366_v36 = vmul.f32 1.442695, %v3311_v54  ;;  %5615 = vlog2.f32 %v3537_v6 }
 0x45e   :  { %v8308_v55 = vadd.f32 %v8078_v40, %v3217_v5  ;;  %v3750_v8 = vsel %vm3718_vm8, %v8200_v44, %v3686_v0  ;;  %v3540_v44 = vmul.f32 -0.5, %v8276_v57  ;;  %5617 = vpow2.f32 %v3362_v3 }
 0x45f   :  { %v8315_v7 = vmul.f32 100.0, %v8304_v47  ;;  %5018 = vmatprep.mubr.msk.f32.mxu1 %vm940_vm2, %v3750_v8  ;;  %v3751_v15 = vsel %vm3719_vm0, %v8193_v49, %v3687_v2  ;;  %v3364_v37 = vmul.f32 1.442695, %v3310_v20  ;;  %5619 = vpow2.f32 %v3366_v36 }
 0x460   :  { %v8322_v41 = vmul.f32 100.0, %v8308_v55  ;;  %5019 = vmatmul.mubr.msk.f32.gmra.mrb[78].mxu1 %vm940_vm2, %v3751_v15  ;;  %v8325_v17 = vpop.eup %5607  ;;  %v3541_v19 = vadd.f32 1.0, %v3540_v44  ;;  %v3533_v59 = vmul.f32 %v8280_v10, %v3532_v52  ;;  %vm3725_vm6 = vcmp.gt.f32.partialorder %v8270_v29, 20.0 }
 0x461   :  { %v8328_v48 = vpop.eup %5609  ;;  %v3313_v49 = vmin.f32 %v8315_v7, 20.0  ;;  %v3546_v56 = vadd.f32 1.0, %v8325_v17  ;;  %5621 = vpow2.f32 %v3364_v37  ;;  %v3549_v3 = vmul.f32 -0.5, %v8325_v17 }
 0x462   :  { %v4974_v60 = vpop.f32.mrb[58].mxu1  ;;  %v3312_v22 = vmin.f32 %v8322_v41, 20.0  ;;  %v3555_v61 = vadd.f32 1.0, %v8328_v48  ;;  %v3542_v0 = vmul.f32 %v8276_v57, %v3541_v19  ;;  %v3552_v12 = vand.u32 2147483647, %v8325_v17 }
 0x463   :  { %v8333_v43 = vadd.f32 %v4974_v60, %v8078_v40  ;;  %v3227_v11 = vpop.f32.mrb[59].mxu1  ;;  %v3370_v27 = vmul.f32 1.442695, %v3313_v49  ;;  %5623 = vlog2.f32 %v3546_v56  ;;  %v3558_v57 = vmul.f32 -0.5, %v8328_v48 }
 0x464   :  { %v8339_v26 = vadd.f32 %v8078_v40, %v3227_v11  ;;  %v3368_v18 = vmul.f32 1.442695, %v3312_v22  ;;  %5625 = vlog2.f32 %v3555_v61  ;;  %v3550_v37 = vadd.f32 1.0, %v3549_v3 }
 0x465   :  { %v8342_v4 = vmul.f32 100.0, %v8333_v43  ;;  %v8345_v25 = vpop.eup %5611  ;;  %5627 = vpow2.f32 %v3370_v27  ;;  %v3561_v58 = vand.u32 2147483647, %v8328_v48  ;;  %vm8392_vm15 = vcmp.lt.f32.partialorder %v3552_v12, 0.0004427343 }
 0x466   :  { %v8349_v62 = vmul.f32 100.0, %v8339_v26  ;;  %v5614_v28 = vpop.eup %5613  ;;  %v3564_v2 = vadd.f32 1.0, %v8345_v25  ;;  %5629 = vpow2.f32 %v3368_v18  ;;  %v3551_v23 = vmul.f32 %v8325_v17, %v3550_v37 }
 0x467   :  { %v4977_v16 = vpop.f32.mrb[60].mxu1  ;;  %v3530_v32 = vmul.f32 0.6931472, %v5614_v28  ;;  %v3315_v10 = vmin.f32 %v8342_v4, 20.0  ;;  %v5616_v20 = vpop.eup %5615  ;;  %v3559_v28 = vadd.f32 1.0, %v3558_v57  ;;  %v3567_v18 = vmul.f32 -0.5, %v8345_v25 }
 0x468   :  { %v8364_v42 = vadd.f32 %v4977_v16, %v8078_v40  ;;  %v3237_v53 = vpop.f32.mrb[61].mxu1  ;;  %v3314_v6 = vmin.f32 %v8349_v62, 20.0  ;;  %v8379_v15 = vpop.eup %5617  ;;  %v3539_v44 = vmul.f32 0.6931472, %v5616_v20  ;;  %5631 = vlog2.f32 %v3564_v2 }
 0x469   :  { %v8370_v54 = vadd.f32 %v8078_v40, %v3237_v53  ;;  %v3536_v5 = vsel %vm8352_vm11, %v3533_v59, %v3530_v32  ;;  %v3374_v60 = vmul.f32 1.442695, %v3315_v10  ;;  %v8396_v19 = vpop.eup %5619  ;;  %v3573_v16 = vadd.f32 1.0, %v8379_v15 }
 0x46a   :  { %v8376_v8 = vmul.f32 100.0, %v8364_v42  ;;  %v3688_v9 = vmul.f32 0.01, %v3536_v5  ;;  %v3372_v49 = vmul.f32 1.442695, %v3314_v6  ;;  %v3545_v56 = vsel %vm8356_vm12, %v3542_v0, %v3539_v44 }
 0x46b   :  { %v8382_v36 = vmul.f32 100.0, %v8370_v54  ;;  %v3689_v59 = vmul.f32 0.01, %v3545_v56  ;;  %v8402_v27 = vpop.eup %5621  ;;  %5633 = vpow2.f32 %v3374_v60  ;;  %vm8416_vm1 = vcmp.lt.f32.partialorder %v3561_v58, 0.0004427343 }
 0x46c   :  { %v3752_v52 = vsel %vm3720_vm10, %v8226_v50, %v3688_v9  ;;  %v3317_v50 = vmin.f32 %v8376_v8, 20.0  ;;  %5635 = vpow2.f32 %v3372_v49  ;;  %v3560_v24 = vmul.f32 %v8328_v48, %v3559_v28 }
 0x46d   :  { %v3316_v11 = vmin.f32 %v8382_v36, 20.0  ;;  %v4980_v39 = vpop.f32.mrb[62].mxu1  ;;  %5021 = vmatprep.mubr.msk.f32.mxu1 %vm940_vm2, %v3752_v52  ;;  %v5624_v32 = vpop.eup %5623  ;;  %v3753_v10 = vsel %vm3721_vm14, %v8223_v21, %v3689_v59  ;;  %v3568_v20 = vadd.f32 1.0, %v3567_v18  ;;  %v3570_v9 = vand.u32 2147483647, %v8345_v25 }
 0x46e   :  { %v8400_v35 = vadd.f32 %v4980_v39, %v8078_v40  ;;  %v3247_v61 = vpop.f32.mrb[63].mxu1  ;;  %5022 = vmatmul.mubr.msk.f32.gmra.mrb[80].mxu1 %vm940_vm2, %v3753_v10  ;;  %v3548_v12 = vmul.f32 0.6931472, %v5624_v32  ;;  %v3378_v6 = vmul.f32 1.442695, %v3317_v50  ;;  %5637 = vlog2.f32 %v3573_v16 }
 0x46f   :  { %v8405_v51 = vadd.f32 %v8078_v40, %v3247_v61  ;;  %v5626_v40 = vpop.eup %5625  ;;  %v3376_v17 = vmul.f32 1.442695, %v3316_v11  ;;  %v3576_v52 = vmul.f32 -0.5, %v8379_v15  ;;  %v3582_v56 = vadd.f32 1.0, %v8402_v27 }
 0x470   :  { %v8411_v3 = vmul.f32 100.0, %v8400_v35  ;;  %v3557_v2 = vmul.f32 0.6931472, %v5626_v40  ;;  %v3554_v21 = vsel %vm8392_vm15, %v3551_v23, %v3548_v12  ;;  %v8429_v57 = vpop.eup %5627  ;;  %v3569_v61 = vmul.f32 %v8345_v25, %v3568_v20 }
 0x471   :  { %v8421_v0 = vmul.f32 100.0, %v8405_v51  ;;  %v3690_v37 = vmul.f32 0.01, %v3554_v21  ;;  %v8435_v58 = vpop.eup %5629  ;;  %5639 = vpow2.f32 %v3376_v17  ;;  %vm3571_vm5 = vcmp.lt.f32.partialorder %v3570_v9, 0.0004427343 }
 0x472   :  { %v3319_v5 = vmin.f32 %v8411_v3, 20.0  ;;  %v3563_v60 = vsel %vm8416_vm1, %v3560_v24, %v3557_v2  ;;  %v5632_v11 = vpop.eup %5631  ;;  %5641 = vpow2.f32 %v3378_v6  ;;  %v3577_v59 = vadd.f32 1.0, %v3576_v52 }
 0x473   :  { %v3318_v44 = vmin.f32 %v8421_v0, 20.0  ;;  %v3691_v49 = vmul.f32 0.01, %v3563_v60  ;;  %v3754_v39 = vsel %vm3722_vm3, %v8246_v13, %v3690_v37  ;;  %v3566_v50 = vmul.f32 0.6931472, %v5632_v11 }
 0x474   :  { %v3382_v48 = vmul.f32 1.442695, %v3319_v5  ;;  %5024 = vmatprep.mubr.msk.f32.mxu1 %vm940_vm2, %v3754_v39  ;;  %5643 = vlog2.f32 %v3582_v56  ;;  %v3591_v30 = vadd.f32 1.0, %v8396_v19  ;;  %v3585_v13 = vmul.f32 -0.5, %v8402_v27 }
 0x475   :  { %v3755_v22 = vsel %vm3723_vm4, %v8243_v34, %v3691_v49  ;;  %v3380_v33 = vmul.f32 1.442695, %v3318_v44  ;;  %v3572_v28 = vsel %vm3571_vm5, %v3569_v61, %v3566_v50  ;;  %v3600_v23 = vadd.f32 1.0, %v8435_v58  ;;  %v8448_v18 = vpop.eup %5633 }
 0x476   :  { %5025 = vmatmul.mubr.msk.f32.gmra.mrb[82].mxu1 %vm940_vm2, %v3755_v22  ;;  %5645 = vpow2.f32 %v3382_v48  ;;  %v3692_v34 = vmul.f32 0.01, %v3572_v28  ;;  %v3594_v25 = vmul.f32 -0.5, %v8396_v19  ;;  %v8451_v16 = vpop.eup %5635  ;;  %v3579_v32 = vand.u32 2147483647, %v8379_v15 }
 0x477   :  { %5647 = vlog2.f32 %v3591_v30  ;;  %v3603_v10 = vmul.f32 -0.5, %v8435_v58  ;;  %v3609_v40 = vadd.f32 1.0, %v8429_v57  ;;  %v3578_v12 = vmul.f32 %v8379_v15, %v3577_v59 }
 0x478   :  { %5649 = vlog2.f32 %v3600_v23  ;;  %v3756_v53 = vsel %vm3724_vm13, %v8265_v14, %v3692_v34  ;;  %v5638_v17 = vpop.eup %5637  ;;  %v3586_v6 = vadd.f32 1.0, %v3585_v13  ;;  %v3588_v38 = vand.u32 2147483647, %v8402_v27 }
 0x479   :  { %5651 = vpow2.f32 %v3380_v33  ;;  %5027 = vmatprep.mubr.msk.f32.mxu1 %vm940_vm2, %v3756_v53  ;;  %v3597_v5 = vand.u32 2147483647, %v8396_v19  ;;  %v3575_v2 = vmul.f32 0.6931472, %v5638_v17  ;;  %v3595_v24 = vadd.f32 1.0, %v3594_v25 }
 0x47a   :  { %5653 = vlog2.f32 %v3609_v40  ;;  %v3618_v21 = vadd.f32 1.0, %v8451_v16  ;;  %vm3726_vm0 = vcmp.gt.f32.partialorder %v8297_v1, 20.0  ;;  %vm3580_vm7 = vcmp.lt.f32.partialorder %v3579_v32, 0.0004427343 }
 0x47b   :  { %v8464_v20 = vpop.eup %5639  ;;  %v3604_v14 = vadd.f32 1.0, %v3603_v10  ;;  %v3606_v9 = vand.u32 2147483647, %v8435_v58  ;;  %v3612_v15 = vmul.f32 -0.5, %v8429_v57  ;;  %v3581_v37 = vsel %vm3580_vm7, %v3578_v12, %v3575_v2 }
 0x47c   :  { %v8469_v44 = vpop.eup %5641  ;;  %v3615_v60 = vand.u32 2147483647, %v8429_v57  ;;  %5655 = vlog2.f32 %v3618_v21  ;;  %v3627_v52 = vadd.f32 1.0, %v8448_v18  ;;  %vm3727_vm8 = vcmp.gt.f32.partialorder %v8293_v31, 20.0 }
 0x47d   :  { %v3693_v48 = vmul.f32 0.01, %v3581_v37  ;;  %v3587_v49 = vmul.f32 %v8402_v27, %v3586_v6  ;;  %vm8475_vm9 = vcmp.lt.f32.partialorder %v3588_v38, 0.0004427343  ;;  %vm8479_vm10 = vcmp.lt.f32.partialorder %v3597_v5, 0.0004427343 }
 0x47e   :  { %v5644_v56 = vpop.eup %5643  ;;  %vm3728_vm11 = vcmp.gt.f32.partialorder %v8322_v41, 20.0  ;;  %v3596_v22 = vmul.f32 %v8396_v19, %v3595_v24  ;;  %v3621_v50 = vmul.f32 -0.5, %v8451_v16  ;;  %5657 = vlog2.f32 %v3627_v52 }
 0x47f   :  { %v3636_v61 = vadd.f32 1.0, %v8464_v20  ;;  %v3757_v27 = vsel %vm3725_vm6, %v8259_v46, %v3693_v48  ;;  %v3584_v59 = vmul.f32 0.6931472, %v5644_v56  ;;  %vm8492_vm12 = vcmp.lt.f32.partialorder %v3606_v9, 0.0004427343 }
 0x480   :  { %v8487_v33 = vpop.eup %5645  ;;  %v3613_v28 = vadd.f32 1.0, %v3612_v15  ;;  %5028 = vmatmul.mubr.msk.f32.gmra.mrb[84].mxu1 %vm940_vm2, %v3757_v27  ;;  %v3605_v19 = vmul.f32 %v8435_v58, %v3604_v14  ;;  %vm8498_vm14 = vcmp.lt.f32.partialorder %v3615_v60, 0.0004427343  ;;  %v3630_v34 = vmul.f32 -0.5, %v8448_v18 }
 0x481   :  { %v5648_v13 = vpop.eup %5647  ;;  %5659 = vlog2.f32 %v3636_v61  ;;  %vm3729_vm15 = vcmp.gt.f32.partialorder %v8315_v7, 20.0  ;;  %v3590_v46 = vsel %vm8475_vm9, %v3587_v49, %v3584_v59  ;;  %v3624_v32 = vand.u32 2147483647, %v8451_v16 }
 0x482   :  { %v5650_v29 = vpop.eup %5649  ;;  %v3593_v25 = vmul.f32 0.6931472, %v5648_v13  ;;  %v3645_v10 = vadd.f32 1.0, %v8469_v44  ;;  %v3694_v58 = vmul.f32 0.01, %v3590_v46  ;;  %v3622_v17 = vadd.f32 1.0, %v3621_v50 }
 0x483   :  { %v8508_v53 = vpop.eup %5651  ;;  %v3602_v40 = vmul.f32 0.6931472, %v5650_v29  ;;  %v3639_v12 = vmul.f32 -0.5, %v8464_v20  ;;  %vm3730_vm1 = vcmp.gt.f32.partialorder %v8349_v62, 20.0  ;;  %v3614_v38 = vmul.f32 %v8429_v57, %v3613_v28 }
 0x484   :  { %v3599_v6 = vsel %vm8479_vm10, %v3596_v22, %v3593_v25  ;;  %v3633_v5 = vand.u32 2147483647, %v8448_v18  ;;  %5661 = vlog2.f32 %v3645_v10  ;;  %v5654_v2 = vpop.eup %5653  ;;  %v3758_v24 = vsel %vm3726_vm0, %v8289_v45, %v3694_v58 }
 0x485   :  { %v3695_v21 = vmul.f32 0.01, %v3599_v6  ;;  %v3608_v14 = vsel %vm8492_vm12, %v3605_v19, %v3602_v40  ;;  %v3631_v9 = vadd.f32 1.0, %v3630_v34  ;;  %5030 = vmatprep.mubr.msk.f32.mxu1 %vm940_vm2, %v3758_v24  ;;  %v3611_v37 = vmul.f32 0.6931472, %v5654_v2 }
 0x486   :  { %v3696_v15 = vmul.f32 0.01, %v3608_v14  ;;  %v3648_v60 = vmul.f32 -0.5, %v8469_v44  ;;  %v3654_v57 = vadd.f32 1.0, %v8508_v53  ;;  %v5656_v52 = vpop.eup %5655  ;;  %v3623_v45 = vmul.f32 %v8451_v16, %v3622_v17 }
 0x487   :  { %v3759_v48 = vsel %vm3727_vm8, %v8285_v63, %v3695_v21  ;;  %vm8528_vm3 = vcmp.lt.f32.partialorder %v3624_v32, 0.0004427343  ;;  %v3640_v49 = vadd.f32 1.0, %v3639_v12  ;;  %v3617_v39 = vsel %vm8498_vm14, %v3614_v38, %v3611_v37 }
 0x488   :  { %5031 = vmatmul.mubr.msk.f32.gmra.mrb[86].mxu1 %vm940_vm2, %v3759_v48  ;;  %v3760_v11 = vsel %vm3728_vm11, %v8308_v55, %v3696_v15  ;;  %v3620_v56 = vmul.f32 0.6931472, %v5656_v52  ;;  %vm8538_vm4 = vcmp.lt.f32.partialorder %v3633_v5, 0.0004427343  ;;  %v5658_v63 = vpop.eup %5657  ;;  %v3697_v16 = vmul.f32 0.01, %v3617_v39 }
 0x489   :  { %5033 = vmatprep.mubr.msk.f32.mxu1 %vm940_vm2, %v3760_v11  ;;  %v3632_v22 = vmul.f32 %v8448_v18, %v3631_v9  ;;  %v3642_v50 = vand.u32 2147483647, %v8464_v20  ;;  %5663 = vlog2.f32 %v3654_v57  ;;  %v3629_v41 = vmul.f32 0.6931472, %v5658_v63 }
 0x48a   :  { %v3626_v55 = vsel %vm8528_vm3, %v3623_v45, %v3620_v56  ;;  %v3649_v61 = vadd.f32 1.0, %v3648_v60  ;;  %v3663_v27 = vadd.f32 1.0, %v8487_v33  ;;  %v3761_v30 = vsel %vm3729_vm15, %v8304_v47, %v3697_v16 }
 0x48b   :  { %v5660_v59 = vpop.eup %5659  ;;  %v3698_v28 = vmul.f32 0.01, %v3626_v55  ;;  %v3641_v13 = vmul.f32 %v8464_v20, %v3640_v49  ;;  %v3651_v18 = vand.u32 2147483647, %v8469_v44  ;;  %v3635_v19 = vsel %vm8538_vm4, %v3632_v22, %v3629_v41 }
 0x48c   :  { %5034 = vmatmul.mubr.msk.f32.gmra.mrb[88].mxu1 %vm940_vm2, %v3761_v30  ;;  %v3638_v23 = vmul.f32 0.6931472, %v5660_v59  ;;  %v3657_v34 = vmul.f32 -0.5, %v8508_v53  ;;  %5665 = vlog2.f32 %v3663_v27  ;;  %v3699_v7 = vmul.f32 0.01, %v3635_v19 }
 0x48d   :  { %v3762_v29 = vsel %vm3730_vm1, %v8339_v26, %v3698_v28  ;;  %vm3643_vm5 = vcmp.lt.f32.partialorder %v3642_v50, 0.0004427343  ;;  %vm3731_vm13 = vcmp.gt.f32.partialorder %v8342_v4, 20.0  ;;  %v3650_v46 = vmul.f32 %v8469_v44, %v3649_v61 }
 0x48e   :  { %v5662_v47 = vpop.eup %5661  ;;  %5036 = vmatprep.mubr.msk.f32.mxu1 %vm940_vm2, %v3762_v29  ;;  %v3644_v20 = vsel %vm3643_vm5, %v3641_v13, %v3638_v23  ;;  %v3763_v25 = vsel %vm3731_vm13, %v8333_v43, %v3699_v7  ;;  %v3666_v58 = vmul.f32 -0.5, %v8487_v33  ;;  %vm3732_vm6 = vcmp.gt.f32.partialorder %v8382_v36, 20.0 }
 0x48f   :  { %v3700_v32 = vmul.f32 0.01, %v3644_v20  ;;  %v3647_v10 = vmul.f32 0.6931472, %v5662_v47  ;;  %vm3652_vm0 = vcmp.lt.f32.partialorder %v3651_v18, 0.0004427343  ;;  %v4104_v9 = vlaneseq }
 0x490   :  { %5037 = vmatmul.mubr.msk.f32.gmra.mrb[90].mxu1 %vm940_vm2, %v3763_v25  ;;  %v3658_v26 = vadd.f32 1.0, %v3657_v34  ;;  %v3660_v40 = vand.u32 2147483647, %v8508_v53  ;;  %vm3733_vm7 = vcmp.gt.f32.partialorder %v8376_v8, 20.0  ;;  %v3667_v43 = vadd.f32 1.0, %v3666_v58 }
 0x491   :  { %v3764_v62 = vsel %vm3732_vm6, %v8370_v54, %v3700_v32  ;;  %v3653_v4 = vsel %vm3652_vm0, %v3650_v46, %v3647_v10  ;;  %v3669_v38 = vand.u32 2147483647, %v8487_v33  ;;  %vm3734_vm9 = vcmp.gt.f32.partialorder %v8421_v0, 20.0 }
 0x492   :  { %5039 = vmatprep.mubr.msk.f32.mxu1 %vm940_vm2, %v3764_v62  ;;  %v3701_v44 = vmul.f32 0.01, %v3653_v4  ;;  %v3659_v36 = vmul.f32 %v8508_v53, %v3658_v26  ;;  %vm3661_vm8 = vcmp.lt.f32.partialorder %v3660_v40, 0.0004427343  ;;  %v3668_v21 = vmul.f32 %v8487_v33, %v3667_v43  ;;  %v8585_v33 = vld [vmem:[%s8709_s11] ss:$0 sm:$0xff] }
 0x493   :  { %v5664_v17 = vpop.eup %5663  ;;  %vm3670_vm10 = vcmp.lt.f32.partialorder %v3669_v38, 0.0004427343  ;;  %vm3735_vm11 = vcmp.gt.f32.partialorder %v8411_v3, 20.0  ;;  %v8587_v15 = vand.u32 127, %v4104_v9  ;;  %s5692_s11 = smov [#allocation2]  }
 0x494   :  { %v3765_v12 = vsel %vm3733_vm7, %v8364_v42, %v3701_v44  ;;  %v3656_v6 = vmul.f32 0.6931472, %v5664_v17  ;;  %s4240_s19 = sshll.u32 %s5692_s11, 4  ;;  %s4241_s19 = int_to_ptr.vmem [resolvable:$true] %s4240_s19 }
 0x495   :  { %5040 = vmatmul.mubr.msk.f32.gmra.mrb[92].mxu1 %vm940_vm2, %v3765_v12  ;;  %vm4106_vm12 = vcmp.eq.s32.totalorder %v8587_v15, 0  ;;  %s5667_s20 = scalar_lea.vmem %s4241_s19, 4096  ;;  %p5672_p1 = scmp.lt.s32.totalorder %s4241_s19, %s4241_s19 }
 0x496   :  { %v5666_v54 = vpop.eup %5665  ;;  %v3662_v5 = vsel %vm3661_vm8, %v3659_v36, %v3656_v6  ;;  %p5668_p0 = scmp.ne.s32.totalorder %s4241_s19, %s5667_s20  ;;  %p5673_p2 = scmp.lt.s32.totalorder %s5667_s20, %s5667_s20 }
 0x497   :  { %v3702_v2 = vmul.f32 0.01, %v3662_v5  ;;  %v3665_v24 = vmul.f32 0.6931472, %v5666_v54 }
 0x498   :  { %p5674_p3 = por %p5673_p2, %p5672_p1 }
 0x499   :  { %v3766_v8 = vsel %vm3734_vm9, %v8405_v51, %v3702_v2  ;;  %v3671_v42 = vsel %vm3670_vm10, %v3668_v21, %v3665_v24 }
 0x49a   :  { %5042 = vmatprep.mubr.msk.f32.mxu1 %vm940_vm2, %v3766_v8  ;;  %v3703_v53 = vmul.f32 0.01, %v3671_v42  ;;  %p5675_p4 = pnand %p5674_p3, %p5668_p0 }
 0x49c   :  { %v3767_v14 = vsel %vm3735_vm11, %v8400_v35, %v3703_v53 }
 0x49d   :  { %5043 = vmatmul.mubr.msk.f32.gmra.mrb[94].mxu1 %vm940_vm2, %v3767_v14 }
 0x4d7   :  { %v4999_v0 = vpop.f32.mrb[64].mxu1 }
 0x4d8   :  { %v3951_v51 = vadd.f32 %v4999_v0, %v8585_v33  ;;  %v3945_v37 = vpop.f32.mrb[65].mxu1 }
 0x4d9   :  { %v3946_v60 = vadd.f32 %v8585_v33, %v3945_v37 }
 0x4da   :  { %v4108_v57 = vand.u32 2147483647, %v3951_v51 }
 0x4db   :  { %v4107_v35 = vand.u32 2147483647, %v3946_v60 }
 0x4dc   :  { %v4140_v3 = vmul.f32 0.6666667, %v4108_v57 }
 0x4dd   :  { %v4139_v52 = vmul.f32 0.6666667, %v4107_v35 }
 0x4de   :  { %v4172_v48 = vsel %vm4106_vm12, %v4140_v3, %v3951_v51 }
 0x4df   :  { %4204 = vst [vmem:[#allocation2 + $0x8] sm:$0xff] %v4172_v48  ;;  %v4171_v45 = vsel %vm4106_vm12, %v4139_v52, %v3946_v60 }
 0x4e0   :  { %4203 = vst [vmem:[#allocation2] sm:$0xff] %v4171_v45 }
 0x4ea   :  { %v5002_v1 = vpop.f32.mrb[66].mxu1 }
 0x4eb   :  { %v3961_v49 = vadd.f32 %v5002_v1, %v8585_v33  ;;  %v3955_v11 = vpop.f32.mrb[67].mxu1 }
 0x4ec   :  { %v3956_v39 = vadd.f32 %v8585_v33, %v3955_v11 }
 0x4ed   :  { %v4110_v56 = vand.u32 2147483647, %v3961_v49 }
 0x4ee   :  { %v4109_v31 = vand.u32 2147483647, %v3956_v39 }
 0x4ef   :  { %v5005_v63 = vpop.f32.mrb[68].mxu1  ;;  %v4142_v16 = vmul.f32 0.6666667, %v4110_v56 }
 0x4f0   :  { %v3971_v22 = vadd.f32 %v5005_v63, %v8585_v33  ;;  %v3965_v50 = vpop.f32.mrb[69].mxu1  ;;  %v4141_v55 = vmul.f32 0.6666667, %v4109_v31 }
 0x4f1   :  { %v3966_v41 = vadd.f32 %v8585_v33, %v3965_v50  ;;  %v4174_v61 = vsel %vm4106_vm12, %v4142_v16, %v3961_v49 }
 0x4f2   :  { %v4112_v27 = vand.u32 2147483647, %v3971_v22  ;;  %4206 = vst [vmem:[#allocation2 + $0x18] sm:$0xff] %v4174_v61  ;;  %v4173_v59 = vsel %vm4106_vm12, %v4141_v55, %v3956_v39 }
 0x4f3   :  { %v4111_v30 = vand.u32 2147483647, %v3966_v41  ;;  %4205 = vst [vmem:[#allocation2 + $0x10] sm:$0xff] %v4173_v59 }
 0x4f4   :  { %v4144_v28 = vmul.f32 0.6666667, %v4112_v27 }
 0x4f5   :  { %v4143_v13 = vmul.f32 0.6666667, %v4111_v30 }
 0x4f6   :  { %v4176_v18 = vsel %vm4106_vm12, %v4144_v28, %v3971_v22 }
 0x4f7   :  { %4208 = vst [vmem:[#allocation2 + $0x28] sm:$0xff] %v4176_v18  ;;  %v4175_v19 = vsel %vm4106_vm12, %v4143_v13, %v3966_v41 }
 0x4f8   :  { %4207 = vst [vmem:[#allocation2 + $0x20] sm:$0xff] %v4175_v19 }
 0x4ff   :  { %v5008_v23 = vpop.f32.mrb[70].mxu1 }
 0x500   :  { %v3981_v34 = vadd.f32 %v5008_v23, %v8585_v33  ;;  %v3975_v29 = vpop.f32.mrb[71].mxu1 }
 0x501   :  { %v3976_v7 = vadd.f32 %v8585_v33, %v3975_v29 }
 0x502   :  { %v4114_v47 = vand.u32 2147483647, %v3981_v34 }
 0x503   :  { %v4113_v20 = vand.u32 2147483647, %v3976_v7 }
 0x504   :  { %v4146_v46 = vmul.f32 0.6666667, %v4114_v47 }
 0x505   :  { %v4145_v25 = vmul.f32 0.6666667, %v4113_v20 }
 0x506   :  { %v4178_v32 = vsel %vm4106_vm12, %v4146_v46, %v3981_v34 }
 0x507   :  { %4210 = vst [vmem:[#allocation2 + $0x38] sm:$0xff] %v4178_v32  ;;  %v4177_v10 = vsel %vm4106_vm12, %v4145_v25, %v3976_v7 }
 0x508   :  { %4209 = vst [vmem:[#allocation2 + $0x30] sm:$0xff] %v4177_v10 }
 0x50e   :  { %v5011_v58 = vpop.f32.mrb[72].mxu1 }
 0x50f   :  { %v3991_v26 = vadd.f32 %v5011_v58, %v8585_v33  ;;  %v3985_v62 = vpop.f32.mrb[73].mxu1 }
 0x510   :  { %v3986_v4 = vadd.f32 %v8585_v33, %v3985_v62 }
 0x511   :  { %v4116_v40 = vand.u32 2147483647, %v3991_v26 }
 0x512   :  { %v4115_v44 = vand.u32 2147483647, %v3986_v4 }
 0x513   :  { %v4148_v17 = vmul.f32 0.6666667, %v4116_v40 }
 0x514   :  { %v4147_v43 = vmul.f32 0.6666667, %v4115_v44 }
 0x515   :  { %v4180_v6 = vsel %vm4106_vm12, %v4148_v17, %v3991_v26 }
 0x516   :  { %4212 = vst [vmem:[#allocation2 + $0x48] sm:$0xff] %v4180_v6  ;;  %v4179_v54 = vsel %vm4106_vm12, %v4147_v43, %v3986_v4 }
 0x517   :  { %4211 = vst [vmem:[#allocation2 + $0x40] sm:$0xff] %v4179_v54 }
 0x519   :  { %v5014_v12 = vpop.f32.mrb[74].mxu1 }
 0x51a   :  { %v4001_v36 = vadd.f32 %v5014_v12, %v8585_v33  ;;  %v3995_v38 = vpop.f32.mrb[75].mxu1 }
 0x51b   :  { %v3996_v5 = vadd.f32 %v8585_v33, %v3995_v38 }
 0x51c   :  { %v4118_v2 = vand.u32 2147483647, %v4001_v36 }
 0x51d   :  { %v4117_v24 = vand.u32 2147483647, %v3996_v5 }
 0x51e   :  { %v4150_v21 = vmul.f32 0.6666667, %v4118_v2 }
 0x51f   :  { %v4149_v8 = vmul.f32 0.6666667, %v4117_v24 }
 0x520   :  { %v4182_v42 = vsel %vm4106_vm12, %v4150_v21, %v4001_v36 }
 0x521   :  { %4214 = vst [vmem:[#allocation2 + $0x58] sm:$0xff] %v4182_v42  ;;  %v4181_v53 = vsel %vm4106_vm12, %v4149_v8, %v3996_v5 }
 0x522   :  { %4213 = vst [vmem:[#allocation2 + $0x50] sm:$0xff] %v4181_v53 }
 0x528   :  { %v5017_v14 = vpop.f32.mrb[76].mxu1 }
 0x529   :  { %v4011_v9 = vadd.f32 %v5017_v14, %v8585_v33  ;;  %v4005_v0 = vpop.f32.mrb[77].mxu1 }
 0x52a   :  { %v4006_v51 = vadd.f32 %v8585_v33, %v4005_v0 }
 0x52b   :  { %v4120_v37 = vand.u32 2147483647, %v4011_v9 }
 0x52c   :  { %v4119_v60 = vand.u32 2147483647, %v4006_v51 }
 0x52d   :  { %v4152_v57 = vmul.f32 0.6666667, %v4120_v37 }
 0x52e   :  { %v4151_v35 = vmul.f32 0.6666667, %v4119_v60 }
 0x52f   :  { %v4184_v3 = vsel %vm4106_vm12, %v4152_v57, %v4011_v9 }
 0x530   :  { %4216 = vst [vmem:[#allocation2 + $0x68] sm:$0xff] %v4184_v3  ;;  %v4183_v52 = vsel %vm4106_vm12, %v4151_v35, %v4006_v51 }
 0x531   :  { %4215 = vst [vmem:[#allocation2 + $0x60] sm:$0xff] %v4183_v52 }
 0x533   :  { %v5020_v48 = vpop.f32.mrb[78].mxu1 }
 0x534   :  { %v4021_v45 = vadd.f32 %v5020_v48, %v8585_v33  ;;  %v4015_v1 = vpop.f32.mrb[79].mxu1 }
 0x535   :  { %v4016_v49 = vadd.f32 %v8585_v33, %v4015_v1 }
 0x536   :  { %v4122_v11 = vand.u32 2147483647, %v4021_v45 }
 0x537   :  { %v4121_v39 = vand.u32 2147483647, %v4016_v49 }
 0x538   :  { %v4154_v56 = vmul.f32 0.6666667, %v4122_v11 }
 0x539   :  { %v4153_v31 = vmul.f32 0.6666667, %v4121_v39 }
 0x53a   :  { %v4186_v63 = vsel %vm4106_vm12, %v4154_v56, %v4021_v45 }
 0x53b   :  { %4218 = vst [vmem:[#allocation2 + $0x78] sm:$0xff] %v4186_v63  ;;  %v4185_v16 = vsel %vm4106_vm12, %v4153_v31, %v4016_v49 }
 0x53c   :  { %4217 = vst [vmem:[#allocation2 + $0x70] sm:$0xff] %v4185_v16 }
 0x541   :  { %v5023_v22 = vpop.f32.mrb[80].mxu1 }
 0x542   :  { %v4031_v50 = vadd.f32 %v5023_v22, %v8585_v33  ;;  %v4025_v55 = vpop.f32.mrb[81].mxu1 }
 0x543   :  { %v4026_v41 = vadd.f32 %v8585_v33, %v4025_v55 }
 0x544   :  { %v4124_v61 = vand.u32 2147483647, %v4031_v50 }
 0x545   :  { %v4123_v27 = vand.u32 2147483647, %v4026_v41 }
 0x546   :  { %v4156_v59 = vmul.f32 0.6666667, %v4124_v61 }
 0x547   :  { %v4155_v30 = vmul.f32 0.6666667, %v4123_v27 }
 0x548   :  { %v4188_v28 = vsel %vm4106_vm12, %v4156_v59, %v4031_v50 }
 0x549   :  { %v5026_v13 = vpop.f32.mrb[82].mxu1  ;;  %4220 = vst [vmem:[#allocation2 + $0x88] sm:$0xff] %v4188_v28  ;;  %v4187_v18 = vsel %vm4106_vm12, %v4155_v30, %v4026_v41 }
 0x54a   :  { %v4041_v19 = vadd.f32 %v5026_v13, %v8585_v33  ;;  %v4035_v23 = vpop.f32.mrb[83].mxu1  ;;  %4219 = vst [vmem:[#allocation2 + $0x80] sm:$0xff] %v4187_v18 }
 0x54b   :  { %v4036_v34 = vadd.f32 %v8585_v33, %v4035_v23 }
 0x54c   :  { %v4126_v29 = vand.u32 2147483647, %v4041_v19 }
 0x54d   :  { %v4125_v7 = vand.u32 2147483647, %v4036_v34 }
 0x54e   :  { %v4158_v47 = vmul.f32 0.6666667, %v4126_v29 }
 0x54f   :  { %v4157_v20 = vmul.f32 0.6666667, %v4125_v7 }
 0x550   :  { %v4190_v46 = vsel %vm4106_vm12, %v4158_v47, %v4041_v19 }
 0x551   :  { %4222 = vst [vmem:[#allocation2 + $0x98] sm:$0xff] %v4190_v46  ;;  %v4189_v25 = vsel %vm4106_vm12, %v4157_v20, %v4036_v34 }
 0x552   :  { %4221 = vst [vmem:[#allocation2 + $0x90] sm:$0xff] %v4189_v25 }
 0x553   :  { %v5029_v32 = vpop.f32.mrb[84].mxu1 }
 0x554   :  { %v4051_v10 = vadd.f32 %v5029_v32, %v8585_v33  ;;  %v4045_v58 = vpop.f32.mrb[85].mxu1 }
 0x555   :  { %v4046_v26 = vadd.f32 %v8585_v33, %v4045_v58 }
 0x556   :  { %v4128_v62 = vand.u32 2147483647, %v4051_v10 }
 0x557   :  { %v4127_v4 = vand.u32 2147483647, %v4046_v26 }
 0x558   :  { %v4160_v40 = vmul.f32 0.6666667, %v4128_v62 }
 0x559   :  { %v4159_v44 = vmul.f32 0.6666667, %v4127_v4 }
 0x55a   :  { %v4192_v17 = vsel %vm4106_vm12, %v4160_v40, %v4051_v10 }
 0x55b   :  { %v5032_v43 = vpop.f32.mrb[86].mxu1  ;;  %4224 = vst [vmem:[#allocation2 + $0xa8] sm:$0xff] %v4192_v17  ;;  %v4191_v12 = vsel %vm4106_vm12, %v4159_v44, %v4046_v26 }
 0x55c   :  { %v4061_v6 = vadd.f32 %v5032_v43, %v8585_v33  ;;  %v4055_v36 = vpop.f32.mrb[87].mxu1  ;;  %4223 = vst [vmem:[#allocation2 + $0xa0] sm:$0xff] %v4191_v12 }
 0x55d   :  { %v4056_v38 = vadd.f32 %v8585_v33, %v4055_v36 }
 0x55e   :  { %v4130_v54 = vand.u32 2147483647, %v4061_v6 }
 0x55f   :  { %v4129_v5 = vand.u32 2147483647, %v4056_v38  ;;  %v5035_v2 = vpop.f32.mrb[88].mxu1 }
 0x560   :  { %v4162_v24 = vmul.f32 0.6666667, %v4130_v54  ;;  %v4071_v21 = vadd.f32 %v5035_v2, %v8585_v33  ;;  %v4065_v8 = vpop.f32.mrb[89].mxu1 }
 0x561   :  { %v4161_v42 = vmul.f32 0.6666667, %v4129_v5  ;;  %v4066_v53 = vadd.f32 %v8585_v33, %v4065_v8 }
 0x562   :  { %v4194_v14 = vsel %vm4106_vm12, %v4162_v24, %v4061_v6  ;;  %v4132_v9 = vand.u32 2147483647, %v4071_v21 }
 0x563   :  { %4226 = vst [vmem:[#allocation2 + $0xb8] sm:$0xff] %v4194_v14  ;;  %v4193_v0 = vsel %vm4106_vm12, %v4161_v42, %v4056_v38  ;;  %v4131_v51 = vand.u32 2147483647, %v4066_v53  ;;  %v5038_v37 = vpop.f32.mrb[90].mxu1 }
 0x564   :  { %4225 = vst [vmem:[#allocation2 + $0xb0] sm:$0xff] %v4193_v0  ;;  %v4164_v60 = vmul.f32 0.6666667, %v4132_v9  ;;  %v4081_v57 = vadd.f32 %v5038_v37, %v8585_v33  ;;  %v4075_v35 = vpop.f32.mrb[91].mxu1 }
 0x565   :  { %v4163_v3 = vmul.f32 0.6666667, %v4131_v51  ;;  %v4076_v52 = vadd.f32 %v8585_v33, %v4075_v35 }
 0x566   :  { %v4196_v48 = vsel %vm4106_vm12, %v4164_v60, %v4071_v21  ;;  %v4134_v45 = vand.u32 2147483647, %v4081_v57 }
 0x567   :  { %4228 = vst [vmem:[#allocation2 + $0xc8] sm:$0xff] %v4196_v48  ;;  %v4195_v1 = vsel %vm4106_vm12, %v4163_v3, %v4066_v53  ;;  %v4133_v49 = vand.u32 2147483647, %v4076_v52 }
 0x568   :  { %4227 = vst [vmem:[#allocation2 + $0xc0] sm:$0xff] %v4195_v1  ;;  %v4166_v11 = vmul.f32 0.6666667, %v4134_v45  ;;  %v5041_v39 = vpop.f32.mrb[92].mxu1 }
 0x569   :  { %v4165_v56 = vmul.f32 0.6666667, %v4133_v49  ;;  %v4091_v31 = vadd.f32 %v5041_v39, %v8585_v33  ;;  %v4085_v63 = vpop.f32.mrb[93].mxu1 }
 0x56a   :  { %v4198_v16 = vsel %vm4106_vm12, %v4166_v11, %v4081_v57  ;;  %v4086_v22 = vadd.f32 %v8585_v33, %v4085_v63 }
 0x56b   :  { %4230 = vst [vmem:[#allocation2 + $0xd8] sm:$0xff] %v4198_v16  ;;  %v4197_v50 = vsel %vm4106_vm12, %v4165_v56, %v4076_v52  ;;  %v4136_v55 = vand.u32 2147483647, %v4091_v31 }
 0x56c   :  { %4229 = vst [vmem:[#allocation2 + $0xd0] sm:$0xff] %v4197_v50  ;;  %v4135_v41 = vand.u32 2147483647, %v4086_v22 }
 0x56d   :  { %v4168_v61 = vmul.f32 0.6666667, %v4136_v55 }
 0x56e   :  { %v4167_v27 = vmul.f32 0.6666667, %v4135_v41 }
 0x56f   :  { %v4200_v59 = vsel %vm4106_vm12, %v4168_v61, %v4091_v31 }
 0x570   :  { %4232 = vst [vmem:[#allocation2 + $0xe8] sm:$0xff] %v4200_v59  ;;  %v4199_v30 = vsel %vm4106_vm12, %v4167_v27, %v4086_v22  ;;  %v5044_v28 = vpop.f32.mrb[94].mxu1 }
 0x571   :  { %4231 = vst [vmem:[#allocation2 + $0xe0] sm:$0xff] %v4199_v30  ;;  %v4101_v13 = vadd.f32 %v5044_v28, %v8585_v33  ;;  %v4095_v18 = vpop.f32.mrb[95].mxu1 }
 0x572   :  { %v4096_v19 = vadd.f32 %v8585_v33, %v4095_v18 }
 0x573   :  { %v4138_v23 = vand.u32 2147483647, %v4101_v13 }
 0x574   :  { %v4137_v34 = vand.u32 2147483647, %v4096_v19 }
 0x575   :  { %v4170_v29 = vmul.f32 0.6666667, %v4138_v23 }
 0x576   :  { %v4169_v7 = vmul.f32 0.6666667, %v4137_v34 }
 0x577   :  { %v4202_v47 = vsel %vm4106_vm12, %v4170_v29, %v4101_v13 }
 0x578   :  { %4234 = vst [vmem:[#allocation2 + $0xf8] sm:$0xff] %v4202_v47  ;;  %v4201_v20 = vsel %vm4106_vm12, %v4169_v7, %v4096_v19 }
 0x579   :  { %4233 = vst [vmem:[#allocation2 + $0xf0] sm:$0xff] %v4201_v20 }
 0x57a   :  { %5678 = shalt.err (!%p5675_p4)
}
 0x57b   :  { %s5679_s23 = scalar_lea.hbm %s8710_s12, 4096 }
 0x57c   :  { %p5680_p5 = scmp.ne.s32.totalorder %s8710_s12, %s5679_s23  ;;  %p5683_p6 = scmp.lt.u32.totalorder %s5679_s23, %s8710_s12 }
 0x57e   :  { %p5685_p7 = pnand %p5683_p6, %p5680_p5 }
 0x580   :  { %5688 = shalt.err (!%p5685_p7)
}
 0x581   :  { %s5693_s7 = smov 128   ;;  %s5694_s8 = smov 8  }
 0x582   :  { %4246 = dma.vmem_to_hbm [thread:$0]  %s4241_s19, 4096, %s8710_s12, [#allocation3], %s5693_s7, %s5693_s7, %s5694_s8  }
 0x583   :  { %5689 = dma.done.wait [#allocation3], 4096  }
 0x584   :  { %5690 = vsyncadd [#allocation3], 4294963200 }
 0x585   :  { %4250 = vsyncpa [#allocation3], 1 }

</bundles_post_ra>
